<compile_context>
chip_gen: v7x
topology: tpu7x:2x2x1
jax: 0.10.0
libtpu: 0.0.40
codegen_flags: <defaults>
</compile_context>

<pallas_src>
import functools
import math

import jax
import jax.numpy as jnp
from jax.experimental import pallas as pl
from jax.experimental.pallas import tpu as pltpu

_BF16 = jnp.bfloat16
_VMEM_LIMIT = 48 * 1024 * 1024      # explicit scoped-VMEM limit, safe on v5e/v6e/v7x


# ----------------------------------------------------------------------------
# In-kernel helpers
# ----------------------------------------------------------------------------

def _ln(x, g, b, eps):
    x = x.astype(jnp.float32)
    mu = jnp.mean(x, axis=-1, keepdims=True)
    var = jnp.mean(jnp.square(x - mu), axis=-1, keepdims=True)
    return (x - mu) * jax.lax.rsqrt(var + eps) * g + b


def _dot(a, b):
    # bf16 MXU operands, f32 accumulation.
    return jnp.dot(a.astype(_BF16), b.astype(_BF16),
                   preferred_element_type=jnp.float32)


def _dot_nt(a, b):
    # a (M, D) · b (N, D)^T without materializing a transpose (contract last axes).
    return jax.lax.dot_general(
        a.astype(_BF16), b.astype(_BF16),
        dimension_numbers=(((1,), (1,)), ((), ())),
        preferred_element_type=jnp.float32)


# ----------------------------------------------------------------------------
# Kernel 1: self-attention + pair-attention + residual/LayerNorm/lambda-combine
# ----------------------------------------------------------------------------

def _self_attn_kernel(obj_ref, pos_ref, cn_ref, ct_ref, wqkv_ref, wpos_ref,
                      g1_ref, b1_ref, g2_ref, b2_ref, o_ref, o1_scr, o2_scr,
                      *, heads, lam, eps):
    obj = obj_ref[0]                       # (N, 2C) bf16
    pos = pos_ref[0]                       # (N, C)  bf16
    n, two_c = obj.shape
    dh = two_c // heads
    scale = 1.0 / math.sqrt(dh)

    # Pair-attention bias exp(-||Δcenters||²) computed in-kernel from coords
    # and exponentiated ONCE per grid step (hoisted off the EUP-bound head loop).
    # TODO(synk): PairSelfAttention source unavailable; modeled as MHA with this
    #             additive pairwise logit bias.
    cn = cn_ref[0].astype(jnp.float32)     # (N, 2)
    ct = ct_ref[0].astype(jnp.float32)     # (2, N)  (pre-transposed in wrapper)
    dx = cn[:, 0:1] - ct[0:1, :]           # (N, N) via VPU broadcasts only
    dy = cn[:, 1:2] - ct[1:2, :]
    eb = jnp.exp(-(dx * dx + dy * dy))     # exp(bias), bias <= 0

    # Fused projections: one MXU pass over obj (Q|K|V), one over pos; the
    # q_pos/k_pos duplication is baked into w_sa_pos (C, 4C) -> no concatenates.
    qkv = _dot(obj, wqkv_ref[...])         # (N, 6C) = [q_obj | k_obj | v]
    pp = _dot(pos, wpos_ref[...])          # (N, 4C) = [q_pos q_pos | k_pos k_pos]
    q = (qkv[:, :two_c] + pp[:, :two_c]).astype(_BF16)           # hoisted bf16 cast
    k = (qkv[:, two_c:2 * two_c] + pp[:, two_c:]).astype(_BF16)
    v = qkv[:, 2 * two_c:].astype(_BF16)

    # Per-head loop: one score matmul shared by plain & pair attention, ONE exp
    # of the scores (pair numerator = e1 * eb), one stacked (2N,N)x(N,dh) PV
    # matmul; head outputs written straight into VMEM scratch at lane offsets.
    for h in range(heads):
        lo, hi = h * dh, (h + 1) * dh
        s = _dot_nt(q[:, lo:hi], k[:, lo:hi]) * scale             # (N, N) f32
        m1 = jnp.max(s, axis=-1, keepdims=True)
        e1 = jnp.exp(s - m1)                                      # shared exp
        e2 = e1 * eb                                              # pair numerator
        p1 = e1 * pl.reciprocal(jnp.sum(e1, axis=-1, keepdims=True), approx=True)
        p2 = e2 * pl.reciprocal(jnp.sum(e2, axis=-1, keepdims=True), approx=True)
        pv = _dot(jnp.concatenate([p1, p2], axis=0), v[:, lo:hi])  # (2N, dh)
        o1_scr[:, lo:hi] = pv[:n]
        o2_scr[:, lo:hi] = pv[n:]

    # Fused epilogue: residual + two LayerNorms + lambda combine, bf16 store.
    objf = obj.astype(jnp.float32)
    o_ref[0] = (lam * _ln(objf + o1_scr[...], g1_ref[...], b1_ref[...], eps)
                + (1.0 - lam) * _ln(objf + o2_scr[...], g2_ref[...], b2_ref[...], eps)
                ).astype(o_ref.dtype)


# ----------------------------------------------------------------------------
# Kernel 2: S-tiled (flash-style) cross-attention + both cls/reg branches
# ----------------------------------------------------------------------------

def _branches_kernel(o_ref, sin_ref, enc_ref, encpos_ref, mask_ref,
                     wq_ref, wqp_ref, wkv_ref, wkp_ref,
                     fc1w_ref, fc1b_ref, fc2w_ref, fc2b_ref,
                     n1g_ref, n1b_ref, n2g_ref, n2b_ref,
                     out_ref, q_scr, qpos_scr, m_scr, l_scr, acc_scr,
                     *, eps):
    si = pl.program_id(1)
    o = o_ref[0]                           # (N, 2C) bf16, resident across S tiles
    two_c = o.shape[-1]
    c = two_c // 2
    scale = 1.0 / math.sqrt(two_c)         # single-head cross-attn over 2C dims

    # Query projections depend only on the resident queries: do them once per
    # batch and keep bf16 results + f32 online-softmax state in VMEM scratch.
    @pl.when(si == 0)
    def _():
        q_scr[...] = _dot(o, wq_ref[...]).astype(q_scr.dtype)        # [q_cls | q_reg]
        qpos_scr[...] = _dot(sin_ref[0], wqp_ref[...]).astype(qpos_scr.dtype)
        m_scr[...] = jnp.full_like(m_scr, -1e30)
        l_scr[...] = jnp.zeros_like(l_scr)
        acc_scr[...] = jnp.zeros_like(acc_scr)

    # Per-S-tile K/V path: one fused (C,2C) projection of the encoder tile and
    # one positional score term, shared by BOTH branches.
    enc = enc_ref[0]                       # (TS, C) bf16
    neg = mask_ref[0] * 1e9                # (1, TS) key-padding penalty
    kv = _dot(enc, wkv_ref[...])           # (TS, 2C) = [k_enc | v_enc]
    k_enc = kv[:, :c].astype(_BF16)
    v2 = kv[:, c:].astype(_BF16)
    k_pe = _dot(encpos_ref[0], wkp_ref[...]).astype(_BF16)           # (TS, C)
    s_pos = _dot_nt(qpos_scr[...], k_pe)   # (N, TS)

    # Online softmax accumulation over S tiles, per branch (0 = cls, 1 = reg).
    for i in range(2):
        q_b = q_scr[:, i * c:(i + 1) * c]
        sc = (_dot_nt(q_b, k_enc) + s_pos) * scale - neg             # (N, TS)
        m_prev = m_scr[i]
        m_new = jnp.maximum(m_prev, jnp.max(sc, axis=-1, keepdims=True))
        alpha = jnp.exp(m_prev - m_new)
        p = jnp.exp(sc - m_new)
        l_scr[i] = alpha * l_scr[i] + jnp.sum(p, axis=-1, keepdims=True)
        acc_scr[i] = alpha * acc_scr[i] + _dot(p.astype(_BF16), v2)
        m_scr[i] = m_new

    # Epilogue on the last S tile: normalize + LN + MLP + LN per branch, then
    # one lane-dense (N, 2C) store.
    @pl.when(si == pl.num_programs(1) - 1)
    def _():
        of = o.astype(jnp.float32)
        outs = []
        for i in range(2):
            ca = acc_scr[i] * pl.reciprocal(l_scr[i], approx=True)
            x = _ln(of[:, i * c:(i + 1) * c] + ca, n1g_ref[i], n1b_ref[i], eps)
            hmid = jnp.maximum(_dot(x, fc1w_ref[i]) + fc1b_ref[i], 0.0)
            y = _dot(hmid, fc2w_ref[i]) + fc2b_ref[i]
            outs.append(_ln(x + y, n2g_ref[i], n2b_ref[i], eps))
        out_ref[0] = jnp.concatenate(outs, axis=-1).astype(out_ref.dtype)


# ----------------------------------------------------------------------------
# pallas_call wrappers
# ----------------------------------------------------------------------------

def _const_spec(arr):
    """Whole-array weight block, resident across every grid step."""
    zeros = (0,) * arr.ndim
    return pl.BlockSpec(arr.shape, lambda *_: zeros)


def _pick_s_tile(S):
    # Lane-aligned encoder tiles; full S when it is already small.
    for cand in (512, 256, 128):
        if S > cand and S % cand == 0:
            return cand
    return S


def self_attn_block(obj, pos, coords, coords_t, p, *, heads, lam, eps=1e-5):
    B, N, C2 = obj.shape
    C = C2 // 2
    ws = [p['w_sa_qkv'], p['w_sa_pos'],
          p['norm1_g'], p['norm1_b'], p['norm2_g'], p['norm2_b']]
    kernel = functools.partial(_self_attn_kernel, heads=heads, lam=lam, eps=eps)
    return pl.pallas_call(
        kernel,
        out_shape=jax.ShapeDtypeStruct((B, N, C2), _BF16),
        grid=(B,),
        in_specs=[
            pl.BlockSpec((1, N, C2), lambda b: (b, 0, 0)),
            pl.BlockSpec((1, N, C), lambda b: (b, 0, 0)),
            pl.BlockSpec((1, N, 2), lambda b: (b, 0, 0)),
            pl.BlockSpec((1, 2, N), lambda b: (b, 0, 0)),
        ] + [_const_spec(w) for w in ws],
        out_specs=pl.BlockSpec((1, N, C2), lambda b: (b, 0, 0)),
        scratch_shapes=[pltpu.VMEM((N, C2), jnp.float32),
                        pltpu.VMEM((N, C2), jnp.float32)],
        compiler_params=pltpu.CompilerParams(
            dimension_semantics=("parallel",),
            vmem_limit_bytes=_VMEM_LIMIT),
    )(obj, pos, coords, coords_t, *ws)


def branches_block(o, sin, enc, enc_pos, key_mask, p, *, eps=1e-5):
    B, N, C2 = o.shape
    C = C2 // 2
    S = enc.shape[1]
    ts = _pick_s_tile(S)
    ns = S // ts
    ws = [p['w_ca_q_obj'], p['w_ca_q_pos'], p['w_ca_kv'], p['w_ca_k_pos'],
          p['fc1_w'], p['fc1_b'], p['fc2_w'], p['fc2_b'],
          p['n1_g'], p['n1_b'], p['n2_g'], p['n2_b']]
    kernel = functools.partial(_branches_kernel, eps=eps)
    return pl.pallas_call(
        kernel,
        out_shape=jax.ShapeDtypeStruct((B, N, C2), jnp.float32),
        grid=(B, ns),
        in_specs=[
            pl.BlockSpec((1, N, C2), lambda b, s: (b, 0, 0)),
            pl.BlockSpec((1, N, C), lambda b, s: (b, 0, 0)),
            pl.BlockSpec((1, ts, C), lambda b, s: (b, s, 0)),
            pl.BlockSpec((1, ts, C), lambda b, s: (b, s, 0)),
            pl.BlockSpec((1, 1, ts), lambda b, s: (b, 0, s)),
        ] + [_const_spec(w) for w in ws],
        out_specs=pl.BlockSpec((1, N, C2), lambda b, s: (b, 0, 0)),
        scratch_shapes=[
            pltpu.VMEM((N, C2), _BF16),          # q_obj = [q_cls | q_reg]
            pltpu.VMEM((N, C), _BF16),           # q_pos
            pltpu.VMEM((2, N, 1), jnp.float32),  # running max (cls, reg)
            pltpu.VMEM((2, N, 1), jnp.float32),  # running denom
            pltpu.VMEM((2, N, C), jnp.float32),  # running numerator
        ],
        compiler_params=pltpu.CompilerParams(
            dimension_semantics=("parallel", "arbitrary"),
            vmem_limit_bytes=_VMEM_LIMIT),
    )(o, sin, enc, enc_pos, key_mask, *ws)


# ----------------------------------------------------------------------------
# Parameters + forward orchestration
# ----------------------------------------------------------------------------

def init_params(key, C, H):
    del H  # head count does not change parameter shapes
    ks = iter(jax.random.split(key, 16))

    def w(shape, scale=0.02):
        return scale * jax.random.normal(next(ks), shape, jnp.float32)

    bf = _BF16
    wq_pos, wk_pos = w((C, C)), w((C, C))
    p = {
        # fused self-attention projections
        'w_sa_qkv': jnp.concatenate(
            [w((2 * C, 2 * C)), w((2 * C, 2 * C)), w((2 * C, 2 * C))], axis=1).astype(bf),
        # [q_pos | q_pos | k_pos | k_pos]: duplication baked into the weight
        'w_sa_pos': jnp.concatenate([wq_pos, wq_pos, wk_pos, wk_pos], axis=1).astype(bf),
        'norm1_g': jnp.ones((1, 2 * C), jnp.float32),
        'norm1_b': jnp.zeros((1, 2 * C), jnp.float32),
        'norm2_g': jnp.ones((1, 2 * C), jnp.float32),
        'norm2_b': jnp.zeros((1, 2 * C), jnp.float32),
        # fused cross-attention projections
        'w_ca_q_obj': w((2 * C, 2 * C)).astype(bf),
        'w_ca_q_pos': w((C, C)).astype(bf),
        'w_ca_kv': jnp.concatenate([w((C, C)), w((C, C))], axis=1).astype(bf),
        'w_ca_k_pos': w((C, C)).astype(bf),
        # stacked cls/reg branch parameters (axis 0: 0 = cls, 1 = reg)
        'fc1_w': jnp.stack([w((C, 4 * C)), w((C, 4 * C))]).astype(bf),
        'fc1_b': jnp.zeros((2, 1, 4 * C), jnp.float32),
        'fc2_w': jnp.stack([w((4 * C, C)), w((4 * C, C))]).astype(bf),
        'fc2_b': jnp.zeros((2, 1, C), jnp.float32),
        'n1_g': jnp.ones((2, 1, C), jnp.float32),
        'n1_b': jnp.zeros((2, 1, C), jnp.float32),
        'n2_g': jnp.ones((2, 1, C), jnp.float32),
        'n2_b': jnp.zeros((2, 1, C), jnp.float32),
    }
    return p


def decoder_block_forward(p, obj_selected, enc_output, obj_coords, obj_pos_embed,
                          obj_sin_embed, enc_pos_embed, enc_key_mask,
                          *, heads, lam=0.5):
    B, N, _ = obj_selected.shape
    S = enc_output.shape[1]

    # bf16 activations into the kernels (halves per-step HBM DMA bytes);
    # LayerNorm/softmax statistics and residuals stay f32 inside the kernels.
    obj = obj_selected.astype(_BF16)
    pos = obj_pos_embed.astype(_BF16)
    sin = obj_sin_embed.astype(_BF16)
    enc = enc_output.astype(_BF16)
    encp = enc_pos_embed.astype(_BF16)
    coords = obj_coords.astype(jnp.float32)
    coords_t = jnp.swapaxes(coords, 1, 2)                    # (B, 2, N)
    # key_padding_mask: 1.0 = padded key position -> additive -1e9 penalty
    key_mask = enc_key_mask.astype(jnp.float32).reshape(B, 1, S)

    o = self_attn_block(obj, pos, coords, coords_t, p, heads=heads, lam=lam)
    return branches_block(o, sin, enc, encp, key_mask, p)


# ----------------------------------------------------------------------------
# Driver
# ----------------------------------------------------------------------------

if __name__ == "__main__":
    C = 32        # hidden_dim (scaled down from 256)
    H = 4         # heads_num (scaled down from 8)
    B, N, S = 2, 8, 256   # S chosen so the flash S-loop runs 2 tiles of 128
    LAM = 0.5

    key = jax.random.PRNGKey(0)
    k_par, k_in = jax.random.split(key)
    params = init_params(k_par, C, H)

    ks = jax.random.split(k_in, 7)
    obj_selected = jax.random.normal(ks[0], (B, N, 2 * C), jnp.float32)
    enc_output = jax.random.normal(ks[1], (B, S, C), jnp.float32)
    obj_coords = jax.random.uniform(ks[2], (B, N, 2), jnp.float32)
    obj_pos_embed = jax.random.normal(ks[3], (B, N, C), jnp.float32)
    obj_sin_embed = jax.random.normal(ks[4], (B, N, C), jnp.float32)
    enc_pos_embed = jax.random.normal(ks[5], (B, S, C), jnp.float32)
    # key_padding_mask: True = padded key position (ignored in attention)
    enc_key_mask = jax.random.uniform(ks[6], (B, S)) > 0.8

    fwd = jax.jit(functools.partial(decoder_block_forward, heads=H, lam=LAM))
    out = fwd(params, obj_selected, enc_output, obj_coords, obj_pos_embed,
              obj_sin_embed, enc_pos_embed, enc_key_mask)
    out = jax.block_until_ready(out)

    assert out.shape == (B, N, 2 * C), out.shape
    assert bool(jnp.all(jnp.isfinite(out)))
    print("KERNEL_OK")
</pallas_src>

<mosaic_0001>
module attributes {stable_mosaic.version = 11 : i64} {
  func.func @_self_attn_kernel(%arg0: i32, %arg1: memref<1x8x64xbf16, #tpu.memory_space<vmem>>, %arg2: memref<1x8x32xbf16, #tpu.memory_space<vmem>>, %arg3: memref<1x8x2xf32, #tpu.memory_space<vmem>>, %arg4: memref<1x2x8xf32, #tpu.memory_space<vmem>>, %arg5: memref<64x192xbf16, #tpu.memory_space<vmem>>, %arg6: memref<32x128xbf16, #tpu.memory_space<vmem>>, %arg7: memref<1x64xf32, #tpu.memory_space<vmem>>, %arg8: memref<1x64xf32, #tpu.memory_space<vmem>>, %arg9: memref<1x64xf32, #tpu.memory_space<vmem>>, %arg10: memref<1x64xf32, #tpu.memory_space<vmem>>, %arg11: memref<1x8x64xbf16, #tpu.memory_space<vmem>>, %arg12: memref<8x64xf32, #tpu.memory_space<vmem>>, %arg13: memref<8x64xf32, #tpu.memory_space<vmem>>) attributes {dimension_semantics = [#tpu.dimension_semantics<parallel>], iteration_bounds = array<i64: 2>, scalar_prefetch = 0 : i64, scratch_operands = 2 : i64, tpu.core_type = #tpu.core_type<tc>, window_params = [{transform_indices = @transform_0, window_bounds = array<i64: 1, 8, 64>}, {transform_indices = @transform_1, window_bounds = array<i64: 1, 8, 32>}, {transform_indices = @transform_2, window_bounds = array<i64: 1, 8, 2>}, {transform_indices = @transform_3, window_bounds = array<i64: 1, 2, 8>}, {pipeline_mode = #tpu.pipeline_mode<synchronous>, transform_indices = @transform_4, window_bounds = array<i64: 64, 192>}, {pipeline_mode = #tpu.pipeline_mode<synchronous>, transform_indices = @transform_5, window_bounds = array<i64: 32, 128>}, {pipeline_mode = #tpu.pipeline_mode<synchronous>, transform_indices = @transform_6, window_bounds = array<i64: 1, 64>}, {pipeline_mode = #tpu.pipeline_mode<synchronous>, transform_indices = @transform_7, window_bounds = array<i64: 1, 64>}, {pipeline_mode = #tpu.pipeline_mode<synchronous>, transform_indices = @transform_8, window_bounds = array<i64: 1, 64>}, {pipeline_mode = #tpu.pipeline_mode<synchronous>, transform_indices = @transform_9, window_bounds = array<i64: 1, 64>}, {transform_indices = @transform_10, window_bounds = array<i64: 1, 8, 64>}]} {
    %c0 = arith.constant 0 : index
    %c0_0 = arith.constant 0 : index
    %c0_1 = arith.constant 0 : index
    %0 = vector.load %arg1[%c0, %c0_0, %c0_1] : memref<1x8x64xbf16, #tpu.memory_space<vmem>>, vector<1x8x64xbf16>
    %1 = vector.shape_cast %0 : vector<1x8x64xbf16> to vector<8x64xbf16>
    %c0_2 = arith.constant 0 : index
    %c0_3 = arith.constant 0 : index
    %c0_4 = arith.constant 0 : index
    %2 = vector.load %arg2[%c0_2, %c0_3, %c0_4] : memref<1x8x32xbf16, #tpu.memory_space<vmem>>, vector<1x8x32xbf16>
    %3 = vector.shape_cast %2 : vector<1x8x32xbf16> to vector<8x32xbf16>
    %c0_5 = arith.constant 0 : index
    %c0_6 = arith.constant 0 : index
    %c0_7 = arith.constant 0 : index
    %4 = vector.load %arg3[%c0_5, %c0_6, %c0_7] : memref<1x8x2xf32, #tpu.memory_space<vmem>>, vector<1x8x2xf32>
    %5 = vector.shape_cast %4 : vector<1x8x2xf32> to vector<8x2xf32>
    %c0_8 = arith.constant 0 : index
    %c0_9 = arith.constant 0 : index
    %c0_10 = arith.constant 0 : index
    %6 = vector.load %arg4[%c0_8, %c0_9, %c0_10] : memref<1x2x8xf32, #tpu.memory_space<vmem>>, vector<1x2x8xf32>
    %7 = vector.shape_cast %6 : vector<1x2x8xf32> to vector<2x8xf32>
    %8 = vector.extract_strided_slice %5 {offsets = [0, 0], sizes = [8, 1], strides = [1, 1]} : vector<8x2xf32> to vector<8x1xf32>
    %9 = vector.extract_strided_slice %7 {offsets = [0, 0], sizes = [1, 8], strides = [1, 1]} : vector<2x8xf32> to vector<1x8xf32>
    %10 = vector.broadcast %8 : vector<8x1xf32> to vector<8x8xf32>
    %11 = vector.broadcast %9 : vector<1x8xf32> to vector<8x8xf32>
    %12 = arith.subf %10, %11 : vector<8x8xf32>
    %13 = vector.extract_strided_slice %5 {offsets = [0, 1], sizes = [8, 1], strides = [1, 1]} : vector<8x2xf32> to vector<8x1xf32>
    %14 = vector.extract_strided_slice %7 {offsets = [1, 0], sizes = [1, 8], strides = [1, 1]} : vector<2x8xf32> to vector<1x8xf32>
    %15 = vector.broadcast %13 : vector<8x1xf32> to vector<8x8xf32>
    %16 = vector.broadcast %14 : vector<1x8xf32> to vector<8x8xf32>
    %17 = arith.subf %15, %16 : vector<8x8xf32>
    %18 = arith.mulf %12, %12 : vector<8x8xf32>
    %19 = arith.mulf %17, %17 : vector<8x8xf32>
    %20 = arith.addf %18, %19 : vector<8x8xf32>
    %cst = arith.constant 0.000000e+00 : f32
    %21 = vector.broadcast %cst : f32 to vector<8x8xf32>
    %22 = arith.subf %21, %20 : vector<8x8xf32>
    %23 = math.exp %22 : vector<8x8xf32>
    %c0_11 = arith.constant 0 : index
    %c0_12 = arith.constant 0 : index
    %24 = vector.load %arg5[%c0_11, %c0_12] : memref<64x192xbf16, #tpu.memory_space<vmem>>, vector<64x192xbf16>
    %cst_13 = arith.constant dense<0.000000e+00> : vector<8x192xf32>
    %25 = tpu.matmul %1, %24, %cst_13 {dimension_numbers = #tpu.dot_dimension_numbers<[1], [0], [0], [1], [0, 0, 1, 1], [], []>} : vector<8x64xbf16>, vector<64x192xbf16>, vector<8x192xf32> -> vector<8x192xf32>
    %c0_14 = arith.constant 0 : index
    %c0_15 = arith.constant 0 : index
    %26 = vector.load %arg6[%c0_14, %c0_15] : memref<32x128xbf16, #tpu.memory_space<vmem>>, vector<32x128xbf16>
    %cst_16 = arith.constant dense<0.000000e+00> : vector<8x128xf32>
    %27 = tpu.matmul %3, %26, %cst_16 {dimension_numbers = #tpu.dot_dimension_numbers<[1], [0], [0], [1], [0, 0, 1, 1], [], []>} : vector<8x32xbf16>, vector<32x128xbf16>, vector<8x128xf32> -> vector<8x128xf32>
    %28 = vector.extract_strided_slice %25 {offsets = [0, 0], sizes = [8, 64], strides = [1, 1]} : vector<8x192xf32> to vector<8x64xf32>
    %29 = vector.extract_strided_slice %27 {offsets = [0, 0], sizes = [8, 64], strides = [1, 1]} : vector<8x128xf32> to vector<8x64xf32>
    %30 = arith.addf %28, %29 : vector<8x64xf32>
    %31 = arith.truncf %30 : vector<8x64xf32> to vector<8x64xbf16>
    %32 = vector.extract_strided_slice %25 {offsets = [0, 64], sizes = [8, 64], strides = [1, 1]} : vector<8x192xf32> to vector<8x64xf32>
    %33 = vector.extract_strided_slice %27 {offsets = [0, 64], sizes = [8, 64], strides = [1, 1]} : vector<8x128xf32> to vector<8x64xf32>
    %34 = arith.addf %32, %33 : vector<8x64xf32>
    %35 = arith.truncf %34 : vector<8x64xf32> to vector<8x64xbf16>
    %36 = vector.extract_strided_slice %25 {offsets = [0, 128], sizes = [8, 64], strides = [1, 1]} : vector<8x192xf32> to vector<8x64xf32>
    %37 = arith.truncf %36 : vector<8x64xf32> to vector<8x64xbf16>
    %38 = vector.extract_strided_slice %31 {offsets = [0, 0], sizes = [8, 16], strides = [1, 1]} : vector<8x64xbf16> to vector<8x16xbf16>
    %39 = vector.extract_strided_slice %35 {offsets = [0, 0], sizes = [8, 16], strides = [1, 1]} : vector<8x64xbf16> to vector<8x16xbf16>
    %cst_17 = arith.constant dense<0.000000e+00> : vector<8x8xf32>
    %40 = tpu.matmul %38, %39, %cst_17 {dimension_numbers = #tpu.dot_dimension_numbers<[1], [1], [0], [0], [0, 0, 1, 0], [], []>} : vector<8x16xbf16>, vector<8x16xbf16>, vector<8x8xf32> -> vector<8x8xf32>
    %cst_18 = arith.constant 2.500000e-01 : f32
    %41 = vector.broadcast %cst_18 : f32 to vector<8x8xf32>
    %42 = arith.mulf %40, %41 : vector<8x8xf32>
    %cst_19 = arith.constant dense<0xFF800000> : vector<8xf32>
    %43 = vector.multi_reduction <maximumf>, %42, %cst_19 [1] : vector<8x8xf32> to vector<8xf32>
    %44 = vector.shape_cast %43 : vector<8xf32> to vector<8x1xf32>
    %45 = vector.broadcast %44 : vector<8x1xf32> to vector<8x8xf32>
    %46 = arith.subf %42, %45 : vector<8x8xf32>
    %47 = math.exp %46 : vector<8x8xf32>
    %48 = arith.mulf %47, %23 : vector<8x8xf32>
    %cst_20 = arith.constant dense<0.000000e+00> : vector<8xf32>
    %49 = vector.multi_reduction <add>, %47, %cst_20 [1] : vector<8x8xf32> to vector<8xf32>
    %50 = vector.shape_cast %49 : vector<8xf32> to vector<8x1xf32>
    %51 = tpu.reciprocal %50 {approx = true} : vector<8x1xf32> -> vector<8x1xf32>
    %52 = vector.broadcast %51 : vector<8x1xf32> to vector<8x8xf32>
    %53 = arith.mulf %47, %52 : vector<8x8xf32>
    %cst_21 = arith.constant dense<0.000000e+00> : vector<8xf32>
    %54 = vector.multi_reduction <add>, %48, %cst_21 [1] : vector<8x8xf32> to vector<8xf32>
    %55 = vector.shape_cast %54 : vector<8xf32> to vector<8x1xf32>
    %56 = tpu.reciprocal %55 {approx = true} : vector<8x1xf32> -> vector<8x1xf32>
    %57 = vector.broadcast %56 : vector<8x1xf32> to vector<8x8xf32>
    %58 = arith.mulf %48, %57 : vector<8x8xf32>
    %59 = tpu.concatenate %53, %58 in 0 : vector<8x8xf32>, vector<8x8xf32> -> vector<16x8xf32>
    %60 = vector.extract_strided_slice %37 {offsets = [0, 0], sizes = [8, 16], strides = [1, 1]} : vector<8x64xbf16> to vector<8x16xbf16>
    %61 = arith.truncf %59 : vector<16x8xf32> to vector<16x8xbf16>
    %cst_22 = arith.constant dense<0.000000e+00> : vector<16x16xf32>
    %62 = tpu.matmul %61, %60, %cst_22 {dimension_numbers = #tpu.dot_dimension_numbers<[1], [0], [0], [1], [0, 0, 1, 1], [], []>} : vector<16x8xbf16>, vector<8x16xbf16>, vector<16x16xf32> -> vector<16x16xf32>
    %63 = vector.extract_strided_slice %62 {offsets = [0, 0], sizes = [8, 16], strides = [1, 1]} : vector<16x16xf32> to vector<8x16xf32>
    %c0_23 = arith.constant 0 : index
    %c0_24 = arith.constant 0 : index
    %64 = vector.load %arg12[%c0_23, %c0_24] : memref<8x64xf32, #tpu.memory_space<vmem>>, vector<8x16xf32>
    tpu.vector_store %arg12[%c0_23, %c0_24], %63 {strides = array<i32>} : memref<8x64xf32, #tpu.memory_space<vmem>>, vector<8x16xf32>,
    %65 = vector.extract_strided_slice %62 {offsets = [8, 0], sizes = [8, 16], strides = [1, 1]} : vector<16x16xf32> to vector<8x16xf32>
    %c0_25 = arith.constant 0 : index
    %c0_26 = arith.constant 0 : index
    %66 = vector.load %arg13[%c0_25, %c0_26] : memref<8x64xf32, #tpu.memory_space<vmem>>, vector<8x16xf32>
    tpu.vector_store %arg13[%c0_25, %c0_26], %65 {strides = array<i32>} : memref<8x64xf32, #tpu.memory_space<vmem>>, vector<8x16xf32>,
    %67 = vector.extract_strided_slice %31 {offsets = [0, 16], sizes = [8, 16], strides = [1, 1]} : vector<8x64xbf16> to vector<8x16xbf16>
    %68 = vector.extract_strided_slice %35 {offsets = [0, 16], sizes = [8, 16], strides = [1, 1]} : vector<8x64xbf16> to vector<8x16xbf16>
    %cst_27 = arith.constant dense<0.000000e+00> : vector<8x8xf32>
    %69 = tpu.matmul %67, %68, %cst_27 {dimension_numbers = #tpu.dot_dimension_numbers<[1], [1], [0], [0], [0, 0, 1, 0], [], []>} : vector<8x16xbf16>, vector<8x16xbf16>, vector<8x8xf32> -> vector<8x8xf32>
    %cst_28 = arith.constant 2.500000e-01 : f32
    %70 = vector.broadcast %cst_28 : f32 to vector<8x8xf32>
    %71 = arith.mulf %69, %70 : vector<8x8xf32>
    %cst_29 = arith.constant dense<0xFF800000> : vector<8xf32>
    %72 = vector.multi_reduction <maximumf>, %71, %cst_29 [1] : vector<8x8xf32> to vector<8xf32>
    %73 = vector.shape_cast %72 : vector<8xf32> to vector<8x1xf32>
    %74 = vector.broadcast %73 : vector<8x1xf32> to vector<8x8xf32>
    %75 = arith.subf %71, %74 : vector<8x8xf32>
    %76 = math.exp %75 : vector<8x8xf32>
    %77 = arith.mulf %76, %23 : vector<8x8xf32>
    %cst_30 = arith.constant dense<0.000000e+00> : vector<8xf32>
    %78 = vector.multi_reduction <add>, %76, %cst_30 [1] : vector<8x8xf32> to vector<8xf32>
    %79 = vector.shape_cast %78 : vector<8xf32> to vector<8x1xf32>
    %80 = tpu.reciprocal %79 {approx = true} : vector<8x1xf32> -> vector<8x1xf32>
    %81 = vector.broadcast %80 : vector<8x1xf32> to vector<8x8xf32>
    %82 = arith.mulf %76, %81 : vector<8x8xf32>
    %cst_31 = arith.constant dense<0.000000e+00> : vector<8xf32>
    %83 = vector.multi_reduction <add>, %77, %cst_31 [1] : vector<8x8xf32> to vector<8xf32>
    %84 = vector.shape_cast %83 : vector<8xf32> to vector<8x1xf32>
    %85 = tpu.reciprocal %84 {approx = true} : vector<8x1xf32> -> vector<8x1xf32>
    %86 = vector.broadcast %85 : vector<8x1xf32> to vector<8x8xf32>
    %87 = arith.mulf %77, %86 : vector<8x8xf32>
    %88 = tpu.concatenate %82, %87 in 0 : vector<8x8xf32>, vector<8x8xf32> -> vector<16x8xf32>
    %89 = vector.extract_strided_slice %37 {offsets = [0, 16], sizes = [8, 16], strides = [1, 1]} : vector<8x64xbf16> to vector<8x16xbf16>
    %90 = arith.truncf %88 : vector<16x8xf32> to vector<16x8xbf16>
    %cst_32 = arith.constant dense<0.000000e+00> : vector<16x16xf32>
    %91 = tpu.matmul %90, %89, %cst_32 {dimension_numbers = #tpu.dot_dimension_numbers<[1], [0], [0], [1], [0, 0, 1, 1], [], []>} : vector<16x8xbf16>, vector<8x16xbf16>, vector<16x16xf32> -> vector<16x16xf32>
    %92 = vector.extract_strided_slice %91 {offsets = [0, 0], sizes = [8, 16], strides = [1, 1]} : vector<16x16xf32> to vector<8x16xf32>
    %c0_33 = arith.constant 0 : index
    %c16 = arith.constant 16 : index
    %93 = vector.load %arg12[%c0_33, %c16] : memref<8x64xf32, #tpu.memory_space<vmem>>, vector<8x16xf32>
    tpu.vector_store %arg12[%c0_33, %c16], %92 {strides = array<i32>} : memref<8x64xf32, #tpu.memory_space<vmem>>, vector<8x16xf32>,
    %94 = vector.extract_strided_slice %91 {offsets = [8, 0], sizes = [8, 16], strides = [1, 1]} : vector<16x16xf32> to vector<8x16xf32>
    %c0_34 = arith.constant 0 : index
    %c16_35 = arith.constant 16 : index
    %95 = vector.load %arg13[%c0_34, %c16_35] : memref<8x64xf32, #tpu.memory_space<vmem>>, vector<8x16xf32>
    tpu.vector_store %arg13[%c0_34, %c16_35], %94 {strides = array<i32>} : memref<8x64xf32, #tpu.memory_space<vmem>>, vector<8x16xf32>,
    %96 = vector.extract_strided_slice %31 {offsets = [0, 32], sizes = [8, 16], strides = [1, 1]} : vector<8x64xbf16> to vector<8x16xbf16>
    %97 = vector.extract_strided_slice %35 {offsets = [0, 32], sizes = [8, 16], strides = [1, 1]} : vector<8x64xbf16> to vector<8x16xbf16>
    %cst_36 = arith.constant dense<0.000000e+00> : vector<8x8xf32>
    %98 = tpu.matmul %96, %97, %cst_36 {dimension_numbers = #tpu.dot_dimension_numbers<[1], [1], [0], [0], [0, 0, 1, 0], [], []>} : vector<8x16xbf16>, vector<8x16xbf16>, vector<8x8xf32> -> vector<8x8xf32>
    %cst_37 = arith.constant 2.500000e-01 : f32
    %99 = vector.broadcast %cst_37 : f32 to vector<8x8xf32>
    %100 = arith.mulf %98, %99 : vector<8x8xf32>
    %cst_38 = arith.constant dense<0xFF800000> : vector<8xf32>
    %101 = vector.multi_reduction <maximumf>, %100, %cst_38 [1] : vector<8x8xf32> to vector<8xf32>
    %102 = vector.shape_cast %101 : vector<8xf32> to vector<8x1xf32>
    %103 = vector.broadcast %102 : vector<8x1xf32> to vector<8x8xf32>
    %104 = arith.subf %100, %103 : vector<8x8xf32>
    %105 = math.exp %104 : vector<8x8xf32>
    %106 = arith.mulf %105, %23 : vector<8x8xf32>
    %cst_39 = arith.constant dense<0.000000e+00> : vector<8xf32>
    %107 = vector.multi_reduction <add>, %105, %cst_39 [1] : vector<8x8xf32> to vector<8xf32>
    %108 = vector.shape_cast %107 : vector<8xf32> to vector<8x1xf32>
    %109 = tpu.reciprocal %108 {approx = true} : vector<8x1xf32> -> vector<8x1xf32>
    %110 = vector.broadcast %109 : vector<8x1xf32> to vector<8x8xf32>
    %111 = arith.mulf %105, %110 : vector<8x8xf32>
    %cst_40 = arith.constant dense<0.000000e+00> : vector<8xf32>
    %112 = vector.multi_reduction <add>, %106, %cst_40 [1] : vector<8x8xf32> to vector<8xf32>
    %113 = vector.shape_cast %112 : vector<8xf32> to vector<8x1xf32>
    %114 = tpu.reciprocal %113 {approx = true} : vector<8x1xf32> -> vector<8x1xf32>
    %115 = vector.broadcast %114 : vector<8x1xf32> to vector<8x8xf32>
    %116 = arith.mulf %106, %115 : vector<8x8xf32>
    %117 = tpu.concatenate %111, %116 in 0 : vector<8x8xf32>, vector<8x8xf32> -> vector<16x8xf32>
    %118 = vector.extract_strided_slice %37 {offsets = [0, 32], sizes = [8, 16], strides = [1, 1]} : vector<8x64xbf16> to vector<8x16xbf16>
    %119 = arith.truncf %117 : vector<16x8xf32> to vector<16x8xbf16>
    %cst_41 = arith.constant dense<0.000000e+00> : vector<16x16xf32>
    %120 = tpu.matmul %119, %118, %cst_41 {dimension_numbers = #tpu.dot_dimension_numbers<[1], [0], [0], [1], [0, 0, 1, 1], [], []>} : vector<16x8xbf16>, vector<8x16xbf16>, vector<16x16xf32> -> vector<16x16xf32>
    %121 = vector.extract_strided_slice %120 {offsets = [0, 0], sizes = [8, 16], strides = [1, 1]} : vector<16x16xf32> to vector<8x16xf32>
    %c0_42 = arith.constant 0 : index
    %c32 = arith.constant 32 : index
    %122 = vector.load %arg12[%c0_42, %c32] : memref<8x64xf32, #tpu.memory_space<vmem>>, vector<8x16xf32>
    tpu.vector_store %arg12[%c0_42, %c32], %121 {strides = array<i32>} : memref<8x64xf32, #tpu.memory_space<vmem>>, vector<8x16xf32>,
    %123 = vector.extract_strided_slice %120 {offsets = [8, 0], sizes = [8, 16], strides = [1, 1]} : vector<16x16xf32> to vector<8x16xf32>
    %c0_43 = arith.constant 0 : index
    %c32_44 = arith.constant 32 : index
    %124 = vector.load %arg13[%c0_43, %c32_44] : memref<8x64xf32, #tpu.memory_space<vmem>>, vector<8x16xf32>
    tpu.vector_store %arg13[%c0_43, %c32_44], %123 {strides = array<i32>} : memref<8x64xf32, #tpu.memory_space<vmem>>, vector<8x16xf32>,
    %125 = vector.extract_strided_slice %31 {offsets = [0, 48], sizes = [8, 16], strides = [1, 1]} : vector<8x64xbf16> to vector<8x16xbf16>
    %126 = vector.extract_strided_slice %35 {offsets = [0, 48], sizes = [8, 16], strides = [1, 1]} : vector<8x64xbf16> to vector<8x16xbf16>
    %cst_45 = arith.constant dense<0.000000e+00> : vector<8x8xf32>
    %127 = tpu.matmul %125, %126, %cst_45 {dimension_numbers = #tpu.dot_dimension_numbers<[1], [1], [0], [0], [0, 0, 1, 0], [], []>} : vector<8x16xbf16>, vector<8x16xbf16>, vector<8x8xf32> -> vector<8x8xf32>
    %cst_46 = arith.constant 2.500000e-01 : f32
    %128 = vector.broadcast %cst_46 : f32 to vector<8x8xf32>
    %129 = arith.mulf %127, %128 : vector<8x8xf32>
    %cst_47 = arith.constant dense<0xFF800000> : vector<8xf32>
    %130 = vector.multi_reduction <maximumf>, %129, %cst_47 [1] : vector<8x8xf32> to vector<8xf32>
    %131 = vector.shape_cast %130 : vector<8xf32> to vector<8x1xf32>
    %132 = vector.broadcast %131 : vector<8x1xf32> to vector<8x8xf32>
    %133 = arith.subf %129, %132 : vector<8x8xf32>
    %134 = math.exp %133 : vector<8x8xf32>
    %135 = arith.mulf %134, %23 : vector<8x8xf32>
    %cst_48 = arith.constant dense<0.000000e+00> : vector<8xf32>
    %136 = vector.multi_reduction <add>, %134, %cst_48 [1] : vector<8x8xf32> to vector<8xf32>
    %137 = vector.shape_cast %136 : vector<8xf32> to vector<8x1xf32>
    %138 = tpu.reciprocal %137 {approx = true} : vector<8x1xf32> -> vector<8x1xf32>
    %139 = vector.broadcast %138 : vector<8x1xf32> to vector<8x8xf32>
    %140 = arith.mulf %134, %139 : vector<8x8xf32>
    %cst_49 = arith.constant dense<0.000000e+00> : vector<8xf32>
    %141 = vector.multi_reduction <add>, %135, %cst_49 [1] : vector<8x8xf32> to vector<8xf32>
    %142 = vector.shape_cast %141 : vector<8xf32> to vector<8x1xf32>
    %143 = tpu.reciprocal %142 {approx = true} : vector<8x1xf32> -> vector<8x1xf32>
    %144 = vector.broadcast %143 : vector<8x1xf32> to vector<8x8xf32>
    %145 = arith.mulf %135, %144 : vector<8x8xf32>
    %146 = tpu.concatenate %140, %145 in 0 : vector<8x8xf32>, vector<8x8xf32> -> vector<16x8xf32>
    %147 = vector.extract_strided_slice %37 {offsets = [0, 48], sizes = [8, 16], strides = [1, 1]} : vector<8x64xbf16> to vector<8x16xbf16>
    %148 = arith.truncf %146 : vector<16x8xf32> to vector<16x8xbf16>
    %cst_50 = arith.constant dense<0.000000e+00> : vector<16x16xf32>
    %149 = tpu.matmul %148, %147, %cst_50 {dimension_numbers = #tpu.dot_dimension_numbers<[1], [0], [0], [1], [0, 0, 1, 1], [], []>} : vector<16x8xbf16>, vector<8x16xbf16>, vector<16x16xf32> -> vector<16x16xf32>
    %150 = vector.extract_strided_slice %149 {offsets = [0, 0], sizes = [8, 16], strides = [1, 1]} : vector<16x16xf32> to vector<8x16xf32>
    %c0_51 = arith.constant 0 : index
    %c48 = arith.constant 48 : index
    %151 = vector.load %arg12[%c0_51, %c48] : memref<8x64xf32, #tpu.memory_space<vmem>>, vector<8x16xf32>
    tpu.vector_store %arg12[%c0_51, %c48], %150 {strides = array<i32>} : memref<8x64xf32, #tpu.memory_space<vmem>>, vector<8x16xf32>,
    %152 = vector.extract_strided_slice %149 {offsets = [8, 0], sizes = [8, 16], strides = [1, 1]} : vector<16x16xf32> to vector<8x16xf32>
    %c0_52 = arith.constant 0 : index
    %c48_53 = arith.constant 48 : index
    %153 = vector.load %arg13[%c0_52, %c48_53] : memref<8x64xf32, #tpu.memory_space<vmem>>, vector<8x16xf32>
    tpu.vector_store %arg13[%c0_52, %c48_53], %152 {strides = array<i32>} : memref<8x64xf32, #tpu.memory_space<vmem>>, vector<8x16xf32>,
    %154 = arith.extf %1 : vector<8x64xbf16> to vector<8x64xf32>
    %c0_54 = arith.constant 0 : index
    %c0_55 = arith.constant 0 : index
    %155 = vector.load %arg12[%c0_54, %c0_55] : memref<8x64xf32, #tpu.memory_space<vmem>>, vector<8x64xf32>
    %156 = arith.addf %154, %155 : vector<8x64xf32>
    %c0_56 = arith.constant 0 : index
    %c0_57 = arith.constant 0 : index
    %157 = vector.load %arg7[%c0_56, %c0_57] : memref<1x64xf32, #tpu.memory_space<vmem>>, vector<1x64xf32>
    %c0_58 = arith.constant 0 : index
    %c0_59 = arith.constant 0 : index
    %158 = vector.load %arg8[%c0_58, %c0_59] : memref<1x64xf32, #tpu.memory_space<vmem>>, vector<1x64xf32>
    %cst_60 = arith.constant dense<0.000000e+00> : vector<8xf32>
    %159 = vector.multi_reduction <add>, %156, %cst_60 [1] : vector<8x64xf32> to vector<8xf32>
    %160 = vector.shape_cast %159 : vector<8xf32> to vector<8x1xf32>
    %cst_61 = arith.constant 6.400000e+01 : f32
    %161 = vector.broadcast %cst_61 : f32 to vector<8x1xf32>
    %162 = arith.divf %160, %161 : vector<8x1xf32>
    %163 = vector.broadcast %162 : vector<8x1xf32> to vector<8x64xf32>
    %164 = arith.subf %156, %163 : vector<8x64xf32>
    %165 = arith.mulf %164, %164 : vector<8x64xf32>
    %cst_62 = arith.constant dense<0.000000e+00> : vector<8xf32>
    %166 = vector.multi_reduction <add>, %165, %cst_62 [1] : vector<8x64xf32> to vector<8xf32>
    %167 = vector.shape_cast %166 : vector<8xf32> to vector<8x1xf32>
    %cst_63 = arith.constant 6.400000e+01 : f32
    %168 = vector.broadcast %cst_63 : f32 to vector<8x1xf32>
    %169 = arith.divf %167, %168 : vector<8x1xf32>
    %170 = vector.broadcast %162 : vector<8x1xf32> to vector<8x64xf32>
    %171 = arith.subf %156, %170 : vector<8x64xf32>
    %cst_64 = arith.constant 9.99999974E-6 : f32
    %172 = vector.broadcast %cst_64 : f32 to vector<8x1xf32>
    %173 = arith.addf %169, %172 : vector<8x1xf32>
    %174 = math.rsqrt %173 : vector<8x1xf32>
    %175 = vector.broadcast %174 : vector<8x1xf32> to vector<8x64xf32>
    %176 = arith.mulf %171, %175 : vector<8x64xf32>
    %177 = vector.broadcast %157 : vector<1x64xf32> to vector<8x64xf32>
    %178 = arith.mulf %176, %177 : vector<8x64xf32>
    %179 = vector.broadcast %158 : vector<1x64xf32> to vector<8x64xf32>
    %180 = arith.addf %178, %179 : vector<8x64xf32>
    %cst_65 = arith.constant 5.000000e-01 : f32
    %181 = vector.broadcast %cst_65 : f32 to vector<8x64xf32>
    %182 = arith.mulf %181, %180 : vector<8x64xf32>
    %c0_66 = arith.constant 0 : index
    %c0_67 = arith.constant 0 : index
    %183 = vector.load %arg13[%c0_66, %c0_67] : memref<8x64xf32, #tpu.memory_space<vmem>>, vector<8x64xf32>
    %184 = arith.addf %154, %183 : vector<8x64xf32>
    %c0_68 = arith.constant 0 : index
    %c0_69 = arith.constant 0 : index
    %185 = vector.load %arg9[%c0_68, %c0_69] : memref<1x64xf32, #tpu.memory_space<vmem>>, vector<1x64xf32>
    %c0_70 = arith.constant 0 : index
    %c0_71 = arith.constant 0 : index
    %186 = vector.load %arg10[%c0_70, %c0_71] : memref<1x64xf32, #tpu.memory_space<vmem>>, vector<1x64xf32>
    %cst_72 = arith.constant dense<0.000000e+00> : vector<8xf32>
    %187 = vector.multi_reduction <add>, %184, %cst_72 [1] : vector<8x64xf32> to vector<8xf32>
    %188 = vector.shape_cast %187 : vector<8xf32> to vector<8x1xf32>
    %cst_73 = arith.constant 6.400000e+01 : f32
    %189 = vector.broadcast %cst_73 : f32 to vector<8x1xf32>
    %190 = arith.divf %188, %189 : vector<8x1xf32>
    %191 = vector.broadcast %190 : vector<8x1xf32> to vector<8x64xf32>
    %192 = arith.subf %184, %191 : vector<8x64xf32>
    %193 = arith.mulf %192, %192 : vector<8x64xf32>
    %cst_74 = arith.constant dense<0.000000e+00> : vector<8xf32>
    %194 = vector.multi_reduction <add>, %193, %cst_74 [1] : vector<8x64xf32> to vector<8xf32>
    %195 = vector.shape_cast %194 : vector<8xf32> to vector<8x1xf32>
    %cst_75 = arith.constant 6.400000e+01 : f32
    %196 = vector.broadcast %cst_75 : f32 to vector<8x1xf32>
    %197 = arith.divf %195, %196 : vector<8x1xf32>
    %198 = vector.broadcast %190 : vector<8x1xf32> to vector<8x64xf32>
    %199 = arith.subf %184, %198 : vector<8x64xf32>
    %cst_76 = arith.constant 9.99999974E-6 : f32
    %200 = vector.broadcast %cst_76 : f32 to vector<8x1xf32>
    %201 = arith.addf %197, %200 : vector<8x1xf32>
    %202 = math.rsqrt %201 : vector<8x1xf32>
    %203 = vector.broadcast %202 : vector<8x1xf32> to vector<8x64xf32>
    %204 = arith.mulf %199, %203 : vector<8x64xf32>
    %205 = vector.broadcast %185 : vector<1x64xf32> to vector<8x64xf32>
    %206 = arith.mulf %204, %205 : vector<8x64xf32>
    %207 = vector.broadcast %186 : vector<1x64xf32> to vector<8x64xf32>
    %208 = arith.addf %206, %207 : vector<8x64xf32>
    %cst_77 = arith.constant 5.000000e-01 : f32
    %209 = vector.broadcast %cst_77 : f32 to vector<8x64xf32>
    %210 = arith.mulf %209, %208 : vector<8x64xf32>
    %211 = arith.addf %182, %210 : vector<8x64xf32>
    %212 = arith.truncf %211 : vector<8x64xf32> to vector<8x64xbf16>
    %c0_78 = arith.constant 0 : index
    %c0_79 = arith.constant 0 : index
    %c0_80 = arith.constant 0 : index
    %213 = vector.load %arg11[%c0_78, %c0_79, %c0_80] : memref<1x8x64xbf16, #tpu.memory_space<vmem>>, vector<1x8x64xbf16>
    %214 = vector.shape_cast %213 : vector<1x8x64xbf16> to vector<8x64xbf16>
    %215 = vector.shape_cast %212 : vector<8x64xbf16> to vector<1x8x64xbf16>
    tpu.vector_store %arg11[%c0_78, %c0_79, %c0_80], %215 {strides = array<i32>} : memref<1x8x64xbf16, #tpu.memory_space<vmem>>, vector<1x8x64xbf16>,
    return
  }
  func.func @transform_0(%arg0: i32) -> (i32, i32, i32) {
    %c0_i32 = arith.constant 0 : i32
    %c0_i32_0 = arith.constant 0 : i32
    %c0_i32_1 = arith.constant 0 : i32
    return %arg0, %c0_i32, %c0_i32_0 : i32, i32, i32
  }
  func.func @transform_1(%arg0: i32) -> (i32, i32, i32) {
    %c0_i32 = arith.constant 0 : i32
    %c0_i32_0 = arith.constant 0 : i32
    %c0_i32_1 = arith.constant 0 : i32
    return %arg0, %c0_i32, %c0_i32_0 : i32, i32, i32
  }
  func.func @transform_2(%arg0: i32) -> (i32, i32, i32) {
    %c0_i32 = arith.constant 0 : i32
    %c0_i32_0 = arith.constant 0 : i32
    %c0_i32_1 = arith.constant 0 : i32
    return %arg0, %c0_i32, %c0_i32_0 : i32, i32, i32
  }
  func.func @transform_3(%arg0: i32) -> (i32, i32, i32) {
    %c0_i32 = arith.constant 0 : i32
    %c0_i32_0 = arith.constant 0 : i32
    %c0_i32_1 = arith.constant 0 : i32
    return %arg0, %c0_i32, %c0_i32_0 : i32, i32, i32
  }
  func.func @transform_4(%arg0: i32) -> (i32, i32) {
    %c0_i32 = arith.constant 0 : i32
    %c0_i32_0 = arith.constant 0 : i32
    %c0_i32_1 = arith.constant 0 : i32
    return %c0_i32, %c0_i32_0 : i32, i32
  }
  func.func @transform_5(%arg0: i32) -> (i32, i32) {
    %c0_i32 = arith.constant 0 : i32
    %c0_i32_0 = arith.constant 0 : i32
    %c0_i32_1 = arith.constant 0 : i32
    return %c0_i32, %c0_i32_0 : i32, i32
  }
  func.func @transform_6(%arg0: i32) -> (i32, i32) {
    %c0_i32 = arith.constant 0 : i32
    %c0_i32_0 = arith.constant 0 : i32
    %c0_i32_1 = arith.constant 0 : i32
    return %c0_i32, %c0_i32_0 : i32, i32
  }
  func.func @transform_7(%arg0: i32) -> (i32, i32) {
    %c0_i32 = arith.constant 0 : i32
    %c0_i32_0 = arith.constant 0 : i32
    %c0_i32_1 = arith.constant 0 : i32
    return %c0_i32, %c0_i32_0 : i32, i32
  }
  func.func @transform_8(%arg0: i32) -> (i32, i32) {
    %c0_i32 = arith.constant 0 : i32
    %c0_i32_0 = arith.constant 0 : i32
    %c0_i32_1 = arith.constant 0 : i32
    return %c0_i32, %c0_i32_0 : i32, i32
  }
  func.func @transform_9(%arg0: i32) -> (i32, i32) {
    %c0_i32 = arith.constant 0 : i32
    %c0_i32_0 = arith.constant 0 : i32
    %c0_i32_1 = arith.constant 0 : i32
    return %c0_i32, %c0_i32_0 : i32, i32
  }
  func.func @transform_10(%arg0: i32) -> (i32, i32, i32) {
    %c0_i32 = arith.constant 0 : i32
    %c0_i32_0 = arith.constant 0 : i32
    %c0_i32_1 = arith.constant 0 : i32
    return %arg0, %c0_i32, %c0_i32_0 : i32, i32, i32
  }
}

module attributes {stable_mosaic.version = 11 : i64} {
  func.func @_branches_kernel(%arg0: i32, %arg1: i32, %arg2: memref<1x8x64xbf16, #tpu.memory_space<vmem>>, %arg3: memref<1x8x32xbf16, #tpu.memory_space<vmem>>, %arg4: memref<1x128x32xbf16, #tpu.memory_space<vmem>>, %arg5: memref<1x128x32xbf16, #tpu.memory_space<vmem>>, %arg6: memref<1x1x128xf32, #tpu.memory_space<vmem>>, %arg7: memref<64x64xbf16, #tpu.memory_space<vmem>>, %arg8: memref<32x32xbf16, #tpu.memory_space<vmem>>, %arg9: memref<32x64xbf16, #tpu.memory_space<vmem>>, %arg10: memref<32x32xbf16, #tpu.memory_space<vmem>>, %arg11: memref<2x32x128xbf16, #tpu.memory_space<vmem>>, %arg12: memref<2x1x128xf32, #tpu.memory_space<vmem>>, %arg13: memref<2x128x32xbf16, #tpu.memory_space<vmem>>, %arg14: memref<2x1x32xf32, #tpu.memory_space<vmem>>, %arg15: memref<2x1x32xf32, #tpu.memory_space<vmem>>, %arg16: memref<2x1x32xf32, #tpu.memory_space<vmem>>, %arg17: memref<2x1x32xf32, #tpu.memory_space<vmem>>, %arg18: memref<2x1x32xf32, #tpu.memory_space<vmem>>, %arg19: memref<1x8x64xf32, #tpu.memory_space<vmem>>, %arg20: memref<8x64xbf16, #tpu.memory_space<vmem>>, %arg21: memref<8x32xbf16, #tpu.memory_space<vmem>>, %arg22: memref<2x8x1xf32, #tpu.memory_space<vmem>>, %arg23: memref<2x8x1xf32, #tpu.memory_space<vmem>>, %arg24: memref<2x8x32xf32, #tpu.memory_space<vmem>>) attributes {dimension_semantics = [#tpu.dimension_semantics<parallel>, #tpu.dimension_semantics<arbitrary>], iteration_bounds = array<i64: 2, 2>, scalar_prefetch = 0 : i64, scratch_operands = 5 : i64, tpu.core_type = #tpu.core_type<tc>, window_params = [{transform_indices = @transform_0, window_bounds = array<i64: 1, 8, 64>}, {transform_indices = @transform_1, window_bounds = array<i64: 1, 8, 32>}, {transform_indices = @transform_2, window_bounds = array<i64: 1, 128, 32>}, {transform_indices = @transform_3, window_bounds = array<i64: 1, 128, 32>}, {transform_indices = @transform_4, window_bounds = array<i64: 1, 1, 128>}, {pipeline_mode = #tpu.pipeline_mode<synchronous>, transform_indices = @transform_5, window_bounds = array<i64: 64, 64>}, {pipeline_mode = #tpu.pipeline_mode<synchronous>, transform_indices = @transform_6, window_bounds = array<i64: 32, 32>}, {pipeline_mode = #tpu.pipeline_mode<synchronous>, transform_indices = @transform_7, window_bounds = array<i64: 32, 64>}, {pipeline_mode = #tpu.pipeline_mode<synchronous>, transform_indices = @transform_8, window_bounds = array<i64: 32, 32>}, {pipeline_mode = #tpu.pipeline_mode<synchronous>, transform_indices = @transform_9, window_bounds = array<i64: 2, 32, 128>}, {pipeline_mode = #tpu.pipeline_mode<synchronous>, transform_indices = @transform_10, window_bounds = array<i64: 2, 1, 128>}, {pipeline_mode = #tpu.pipeline_mode<synchronous>, transform_indices = @transform_11, window_bounds = array<i64: 2, 128, 32>}, {pipeline_mode = #tpu.pipeline_mode<synchronous>, transform_indices = @transform_12, window_bounds = array<i64: 2, 1, 32>}, {pipeline_mode = #tpu.pipeline_mode<synchronous>, transform_indices = @transform_13, window_bounds = array<i64: 2, 1, 32>}, {pipeline_mode = #tpu.pipeline_mode<synchronous>, transform_indices = @transform_14, window_bounds = array<i64: 2, 1, 32>}, {pipeline_mode = #tpu.pipeline_mode<synchronous>, transform_indices = @transform_15, window_bounds = array<i64: 2, 1, 32>}, {pipeline_mode = #tpu.pipeline_mode<synchronous>, transform_indices = @transform_16, window_bounds = array<i64: 2, 1, 32>}, {transform_indices = @transform_17, window_bounds = array<i64: 1, 8, 64>}]} {
    %c0 = arith.constant 0 : index
    %c0_0 = arith.constant 0 : index
    %c0_1 = arith.constant 0 : index
    %0 = vector.load %arg2[%c0, %c0_0, %c0_1] : memref<1x8x64xbf16, #tpu.memory_space<vmem>>, vector<1x8x64xbf16>
    %1 = vector.shape_cast %0 : vector<1x8x64xbf16> to vector<8x64xbf16>
    %c0_i32 = arith.constant 0 : i32
    %2 = arith.cmpi eq, %arg1, %c0_i32 : i32
    %3 = arith.extui %2 : i1 to i32
    %c0_i32_2 = arith.constant 0 : i32
    %4 = arith.cmpi ne, %3, %c0_i32_2 : i32
    scf.if %4 {
      %c0_70 = arith.constant 0 : index
      %c0_71 = arith.constant 0 : index
      %105 = vector.load %arg7[%c0_70, %c0_71] : memref<64x64xbf16, #tpu.memory_space<vmem>>, vector<64x64xbf16>
      %cst_72 = arith.constant dense<0.000000e+00> : vector<8x64xf32>
      %106 = tpu.matmul %1, %105, %cst_72 {dimension_numbers = #tpu.dot_dimension_numbers<[1], [0], [0], [1], [0, 0, 1, 1], [], []>} : vector<8x64xbf16>, vector<64x64xbf16>, vector<8x64xf32> -> vector<8x64xf32>
      %107 = arith.truncf %106 : vector<8x64xf32> to vector<8x64xbf16>
      %c0_73 = arith.constant 0 : index
      %c0_74 = arith.constant 0 : index
      %108 = vector.load %arg20[%c0_73, %c0_74] : memref<8x64xbf16, #tpu.memory_space<vmem>>, vector<8x64xbf16>
      tpu.vector_store %arg20[%c0_73, %c0_74], %107 {strides = array<i32>} : memref<8x64xbf16, #tpu.memory_space<vmem>>, vector<8x64xbf16>,
      %c0_75 = arith.constant 0 : index
      %c0_76 = arith.constant 0 : index
      %c0_77 = arith.constant 0 : index
      %109 = vector.load %arg3[%c0_75, %c0_76, %c0_77] : memref<1x8x32xbf16, #tpu.memory_space<vmem>>, vector<1x8x32xbf16>
      %110 = vector.shape_cast %109 : vector<1x8x32xbf16> to vector<8x32xbf16>
      %c0_78 = arith.constant 0 : index
      %c0_79 = arith.constant 0 : index
      %111 = vector.load %arg8[%c0_78, %c0_79] : memref<32x32xbf16, #tpu.memory_space<vmem>>, vector<32x32xbf16>
      %cst_80 = arith.constant dense<0.000000e+00> : vector<8x32xf32>
      %112 = tpu.matmul %110, %111, %cst_80 {dimension_numbers = #tpu.dot_dimension_numbers<[1], [0], [0], [1], [0, 0, 1, 1], [], []>} : vector<8x32xbf16>, vector<32x32xbf16>, vector<8x32xf32> -> vector<8x32xf32>
      %113 = arith.truncf %112 : vector<8x32xf32> to vector<8x32xbf16>
      %c0_81 = arith.constant 0 : index
      %c0_82 = arith.constant 0 : index
      %114 = vector.load %arg21[%c0_81, %c0_82] : memref<8x32xbf16, #tpu.memory_space<vmem>>, vector<8x32xbf16>
      tpu.vector_store %arg21[%c0_81, %c0_82], %113 {strides = array<i32>} : memref<8x32xbf16, #tpu.memory_space<vmem>>, vector<8x32xbf16>,
      %cst_83 = arith.constant -1.000000e+30 : f32
      %115 = vector.broadcast %cst_83 : f32 to vector<2x8x1xf32>
      %c0_84 = arith.constant 0 : index
      %c0_85 = arith.constant 0 : index
      %c0_86 = arith.constant 0 : index
      %116 = vector.load %arg22[%c0_84, %c0_85, %c0_86] : memref<2x8x1xf32, #tpu.memory_space<vmem>>, vector<2x8x1xf32>
      tpu.vector_store %arg22[%c0_84, %c0_85, %c0_86], %115 {strides = array<i32>} : memref<2x8x1xf32, #tpu.memory_space<vmem>>, vector<2x8x1xf32>,
      %cst_87 = arith.constant 0.000000e+00 : f32
      %117 = vector.broadcast %cst_87 : f32 to vector<2x8x1xf32>
      %c0_88 = arith.constant 0 : index
      %c0_89 = arith.constant 0 : index
      %c0_90 = arith.constant 0 : index
      %118 = vector.load %arg23[%c0_88, %c0_89, %c0_90] : memref<2x8x1xf32, #tpu.memory_space<vmem>>, vector<2x8x1xf32>
      tpu.vector_store %arg23[%c0_88, %c0_89, %c0_90], %117 {strides = array<i32>} : memref<2x8x1xf32, #tpu.memory_space<vmem>>, vector<2x8x1xf32>,
      %cst_91 = arith.constant 0.000000e+00 : f32
      %119 = vector.broadcast %cst_91 : f32 to vector<2x8x32xf32>
      %c0_92 = arith.constant 0 : index
      %c0_93 = arith.constant 0 : index
      %c0_94 = arith.constant 0 : index
      %120 = vector.load %arg24[%c0_92, %c0_93, %c0_94] : memref<2x8x32xf32, #tpu.memory_space<vmem>>, vector<2x8x32xf32>
      tpu.vector_store %arg24[%c0_92, %c0_93, %c0_94], %119 {strides = array<i32>} : memref<2x8x32xf32, #tpu.memory_space<vmem>>, vector<2x8x32xf32>,
    } else {
    }
    %c0_3 = arith.constant 0 : index
    %c0_4 = arith.constant 0 : index
    %c0_5 = arith.constant 0 : index
    %5 = vector.load %arg4[%c0_3, %c0_4, %c0_5] : memref<1x128x32xbf16, #tpu.memory_space<vmem>>, vector<1x128x32xbf16>
    %6 = vector.shape_cast %5 : vector<1x128x32xbf16> to vector<128x32xbf16>
    %c0_6 = arith.constant 0 : index
    %c0_7 = arith.constant 0 : index
    %c0_8 = arith.constant 0 : index
    %7 = vector.load %arg6[%c0_6, %c0_7, %c0_8] : memref<1x1x128xf32, #tpu.memory_space<vmem>>, vector<1x1x128xf32>
    %8 = vector.shape_cast %7 : vector<1x1x128xf32> to vector<1x128xf32>
    %cst = arith.constant 1.000000e+09 : f32
    %9 = vector.broadcast %cst : f32 to vector<1x128xf32>
    %10 = arith.mulf %8, %9 : vector<1x128xf32>
    %c0_9 = arith.constant 0 : index
    %c0_10 = arith.constant 0 : index
    %11 = vector.load %arg9[%c0_9, %c0_10] : memref<32x64xbf16, #tpu.memory_space<vmem>>, vector<32x64xbf16>
    %cst_11 = arith.constant dense<0.000000e+00> : vector<128x64xf32>
    %12 = tpu.matmul %6, %11, %cst_11 {dimension_numbers = #tpu.dot_dimension_numbers<[1], [0], [0], [1], [0, 0, 1, 1], [], []>} : vector<128x32xbf16>, vector<32x64xbf16>, vector<128x64xf32> -> vector<128x64xf32>
    %13 = vector.extract_strided_slice %12 {offsets = [0, 0], sizes = [128, 32], strides = [1, 1]} : vector<128x64xf32> to vector<128x32xf32>
    %14 = arith.truncf %13 : vector<128x32xf32> to vector<128x32xbf16>
    %15 = vector.extract_strided_slice %12 {offsets = [0, 32], sizes = [128, 32], strides = [1, 1]} : vector<128x64xf32> to vector<128x32xf32>
    %16 = arith.truncf %15 : vector<128x32xf32> to vector<128x32xbf16>
    %c0_12 = arith.constant 0 : index
    %c0_13 = arith.constant 0 : index
    %c0_14 = arith.constant 0 : index
    %17 = vector.load %arg5[%c0_12, %c0_13, %c0_14] : memref<1x128x32xbf16, #tpu.memory_space<vmem>>, vector<1x128x32xbf16>
    %18 = vector.shape_cast %17 : vector<1x128x32xbf16> to vector<128x32xbf16>
    %c0_15 = arith.constant 0 : index
    %c0_16 = arith.constant 0 : index
    %19 = vector.load %arg10[%c0_15, %c0_16] : memref<32x32xbf16, #tpu.memory_space<vmem>>, vector<32x32xbf16>
    %cst_17 = arith.constant dense<0.000000e+00> : vector<128x32xf32>
    %20 = tpu.matmul %18, %19, %cst_17 {dimension_numbers = #tpu.dot_dimension_numbers<[1], [0], [0], [1], [0, 0, 1, 1], [], []>} : vector<128x32xbf16>, vector<32x32xbf16>, vector<128x32xf32> -> vector<128x32xf32>
    %21 = arith.truncf %20 : vector<128x32xf32> to vector<128x32xbf16>
    %c0_18 = arith.constant 0 : index
    %c0_19 = arith.constant 0 : index
    %22 = vector.load %arg21[%c0_18, %c0_19] : memref<8x32xbf16, #tpu.memory_space<vmem>>, vector<8x32xbf16>
    %cst_20 = arith.constant dense<0.000000e+00> : vector<8x128xf32>
    %23 = tpu.matmul %22, %21, %cst_20 {dimension_numbers = #tpu.dot_dimension_numbers<[1], [1], [0], [0], [0, 0, 1, 0], [], []>} : vector<8x32xbf16>, vector<128x32xbf16>, vector<8x128xf32> -> vector<8x128xf32>
    %c0_21 = arith.constant 0 : index
    %c0_22 = arith.constant 0 : index
    %24 = vector.load %arg20[%c0_21, %c0_22] : memref<8x64xbf16, #tpu.memory_space<vmem>>, vector<8x32xbf16>
    %cst_23 = arith.constant dense<0.000000e+00> : vector<8x128xf32>
    %25 = tpu.matmul %24, %14, %cst_23 {dimension_numbers = #tpu.dot_dimension_numbers<[1], [1], [0], [0], [0, 0, 1, 0], [], []>} : vector<8x32xbf16>, vector<128x32xbf16>, vector<8x128xf32> -> vector<8x128xf32>
    %26 = arith.addf %25, %23 : vector<8x128xf32>
    %cst_24 = arith.constant 1.250000e-01 : f32
    %27 = vector.broadcast %cst_24 : f32 to vector<8x128xf32>
    %28 = arith.mulf %26, %27 : vector<8x128xf32>
    %29 = vector.broadcast %10 : vector<1x128xf32> to vector<8x128xf32>
    %30 = arith.subf %28, %29 : vector<8x128xf32>
    %c0_25 = arith.constant 0 : index
    %c0_26 = arith.constant 0 : index
    %c0_27 = arith.constant 0 : index
    %31 = vector.load %arg22[%c0_25, %c0_26, %c0_27] : memref<2x8x1xf32, #tpu.memory_space<vmem>>, vector<1x8x1xf32>
    %32 = vector.shape_cast %31 : vector<1x8x1xf32> to vector<8x1xf32>
    %cst_28 = arith.constant dense<0xFF800000> : vector<8xf32>
    %33 = vector.multi_reduction <maximumf>, %30, %cst_28 [1] : vector<8x128xf32> to vector<8xf32>
    %34 = vector.shape_cast %33 : vector<8xf32> to vector<8x1xf32>
    %35 = arith.maximumf %32, %34 : vector<8x1xf32>
    %36 = arith.subf %32, %35 : vector<8x1xf32>
    %37 = math.exp %36 : vector<8x1xf32>
    %38 = vector.broadcast %35 : vector<8x1xf32> to vector<8x128xf32>
    %39 = arith.subf %30, %38 : vector<8x128xf32>
    %40 = math.exp %39 : vector<8x128xf32>
    %c0_29 = arith.constant 0 : index
    %c0_30 = arith.constant 0 : index
    %c0_31 = arith.constant 0 : index
    %41 = vector.load %arg23[%c0_29, %c0_30, %c0_31] : memref<2x8x1xf32, #tpu.memory_space<vmem>>, vector<1x8x1xf32>
    %42 = vector.shape_cast %41 : vector<1x8x1xf32> to vector<8x1xf32>
    %43 = arith.mulf %37, %42 : vector<8x1xf32>
    %cst_32 = arith.constant dense<0.000000e+00> : vector<8xf32>
    %44 = vector.multi_reduction <add>, %40, %cst_32 [1] : vector<8x128xf32> to vector<8xf32>
    %45 = vector.shape_cast %44 : vector<8xf32> to vector<8x1xf32>
    %46 = arith.addf %43, %45 : vector<8x1xf32>
    %c0_33 = arith.constant 0 : index
    %c0_34 = arith.constant 0 : index
    %c0_35 = arith.constant 0 : index
    %47 = vector.load %arg23[%c0_33, %c0_34, %c0_35] : memref<2x8x1xf32, #tpu.memory_space<vmem>>, vector<1x8x1xf32>
    %48 = vector.shape_cast %47 : vector<1x8x1xf32> to vector<8x1xf32>
    %49 = vector.shape_cast %46 : vector<8x1xf32> to vector<1x8x1xf32>
    tpu.vector_store %arg23[%c0_33, %c0_34, %c0_35], %49 {strides = array<i32>} : memref<2x8x1xf32, #tpu.memory_space<vmem>>, vector<1x8x1xf32>,
    %c0_36 = arith.constant 0 : index
    %c0_37 = arith.constant 0 : index
    %c0_38 = arith.constant 0 : index
    %50 = vector.load %arg24[%c0_36, %c0_37, %c0_38] : memref<2x8x32xf32, #tpu.memory_space<vmem>>, vector<1x8x32xf32>
    %51 = vector.shape_cast %50 : vector<1x8x32xf32> to vector<8x32xf32>
    %52 = vector.broadcast %37 : vector<8x1xf32> to vector<8x32xf32>
    %53 = arith.mulf %52, %51 : vector<8x32xf32>
    %54 = arith.truncf %40 : vector<8x128xf32> to vector<8x128xbf16>
    %cst_39 = arith.constant dense<0.000000e+00> : vector<8x32xf32>
    %55 = tpu.matmul %54, %16, %cst_39 {dimension_numbers = #tpu.dot_dimension_numbers<[1], [0], [0], [1], [0, 0, 1, 1], [], []>} : vector<8x128xbf16>, vector<128x32xbf16>, vector<8x32xf32> -> vector<8x32xf32>
    %56 = arith.addf %53, %55 : vector<8x32xf32>
    %c0_40 = arith.constant 0 : index
    %c0_41 = arith.constant 0 : index
    %c0_42 = arith.constant 0 : index
    %57 = vector.load %arg24[%c0_40, %c0_41, %c0_42] : memref<2x8x32xf32, #tpu.memory_space<vmem>>, vector<1x8x32xf32>
    %58 = vector.shape_cast %57 : vector<1x8x32xf32> to vector<8x32xf32>
    %59 = vector.shape_cast %56 : vector<8x32xf32> to vector<1x8x32xf32>
    tpu.vector_store %arg24[%c0_40, %c0_41, %c0_42], %59 {strides = array<i32>} : memref<2x8x32xf32, #tpu.memory_space<vmem>>, vector<1x8x32xf32>,
    %c0_43 = arith.constant 0 : index
    %c0_44 = arith.constant 0 : index
    %c0_45 = arith.constant 0 : index
    %60 = vector.load %arg22[%c0_43, %c0_44, %c0_45] : memref<2x8x1xf32, #tpu.memory_space<vmem>>, vector<1x8x1xf32>
    %61 = vector.shape_cast %60 : vector<1x8x1xf32> to vector<8x1xf32>
    %62 = vector.shape_cast %35 : vector<8x1xf32> to vector<1x8x1xf32>
    tpu.vector_store %arg22[%c0_43, %c0_44, %c0_45], %62 {strides = array<i32>} : memref<2x8x1xf32, #tpu.memory_space<vmem>>, vector<1x8x1xf32>,
    %c0_46 = arith.constant 0 : index
    %c32 = arith.constant 32 : index
    %63 = vector.load %arg20[%c0_46, %c32] : memref<8x64xbf16, #tpu.memory_space<vmem>>, vector<8x32xbf16>
    %cst_47 = arith.constant dense<0.000000e+00> : vector<8x128xf32>
    %64 = tpu.matmul %63, %14, %cst_47 {dimension_numbers = #tpu.dot_dimension_numbers<[1], [1], [0], [0], [0, 0, 1, 0], [], []>} : vector<8x32xbf16>, vector<128x32xbf16>, vector<8x128xf32> -> vector<8x128xf32>
    %65 = arith.addf %64, %23 : vector<8x128xf32>
    %cst_48 = arith.constant 1.250000e-01 : f32
    %66 = vector.broadcast %cst_48 : f32 to vector<8x128xf32>
    %67 = arith.mulf %65, %66 : vector<8x128xf32>
    %68 = vector.broadcast %10 : vector<1x128xf32> to vector<8x128xf32>
    %69 = arith.subf %67, %68 : vector<8x128xf32>
    %c1 = arith.constant 1 : index
    %c0_49 = arith.constant 0 : index
    %c0_50 = arith.constant 0 : index
    %70 = vector.load %arg22[%c1, %c0_49, %c0_50] : memref<2x8x1xf32, #tpu.memory_space<vmem>>, vector<1x8x1xf32>
    %71 = vector.shape_cast %70 : vector<1x8x1xf32> to vector<8x1xf32>
    %cst_51 = arith.constant dense<0xFF800000> : vector<8xf32>
    %72 = vector.multi_reduction <maximumf>, %69, %cst_51 [1] : vector<8x128xf32> to vector<8xf32>
    %73 = vector.shape_cast %72 : vector<8xf32> to vector<8x1xf32>
    %74 = arith.maximumf %71, %73 : vector<8x1xf32>
    %75 = arith.subf %71, %74 : vector<8x1xf32>
    %76 = math.exp %75 : vector<8x1xf32>
    %77 = vector.broadcast %74 : vector<8x1xf32> to vector<8x128xf32>
    %78 = arith.subf %69, %77 : vector<8x128xf32>
    %79 = math.exp %78 : vector<8x128xf32>
    %c1_52 = arith.constant 1 : index
    %c0_53 = arith.constant 0 : index
    %c0_54 = arith.constant 0 : index
    %80 = vector.load %arg23[%c1_52, %c0_53, %c0_54] : memref<2x8x1xf32, #tpu.memory_space<vmem>>, vector<1x8x1xf32>
    %81 = vector.shape_cast %80 : vector<1x8x1xf32> to vector<8x1xf32>
    %82 = arith.mulf %76, %81 : vector<8x1xf32>
    %cst_55 = arith.constant dense<0.000000e+00> : vector<8xf32>
    %83 = vector.multi_reduction <add>, %79, %cst_55 [1] : vector<8x128xf32> to vector<8xf32>
    %84 = vector.shape_cast %83 : vector<8xf32> to vector<8x1xf32>
    %85 = arith.addf %82, %84 : vector<8x1xf32>
    %c1_56 = arith.constant 1 : index
    %c0_57 = arith.constant 0 : index
    %c0_58 = arith.constant 0 : index
    %86 = vector.load %arg23[%c1_56, %c0_57, %c0_58] : memref<2x8x1xf32, #tpu.memory_space<vmem>>, vector<1x8x1xf32>
    %87 = vector.shape_cast %86 : vector<1x8x1xf32> to vector<8x1xf32>
    %88 = vector.shape_cast %85 : vector<8x1xf32> to vector<1x8x1xf32>
    tpu.vector_store %arg23[%c1_56, %c0_57, %c0_58], %88 {strides = array<i32>} : memref<2x8x1xf32, #tpu.memory_space<vmem>>, vector<1x8x1xf32>,
    %c1_59 = arith.constant 1 : index
    %c0_60 = arith.constant 0 : index
    %c0_61 = arith.constant 0 : index
    %89 = vector.load %arg24[%c1_59, %c0_60, %c0_61] : memref<2x8x32xf32, #tpu.memory_space<vmem>>, vector<1x8x32xf32>
    %90 = vector.shape_cast %89 : vector<1x8x32xf32> to vector<8x32xf32>
    %91 = vector.broadcast %76 : vector<8x1xf32> to vector<8x32xf32>
    %92 = arith.mulf %91, %90 : vector<8x32xf32>
    %93 = arith.truncf %79 : vector<8x128xf32> to vector<8x128xbf16>
    %cst_62 = arith.constant dense<0.000000e+00> : vector<8x32xf32>
    %94 = tpu.matmul %93, %16, %cst_62 {dimension_numbers = #tpu.dot_dimension_numbers<[1], [0], [0], [1], [0, 0, 1, 1], [], []>} : vector<8x128xbf16>, vector<128x32xbf16>, vector<8x32xf32> -> vector<8x32xf32>
    %95 = arith.addf %92, %94 : vector<8x32xf32>
    %c1_63 = arith.constant 1 : index
    %c0_64 = arith.constant 0 : index
    %c0_65 = arith.constant 0 : index
    %96 = vector.load %arg24[%c1_63, %c0_64, %c0_65] : memref<2x8x32xf32, #tpu.memory_space<vmem>>, vector<1x8x32xf32>
    %97 = vector.shape_cast %96 : vector<1x8x32xf32> to vector<8x32xf32>
    %98 = vector.shape_cast %95 : vector<8x32xf32> to vector<1x8x32xf32>
    tpu.vector_store %arg24[%c1_63, %c0_64, %c0_65], %98 {strides = array<i32>} : memref<2x8x32xf32, #tpu.memory_space<vmem>>, vector<1x8x32xf32>,
    %c1_66 = arith.constant 1 : index
    %c0_67 = arith.constant 0 : index
    %c0_68 = arith.constant 0 : index
    %99 = vector.load %arg22[%c1_66, %c0_67, %c0_68] : memref<2x8x1xf32, #tpu.memory_space<vmem>>, vector<1x8x1xf32>
    %100 = vector.shape_cast %99 : vector<1x8x1xf32> to vector<8x1xf32>
    %101 = vector.shape_cast %74 : vector<8x1xf32> to vector<1x8x1xf32>
    tpu.vector_store %arg22[%c1_66, %c0_67, %c0_68], %101 {strides = array<i32>} : memref<2x8x1xf32, #tpu.memory_space<vmem>>, vector<1x8x1xf32>,
    %c1_i32 = arith.constant 1 : i32
    %102 = arith.cmpi eq, %arg1, %c1_i32 : i32
    %103 = arith.extui %102 : i1 to i32
    %c0_i32_69 = arith.constant 0 : i32
    %104 = arith.cmpi ne, %103, %c0_i32_69 : i32
    scf.if %104 {
      %105 = arith.extf %1 : vector<8x64xbf16> to vector<8x64xf32>
      %c0_70 = arith.constant 0 : index
      %c0_71 = arith.constant 0 : index
      %c0_72 = arith.constant 0 : index
      %106 = vector.load %arg24[%c0_70, %c0_71, %c0_72] : memref<2x8x32xf32, #tpu.memory_space<vmem>>, vector<1x8x32xf32>
      %107 = vector.shape_cast %106 : vector<1x8x32xf32> to vector<8x32xf32>
      %c0_73 = arith.constant 0 : index
      %c0_74 = arith.constant 0 : index
      %c0_75 = arith.constant 0 : index
      %108 = vector.load %arg23[%c0_73, %c0_74, %c0_75] : memref<2x8x1xf32, #tpu.memory_space<vmem>>, vector<1x8x1xf32>
      %109 = vector.shape_cast %108 : vector<1x8x1xf32> to vector<8x1xf32>
      %110 = tpu.reciprocal %109 {approx = true} : vector<8x1xf32> -> vector<8x1xf32>
      %111 = vector.broadcast %110 : vector<8x1xf32> to vector<8x32xf32>
      %112 = arith.mulf %107, %111 : vector<8x32xf32>
      %113 = vector.extract_strided_slice %105 {offsets = [0, 0], sizes = [8, 32], strides = [1, 1]} : vector<8x64xf32> to vector<8x32xf32>
      %114 = arith.addf %113, %112 : vector<8x32xf32>
      %c0_76 = arith.constant 0 : index
      %c0_77 = arith.constant 0 : index
      %c0_78 = arith.constant 0 : index
      %115 = vector.load %arg15[%c0_76, %c0_77, %c0_78] : memref<2x1x32xf32, #tpu.memory_space<vmem>>, vector<1x1x32xf32>
      %116 = vector.shape_cast %115 : vector<1x1x32xf32> to vector<1x32xf32>
      %c0_79 = arith.constant 0 : index
      %c0_80 = arith.constant 0 : index
      %c0_81 = arith.constant 0 : index
      %117 = vector.load %arg16[%c0_79, %c0_80, %c0_81] : memref<2x1x32xf32, #tpu.memory_space<vmem>>, vector<1x1x32xf32>
      %118 = vector.shape_cast %117 : vector<1x1x32xf32> to vector<1x32xf32>
      %cst_82 = arith.constant dense<0.000000e+00> : vector<8xf32>
      %119 = vector.multi_reduction <add>, %114, %cst_82 [1] : vector<8x32xf32> to vector<8xf32>
      %120 = vector.shape_cast %119 : vector<8xf32> to vector<8x1xf32>
      %cst_83 = arith.constant 3.200000e+01 : f32
      %121 = vector.broadcast %cst_83 : f32 to vector<8x1xf32>
      %122 = arith.divf %120, %121 : vector<8x1xf32>
      %123 = vector.broadcast %122 : vector<8x1xf32> to vector<8x32xf32>
      %124 = arith.subf %114, %123 : vector<8x32xf32>
      %125 = arith.mulf %124, %124 : vector<8x32xf32>
      %cst_84 = arith.constant dense<0.000000e+00> : vector<8xf32>
      %126 = vector.multi_reduction <add>, %125, %cst_84 [1] : vector<8x32xf32> to vector<8xf32>
      %127 = vector.shape_cast %126 : vector<8xf32> to vector<8x1xf32>
      %cst_85 = arith.constant 3.200000e+01 : f32
      %128 = vector.broadcast %cst_85 : f32 to vector<8x1xf32>
      %129 = arith.divf %127, %128 : vector<8x1xf32>
      %130 = vector.broadcast %122 : vector<8x1xf32> to vector<8x32xf32>
      %131 = arith.subf %114, %130 : vector<8x32xf32>
      %cst_86 = arith.constant 9.99999974E-6 : f32
      %132 = vector.broadcast %cst_86 : f32 to vector<8x1xf32>
      %133 = arith.addf %129, %132 : vector<8x1xf32>
      %134 = math.rsqrt %133 : vector<8x1xf32>
      %135 = vector.broadcast %134 : vector<8x1xf32> to vector<8x32xf32>
      %136 = arith.mulf %131, %135 : vector<8x32xf32>
      %137 = vector.broadcast %116 : vector<1x32xf32> to vector<8x32xf32>
      %138 = arith.mulf %136, %137 : vector<8x32xf32>
      %139 = vector.broadcast %118 : vector<1x32xf32> to vector<8x32xf32>
      %140 = arith.addf %138, %139 : vector<8x32xf32>
      %c0_87 = arith.constant 0 : index
      %c0_88 = arith.constant 0 : index
      %c0_89 = arith.constant 0 : index
      %141 = vector.load %arg11[%c0_87, %c0_88, %c0_89] : memref<2x32x128xbf16, #tpu.memory_space<vmem>>, vector<1x32x128xbf16>
      %142 = vector.shape_cast %141 : vector<1x32x128xbf16> to vector<32x128xbf16>
      %143 = arith.truncf %140 : vector<8x32xf32> to vector<8x32xbf16>
      %cst_90 = arith.constant dense<0.000000e+00> : vector<8x128xf32>
      %144 = tpu.matmul %143, %142, %cst_90 {dimension_numbers = #tpu.dot_dimension_numbers<[1], [0], [0], [1], [0, 0, 1, 1], [], []>} : vector<8x32xbf16>, vector<32x128xbf16>, vector<8x128xf32> -> vector<8x128xf32>
      %c0_91 = arith.constant 0 : index
      %c0_92 = arith.constant 0 : index
      %c0_93 = arith.constant 0 : index
      %145 = vector.load %arg12[%c0_91, %c0_92, %c0_93] : memref<2x1x128xf32, #tpu.memory_space<vmem>>, vector<1x1x128xf32>
      %146 = vector.shape_cast %145 : vector<1x1x128xf32> to vector<1x128xf32>
      %147 = vector.broadcast %146 : vector<1x128xf32> to vector<8x128xf32>
      %148 = arith.addf %144, %147 : vector<8x128xf32>
      %cst_94 = arith.constant 0.000000e+00 : f32
      %149 = vector.broadcast %cst_94 : f32 to vector<8x128xf32>
      %150 = arith.maximumf %148, %149 : vector<8x128xf32>
      %c0_95 = arith.constant 0 : index
      %c0_96 = arith.constant 0 : index
      %c0_97 = arith.constant 0 : index
      %151 = vector.load %arg13[%c0_95, %c0_96, %c0_97] : memref<2x128x32xbf16, #tpu.memory_space<vmem>>, vector<1x128x32xbf16>
      %152 = vector.shape_cast %151 : vector<1x128x32xbf16> to vector<128x32xbf16>
      %153 = arith.truncf %150 : vector<8x128xf32> to vector<8x128xbf16>
      %cst_98 = arith.constant dense<0.000000e+00> : vector<8x32xf32>
      %154 = tpu.matmul %153, %152, %cst_98 {dimension_numbers = #tpu.dot_dimension_numbers<[1], [0], [0], [1], [0, 0, 1, 1], [], []>} : vector<8x128xbf16>, vector<128x32xbf16>, vector<8x32xf32> -> vector<8x32xf32>
      %c0_99 = arith.constant 0 : index
      %c0_100 = arith.constant 0 : index
      %c0_101 = arith.constant 0 : index
      %155 = vector.load %arg14[%c0_99, %c0_100, %c0_101] : memref<2x1x32xf32, #tpu.memory_space<vmem>>, vector<1x1x32xf32>
      %156 = vector.shape_cast %155 : vector<1x1x32xf32> to vector<1x32xf32>
      %157 = vector.broadcast %156 : vector<1x32xf32> to vector<8x32xf32>
      %158 = arith.addf %154, %157 : vector<8x32xf32>
      %159 = arith.addf %140, %158 : vector<8x32xf32>
      %c0_102 = arith.constant 0 : index
      %c0_103 = arith.constant 0 : index
      %c0_104 = arith.constant 0 : index
      %160 = vector.load %arg17[%c0_102, %c0_103, %c0_104] : memref<2x1x32xf32, #tpu.memory_space<vmem>>, vector<1x1x32xf32>
      %161 = vector.shape_cast %160 : vector<1x1x32xf32> to vector<1x32xf32>
      %c0_105 = arith.constant 0 : index
      %c0_106 = arith.constant 0 : index
      %c0_107 = arith.constant 0 : index
      %162 = vector.load %arg18[%c0_105, %c0_106, %c0_107] : memref<2x1x32xf32, #tpu.memory_space<vmem>>, vector<1x1x32xf32>
      %163 = vector.shape_cast %162 : vector<1x1x32xf32> to vector<1x32xf32>
      %cst_108 = arith.constant dense<0.000000e+00> : vector<8xf32>
      %164 = vector.multi_reduction <add>, %159, %cst_108 [1] : vector<8x32xf32> to vector<8xf32>
      %165 = vector.shape_cast %164 : vector<8xf32> to vector<8x1xf32>
      %cst_109 = arith.constant 3.200000e+01 : f32
      %166 = vector.broadcast %cst_109 : f32 to vector<8x1xf32>
      %167 = arith.divf %165, %166 : vector<8x1xf32>
      %168 = vector.broadcast %167 : vector<8x1xf32> to vector<8x32xf32>
      %169 = arith.subf %159, %168 : vector<8x32xf32>
      %170 = arith.mulf %169, %169 : vector<8x32xf32>
      %cst_110 = arith.constant dense<0.000000e+00> : vector<8xf32>
      %171 = vector.multi_reduction <add>, %170, %cst_110 [1] : vector<8x32xf32> to vector<8xf32>
      %172 = vector.shape_cast %171 : vector<8xf32> to vector<8x1xf32>
      %cst_111 = arith.constant 3.200000e+01 : f32
      %173 = vector.broadcast %cst_111 : f32 to vector<8x1xf32>
      %174 = arith.divf %172, %173 : vector<8x1xf32>
      %175 = vector.broadcast %167 : vector<8x1xf32> to vector<8x32xf32>
      %176 = arith.subf %159, %175 : vector<8x32xf32>
      %cst_112 = arith.constant 9.99999974E-6 : f32
      %177 = vector.broadcast %cst_112 : f32 to vector<8x1xf32>
      %178 = arith.addf %174, %177 : vector<8x1xf32>
      %179 = math.rsqrt %178 : vector<8x1xf32>
      %180 = vector.broadcast %179 : vector<8x1xf32> to vector<8x32xf32>
      %181 = arith.mulf %176, %180 : vector<8x32xf32>
      %182 = vector.broadcast %161 : vector<1x32xf32> to vector<8x32xf32>
      %183 = arith.mulf %181, %182 : vector<8x32xf32>
      %184 = vector.broadcast %163 : vector<1x32xf32> to vector<8x32xf32>
      %185 = arith.addf %183, %184 : vector<8x32xf32>
      %c1_113 = arith.constant 1 : index
      %c0_114 = arith.constant 0 : index
      %c0_115 = arith.constant 0 : index
      %186 = vector.load %arg24[%c1_113, %c0_114, %c0_115] : memref<2x8x32xf32, #tpu.memory_space<vmem>>, vector<1x8x32xf32>
      %187 = vector.shape_cast %186 : vector<1x8x32xf32> to vector<8x32xf32>
      %c1_116 = arith.constant 1 : index
      %c0_117 = arith.constant 0 : index
      %c0_118 = arith.constant 0 : index
      %188 = vector.load %arg23[%c1_116, %c0_117, %c0_118] : memref<2x8x1xf32, #tpu.memory_space<vmem>>, vector<1x8x1xf32>
      %189 = vector.shape_cast %188 : vector<1x8x1xf32> to vector<8x1xf32>
      %190 = tpu.reciprocal %189 {approx = true} : vector<8x1xf32> -> vector<8x1xf32>
      %191 = vector.broadcast %190 : vector<8x1xf32> to vector<8x32xf32>
      %192 = arith.mulf %187, %191 : vector<8x32xf32>
      %193 = vector.extract_strided_slice %105 {offsets = [0, 32], sizes = [8, 32], strides = [1, 1]} : vector<8x64xf32> to vector<8x32xf32>
      %194 = arith.addf %193, %192 : vector<8x32xf32>
      %c1_119 = arith.constant 1 : index
      %c0_120 = arith.constant 0 : index
      %c0_121 = arith.constant 0 : index
      %195 = vector.load %arg15[%c1_119, %c0_120, %c0_121] : memref<2x1x32xf32, #tpu.memory_space<vmem>>, vector<1x1x32xf32>
      %196 = vector.shape_cast %195 : vector<1x1x32xf32> to vector<1x32xf32>
      %c1_122 = arith.constant 1 : index
      %c0_123 = arith.constant 0 : index
      %c0_124 = arith.constant 0 : index
      %197 = vector.load %arg16[%c1_122, %c0_123, %c0_124] : memref<2x1x32xf32, #tpu.memory_space<vmem>>, vector<1x1x32xf32>
      %198 = vector.shape_cast %197 : vector<1x1x32xf32> to vector<1x32xf32>
      %cst_125 = arith.constant dense<0.000000e+00> : vector<8xf32>
      %199 = vector.multi_reduction <add>, %194, %cst_125 [1] : vector<8x32xf32> to vector<8xf32>
      %200 = vector.shape_cast %199 : vector<8xf32> to vector<8x1xf32>
      %cst_126 = arith.constant 3.200000e+01 : f32
      %201 = vector.broadcast %cst_126 : f32 to vector<8x1xf32>
      %202 = arith.divf %200, %201 : vector<8x1xf32>
      %203 = vector.broadcast %202 : vector<8x1xf32> to vector<8x32xf32>
      %204 = arith.subf %194, %203 : vector<8x32xf32>
      %205 = arith.mulf %204, %204 : vector<8x32xf32>
      %cst_127 = arith.constant dense<0.000000e+00> : vector<8xf32>
      %206 = vector.multi_reduction <add>, %205, %cst_127 [1] : vector<8x32xf32> to vector<8xf32>
      %207 = vector.shape_cast %206 : vector<8xf32> to vector<8x1xf32>
      %cst_128 = arith.constant 3.200000e+01 : f32
      %208 = vector.broadcast %cst_128 : f32 to vector<8x1xf32>
      %209 = arith.divf %207, %208 : vector<8x1xf32>
      %210 = vector.broadcast %202 : vector<8x1xf32> to vector<8x32xf32>
      %211 = arith.subf %194, %210 : vector<8x32xf32>
      %cst_129 = arith.constant 9.99999974E-6 : f32
      %212 = vector.broadcast %cst_129 : f32 to vector<8x1xf32>
      %213 = arith.addf %209, %212 : vector<8x1xf32>
      %214 = math.rsqrt %213 : vector<8x1xf32>
      %215 = vector.broadcast %214 : vector<8x1xf32> to vector<8x32xf32>
      %216 = arith.mulf %211, %215 : vector<8x32xf32>
      %217 = vector.broadcast %196 : vector<1x32xf32> to vector<8x32xf32>
      %218 = arith.mulf %216, %217 : vector<8x32xf32>
      %219 = vector.broadcast %198 : vector<1x32xf32> to vector<8x32xf32>
      %220 = arith.addf %218, %219 : vector<8x32xf32>
      %c1_130 = arith.constant 1 : index
      %c0_131 = arith.constant 0 : index
      %c0_132 = arith.constant 0 : index
      %221 = vector.load %arg11[%c1_130, %c0_131, %c0_132] : memref<2x32x128xbf16, #tpu.memory_space<vmem>>, vector<1x32x128xbf16>
      %222 = vector.shape_cast %221 : vector<1x32x128xbf16> to vector<32x128xbf16>
      %223 = arith.truncf %220 : vector<8x32xf32> to vector<8x32xbf16>
      %cst_133 = arith.constant dense<0.000000e+00> : vector<8x128xf32>
      %224 = tpu.matmul %223, %222, %cst_133 {dimension_numbers = #tpu.dot_dimension_numbers<[1], [0], [0], [1], [0, 0, 1, 1], [], []>} : vector<8x32xbf16>, vector<32x128xbf16>, vector<8x128xf32> -> vector<8x128xf32>
      %c1_134 = arith.constant 1 : index
      %c0_135 = arith.constant 0 : index
      %c0_136 = arith.constant 0 : index
      %225 = vector.load %arg12[%c1_134, %c0_135, %c0_136] : memref<2x1x128xf32, #tpu.memory_space<vmem>>, vector<1x1x128xf32>
      %226 = vector.shape_cast %225 : vector<1x1x128xf32> to vector<1x128xf32>
      %227 = vector.broadcast %226 : vector<1x128xf32> to vector<8x128xf32>
      %228 = arith.addf %224, %227 : vector<8x128xf32>
      %cst_137 = arith.constant 0.000000e+00 : f32
      %229 = vector.broadcast %cst_137 : f32 to vector<8x128xf32>
      %230 = arith.maximumf %228, %229 : vector<8x128xf32>
      %c1_138 = arith.constant 1 : index
      %c0_139 = arith.constant 0 : index
      %c0_140 = arith.constant 0 : index
      %231 = vector.load %arg13[%c1_138, %c0_139, %c0_140] : memref<2x128x32xbf16, #tpu.memory_space<vmem>>, vector<1x128x32xbf16>
      %232 = vector.shape_cast %231 : vector<1x128x32xbf16> to vector<128x32xbf16>
      %233 = arith.truncf %230 : vector<8x128xf32> to vector<8x128xbf16>
      %cst_141 = arith.constant dense<0.000000e+00> : vector<8x32xf32>
      %234 = tpu.matmul %233, %232, %cst_141 {dimension_numbers = #tpu.dot_dimension_numbers<[1], [0], [0], [1], [0, 0, 1, 1], [], []>} : vector<8x128xbf16>, vector<128x32xbf16>, vector<8x32xf32> -> vector<8x32xf32>
      %c1_142 = arith.constant 1 : index
      %c0_143 = arith.constant 0 : index
      %c0_144 = arith.constant 0 : index
      %235 = vector.load %arg14[%c1_142, %c0_143, %c0_144] : memref<2x1x32xf32, #tpu.memory_space<vmem>>, vector<1x1x32xf32>
      %236 = vector.shape_cast %235 : vector<1x1x32xf32> to vector<1x32xf32>
      %237 = vector.broadcast %236 : vector<1x32xf32> to vector<8x32xf32>
      %238 = arith.addf %234, %237 : vector<8x32xf32>
      %239 = arith.addf %220, %238 : vector<8x32xf32>
      %c1_145 = arith.constant 1 : index
      %c0_146 = arith.constant 0 : index
      %c0_147 = arith.constant 0 : index
      %240 = vector.load %arg17[%c1_145, %c0_146, %c0_147] : memref<2x1x32xf32, #tpu.memory_space<vmem>>, vector<1x1x32xf32>
      %241 = vector.shape_cast %240 : vector<1x1x32xf32> to vector<1x32xf32>
      %c1_148 = arith.constant 1 : index
      %c0_149 = arith.constant 0 : index
      %c0_150 = arith.constant 0 : index
      %242 = vector.load %arg18[%c1_148, %c0_149, %c0_150] : memref<2x1x32xf32, #tpu.memory_space<vmem>>, vector<1x1x32xf32>
      %243 = vector.shape_cast %242 : vector<1x1x32xf32> to vector<1x32xf32>
      %cst_151 = arith.constant dense<0.000000e+00> : vector<8xf32>
      %244 = vector.multi_reduction <add>, %239, %cst_151 [1] : vector<8x32xf32> to vector<8xf32>
      %245 = vector.shape_cast %244 : vector<8xf32> to vector<8x1xf32>
      %cst_152 = arith.constant 3.200000e+01 : f32
      %246 = vector.broadcast %cst_152 : f32 to vector<8x1xf32>
      %247 = arith.divf %245, %246 : vector<8x1xf32>
      %248 = vector.broadcast %247 : vector<8x1xf32> to vector<8x32xf32>
      %249 = arith.subf %239, %248 : vector<8x32xf32>
      %250 = arith.mulf %249, %249 : vector<8x32xf32>
      %cst_153 = arith.constant dense<0.000000e+00> : vector<8xf32>
      %251 = vector.multi_reduction <add>, %250, %cst_153 [1] : vector<8x32xf32> to vector<8xf32>
      %252 = vector.shape_cast %251 : vector<8xf32> to vector<8x1xf32>
      %cst_154 = arith.constant 3.200000e+01 : f32
      %253 = vector.broadcast %cst_154 : f32 to vector<8x1xf32>
      %254 = arith.divf %252, %253 : vector<8x1xf32>
      %255 = vector.broadcast %247 : vector<8x1xf32> to vector<8x32xf32>
      %256 = arith.subf %239, %255 : vector<8x32xf32>
      %cst_155 = arith.constant 9.99999974E-6 : f32
      %257 = vector.broadcast %cst_155 : f32 to vector<8x1xf32>
      %258 = arith.addf %254, %257 : vector<8x1xf32>
      %259 = math.rsqrt %258 : vector<8x1xf32>
      %260 = vector.broadcast %259 : vector<8x1xf32> to vector<8x32xf32>
      %261 = arith.mulf %256, %260 : vector<8x32xf32>
      %262 = vector.broadcast %241 : vector<1x32xf32> to vector<8x32xf32>
      %263 = arith.mulf %261, %262 : vector<8x32xf32>
      %264 = vector.broadcast %243 : vector<1x32xf32> to vector<8x32xf32>
      %265 = arith.addf %263, %264 : vector<8x32xf32>
      %266 = tpu.concatenate %185, %265 in 1 : vector<8x32xf32>, vector<8x32xf32> -> vector<8x64xf32>
      %c0_156 = arith.constant 0 : index
      %c0_157 = arith.constant 0 : index
      %c0_158 = arith.constant 0 : index
      %267 = vector.load %arg19[%c0_156, %c0_157, %c0_158] : memref<1x8x64xf32, #tpu.memory_space<vmem>>, vector<1x8x64xf32>
      %268 = vector.shape_cast %267 : vector<1x8x64xf32> to vector<8x64xf32>
      %269 = vector.shape_cast %266 : vector<8x64xf32> to vector<1x8x64xf32>
      tpu.vector_store %arg19[%c0_156, %c0_157, %c0_158], %269 {strides = array<i32>} : memref<1x8x64xf32, #tpu.memory_space<vmem>>, vector<1x8x64xf32>,
    } else {
    }
    return
  }
  func.func @transform_0(%arg0: i32, %arg1: i32) -> (i32, i32, i32) {
    %c0_i32 = arith.constant 0 : i32
    %c0_i32_0 = arith.constant 0 : i32
    %c0_i32_1 = arith.constant 0 : i32
    return %arg0, %c0_i32, %c0_i32_0 : i32, i32, i32
  }
  func.func @transform_1(%arg0: i32, %arg1: i32) -> (i32, i32, i32) {
    %c0_i32 = arith.constant 0 : i32
    %c0_i32_0 = arith.constant 0 : i32
    %c0_i32_1 = arith.constant 0 : i32
    return %arg0, %c0_i32, %c0_i32_0 : i32, i32, i32
  }
  func.func @transform_2(%arg0: i32, %arg1: i32) -> (i32, i32, i32) {
    %c0_i32 = arith.constant 0 : i32
    %c0_i32_0 = arith.constant 0 : i32
    return %arg0, %arg1, %c0_i32 : i32, i32, i32
  }
  func.func @transform_3(%arg0: i32, %arg1: i32) -> (i32, i32, i32) {
    %c0_i32 = arith.constant 0 : i32
    %c0_i32_0 = arith.constant 0 : i32
    return %arg0, %arg1, %c0_i32 : i32, i32, i32
  }
  func.func @transform_4(%arg0: i32, %arg1: i32) -> (i32, i32, i32) {
    %c0_i32 = arith.constant 0 : i32
    %c0_i32_0 = arith.constant 0 : i32
    return %arg0, %c0_i32, %arg1 : i32, i32, i32
  }
  func.func @transform_5(%arg0: i32, %arg1: i32) -> (i32, i32) {
    %c0_i32 = arith.constant 0 : i32
    %c0_i32_0 = arith.constant 0 : i32
    %c0_i32_1 = arith.constant 0 : i32
    return %c0_i32, %c0_i32_0 : i32, i32
  }
  func.func @transform_6(%arg0: i32, %arg1: i32) -> (i32, i32) {
    %c0_i32 = arith.constant 0 : i32
    %c0_i32_0 = arith.constant 0 : i32
    %c0_i32_1 = arith.constant 0 : i32
    return %c0_i32, %c0_i32_0 : i32, i32
  }
  func.func @transform_7(%arg0: i32, %arg1: i32) -> (i32, i32) {
    %c0_i32 = arith.constant 0 : i32
    %c0_i32_0 = arith.constant 0 : i32
    %c0_i32_1 = arith.constant 0 : i32
    return %c0_i32, %c0_i32_0 : i32, i32
  }
  func.func @transform_8(%arg0: i32, %arg1: i32) -> (i32, i32) {
    %c0_i32 = arith.constant 0 : i32
    %c0_i32_0 = arith.constant 0 : i32
    %c0_i32_1 = arith.constant 0 : i32
    return %c0_i32, %c0_i32_0 : i32, i32
  }
  func.func @transform_9(%arg0: i32, %arg1: i32) -> (i32, i32, i32) {
    %c0_i32 = arith.constant 0 : i32
    %c0_i32_0 = arith.constant 0 : i32
    %c0_i32_1 = arith.constant 0 : i32
    %c0_i32_2 = arith.constant 0 : i32
    return %c0_i32, %c0_i32_0, %c0_i32_1 : i32, i32, i32
  }
  func.func @transform_10(%arg0: i32, %arg1: i32) -> (i32, i32, i32) {
    %c0_i32 = arith.constant 0 : i32
    %c0_i32_0 = arith.constant 0 : i32
    %c0_i32_1 = arith.constant 0 : i32
    %c0_i32_2 = arith.constant 0 : i32
    return %c0_i32, %c0_i32_0, %c0_i32_1 : i32, i32, i32
  }
  func.func @transform_11(%arg0: i32, %arg1: i32) -> (i32, i32, i32) {
    %c0_i32 = arith.constant 0 : i32
    %c0_i32_0 = arith.constant 0 : i32
    %c0_i32_1 = arith.constant 0 : i32
    %c0_i32_2 = arith.constant 0 : i32
    return %c0_i32, %c0_i32_0, %c0_i32_1 : i32, i32, i32
  }
  func.func @transform_12(%arg0: i32, %arg1: i32) -> (i32, i32, i32) {
    %c0_i32 = arith.constant 0 : i32
    %c0_i32_0 = arith.constant 0 : i32
    %c0_i32_1 = arith.constant 0 : i32
    %c0_i32_2 = arith.constant 0 : i32
    return %c0_i32, %c0_i32_0, %c0_i32_1 : i32, i32, i32
  }
  func.func @transform_13(%arg0: i32, %arg1: i32) -> (i32, i32, i32) {
    %c0_i32 = arith.constant 0 : i32
    %c0_i32_0 = arith.constant 0 : i32
    %c0_i32_1 = arith.constant 0 : i32
    %c0_i32_2 = arith.constant 0 : i32
    return %c0_i32, %c0_i32_0, %c0_i32_1 : i32, i32, i32
  }
  func.func @transform_14(%arg0: i32, %arg1: i32) -> (i32, i32, i32) {
    %c0_i32 = arith.constant 0 : i32
    %c0_i32_0 = arith.constant 0 : i32
    %c0_i32_1 = arith.constant 0 : i32
    %c0_i32_2 = arith.constant 0 : i32
    return %c0_i32, %c0_i32_0, %c0_i32_1 : i32, i32, i32
  }
  func.func @transform_15(%arg0: i32, %arg1: i32) -> (i32, i32, i32) {
    %c0_i32 = arith.constant 0 : i32
    %c0_i32_0 = arith.constant 0 : i32
    %c0_i32_1 = arith.constant 0 : i32
    %c0_i32_2 = arith.constant 0 : i32
    return %c0_i32, %c0_i32_0, %c0_i32_1 : i32, i32, i32
  }
  func.func @transform_16(%arg0: i32, %arg1: i32) -> (i32, i32, i32) {
    %c0_i32 = arith.constant 0 : i32
    %c0_i32_0 = arith.constant 0 : i32
    %c0_i32_1 = arith.constant 0 : i32
    %c0_i32_2 = arith.constant 0 : i32
    return %c0_i32, %c0_i32_0, %c0_i32_1 : i32, i32, i32
  }
  func.func @transform_17(%arg0: i32, %arg1: i32) -> (i32, i32, i32) {
    %c0_i32 = arith.constant 0 : i32
    %c0_i32_0 = arith.constant 0 : i32
    %c0_i32_1 = arith.constant 0 : i32
    return %arg0, %c0_i32, %c0_i32_0 : i32, i32, i32
  }
}

</mosaic_0001>

<bundles_post_ra>
// kernel: decoder_block_forward.2
= control target key start
LH: loop header
LB: loop body
LE: loop exit
PB: predicated region body
PF: predicated region fallthrough
CT: control target
= control target key end

     0   :  { %15 = vsyncpa [#allocation5], 0  ;;  %s1580_s13 = smov 0   ;;  %s1782_s0 = inlined_call_operand.vmem [shape: bf16[2,8,64], index: 0, kind: input, shape index: {}]   ;;  %s1783_s1 = inlined_call_operand.vmem [shape: bf16[2,8,32], index: 1, kind: input, shape index: {}]   ;;  %s1784_s2 = inlined_call_operand.vmem [shape: f32[2,8,2], index: 2, kind: input, shape index: {}]   ;;  %s1785_s3 = inlined_call_operand.vmem [shape: f32[2,2,8], index: 3, kind: input, shape index: {}]   ;;  %s1786_s4 = inlined_call_operand.vmem [shape: bf16[64,192], index: 4, kind: input, shape index: {}]   ;;  %s1787_s5 = inlined_call_operand.vmem [shape: bf16[32,128], index: 5, kind: input, shape index: {}]   ;;  %s1788_s6 = inlined_call_operand.vmem [shape: f32[1,64], index: 6, kind: input, shape index: {}]   ;;  %s1789_s7 = inlined_call_operand.vmem [shape: f32[1,64], index: 7, kind: input, shape index: {}]   ;;  %s1790_s8 = inlined_call_operand.vmem [shape: f32[1,64], index: 8, kind: input, shape index: {}]   ;;  %s1791_s9 = inlined_call_operand.hbm [shape: f32[1,64], index: 9, kind: input, shape index: {}]   ;;  %s1792_s10 = inlined_call_operand.vmem [shape: bf16[2,8,64], index: 10, kind: output, shape index: {}]  }
   0x1 LB: > { %s1586_s14 = sadd.s32 4294967295, %s1511_s13   ;;  %p1286_p0 = scmp.ge.s32.totalorder %s1511_s13, 1  ;;  %s1511_s13 = sphi %s1580_s13, %s21_s13  }
   0x2   : > { %p282_p1 = scmp.lt.s32.totalorder %s1511_s13, 3  ;;  %p1793_p3 = scmp.eq.s32.totalorder %s1586_s14, 0 }
   0x3   : > { %s1513_s16 = smov [#allocation4]   ;;  %s1473_s21 = scalar_lea.hbm %s1791_s9, 16 }
   0x4   : > { %p1590_p2 = pnand %p1286_p0, %p282_p1  ;;  %s310_s17 = sshll.u32 %s1513_s16, 4  ;;  %s311_s17 = int_to_ptr.vmem [resolvable:$true] %s310_s17 }
   0x5   : > { %p1474_p6 = scmp.ne.s32.totalorder %s1791_s9, %s1473_s21  ;;  %p1480_p10 = scmp.lt.u32.totalorder %s1473_s21, %s1791_s9 }
   0x6   : > { %s1795_s15 = scalar_select %p1590_p2, 1, 0 }
   0x7   : > { %p1401_p4 = pneg %p1590_p2 }
   0x9   : > { %p1599_p5 = pnand %p1793_p3, %p1401_p4 }
   0xb   : > { %p1475_p7 = pneg %p1599_p5 }
   0xd   : > { %p1476_p8 = pnand %p1475_p7, %p1474_p6 }
   0xf   : > { %p1477_p9 = pneg %p1476_p8 }
  0x11   : > { %p1482_p11 = pnand %p1480_p10, %p1477_p9 }
  0x13   : > { %1485 = shalt.err (!%p1482_p11)
}
  0x14   : > { %s1486_s26 = scalar_lea.vmem %s311_s17, 16  ;;  %s1493_s27 = scalar_lea.vmem %s311_s17, 32 }
  0x15   : > { %p1487_p12 = scmp.ne.s32.totalorder %s311_s17, %s1486_s26  ;;  %p1494_p1 = scmp.lt.s32.totalorder %s311_s17, %s311_s17 }
  0x16   : > { %p1495_p4 = scmp.lt.s32.totalorder %s1493_s27, %s1486_s26 }
  0x17   : > { %p1489_p13 = pnand %p1487_p12, %p1475_p7 }
  0x18   : > { %p1496_p3 = por %p1495_p4, %p1494_p1 }
  0x19   : > { %p1490_p0 = pneg %p1489_p13 }
  0x1b   : > { %p1497_p2 = pnand %p1496_p3, %p1490_p0 }
  0x1d   : > { %1500 = shalt.err (!%p1497_p2)
}
  0x1e   : > { %1404 = dma.hbm_to_vmem [thread:$0]  (!%p1599_p5), %s1791_s9, 16, %s311_s17, [#allocation5]  }
  0x1f   : > { %p1797_p6 = scmp.ne.s32.totalorder %s1795_s15, 0 }
  0x20   : > { %p1798_p8 = scmp.eq.s32.totalorder (!%p1797_p6), %s1586_s14, 0 }
  0x21   : > { %351 = sbr.rel (%p1797_p6) target bundleno = 1661 (0x67d), region = 60 }
  0x28   : > { %1506 = dma.done.wait (%p1798_p8), [#allocation5], 16   ;;  %p1799_p7 = pmov %p1798_p8 }
  0x29   : > { %v1514_v0 = vmov 0.0   ;;  %vm1515_vm0 = vmmov 0   ;;  %p399_p2 = scmp.lt.s32.totalorder %s1586_s14, 1  ;;  %v1516_v1 = vmov 0   ;;  %v1429_v2 = vld [vmem:[%s1786_s4 + $0x4] ss:$8 sps:$4 sm:$0xff]   ;;  %v429_v63 = vlaneseq }
  0x2a   : > { %1508 = vsyncadd (%p1799_p7), [#allocation5], 4294967280  ;;  %1341 = vmatprep.subr.bf16.mxu1 %v1514_v0  ;;  %1345 = vmatprep.mubr.msk.bf16.mxu1 %vm1515_vm0, %v1514_v0  ;;  %v1431_v3 = vld [vmem:[%s1786_s4] ss:$8 sps:$4 sm:$0xff]   ;;  %v1432_v4 = vld [vmem:[%s1786_s4 + $0x14] ss:$8 sps:$4 sm:$0xff]  }
  0x2b   : > { %533 = vmatprep.mubr.bf16.mxu0 %v1516_v1  ;;  %1427 = vset.pattern.permute.xlu0 %v1516_v1  ;;  %s1801_s14 = smov (!%p399_p2, %s1586_s14), 1  ;;  %v1434_v5 = vld [vmem:[%s1786_s4 + $0x10] ss:$8 sps:$4 sm:$0xff]   ;;  %v1435_v6 = vld [vmem:[%s1787_s5] sm:$0xff]   ;;  %v1439_v8 = vld [vmem:[%s1787_s5 + $0x8] sm:$0xff]   ;;  %vm558_vm1 = vcmask 261120  }
  0x2c   : > { %501 = vmatprep.subr.bf16.mxu0 %v1429_v2  ;;  %s1648_s22 = sshll.u32 %s1801_s14, 2  ;;  %v1436_v7 = vld [vmem:[%s1786_s4 + $0x24] ss:$8 sps:$4 sm:$0xff]   ;;  %1342 = vmatpush3.bf16.msra.mxu1 %v1435_v6  ;;  %v1438_v9 = vld [vmem:[%s1786_s4 + $0x20] ss:$8 sps:$4 sm:$0xff]   ;;  %vm497_vm2 = vcmask 523264  }
  0x2d   : > { %502 = vmatpush1.bf16.msra.mxu0 %v1431_v3  ;;  %1343 = vmatprep.subr.bf16.mxu1 %v1514_v0  ;;  %s406_s29 = scalar_lea.vmem %s1783_s1, %s1648_s22  ;;  %v1440_v10 = vld [vmem:[%s1786_s4 + $0x34] ss:$8 sps:$4 sm:$0xff]   ;;  %v1442_v12 = vld [vmem:[%s1786_s4 + $0x30] ss:$8 sps:$4 sm:$0xff]   ;;  %s402_s20 = scalar_lea.vmem %s1782_s0, %s1648_s22  ;;  %vm678_vm3 = vcmask 1043456   ;;  %v1524_v27 = vmov 1  }
  0x2e   : > { %503 = vmatprep.subr.bf16.mxu0 %v1432_v4  ;;  %v421_v11 = vld [vmem:[%s406_s29] sm:$0xf]  ;;  %s1517_s21 = smov 112   ;;  %s1518_s23 = smov 64   ;;  %vm608_vm4 = vcmask 130048   ;;  %vm656_vm5 = vcmask 64512  }
  0x2f   : > { %v1677_v13 = vld [vmem:[%s402_s20] sm:$0xf]  ;;  %s1519_s24 = smov 32   ;;  %s1520_s25 = smov 48   ;;  %v430_v1 = vshrl.u32 %v429_v63, 7  ;;  %vm848_vm6 = vcmask 261248  }
  0x30   : > { %1344 = vmatpush3.bf16.msra.mxu1 %v1439_v8  ;;  %s1521_s26 = smov 16   ;;  %s1522_s27 = smov 96   ;;  %vm977_vm7 = vcmask 392448   ;;  %vm1106_vm8 = vcmask 523648   ;;  %vm1181_vm9 = vcmask 519168  }
  0x31   : > { %504 = vmatpush1.bf16.msra.mxu0 %v1434_v5  ;;  %1349 = vmatprep.subr.bf16.mxu1 %v1514_v0  ;;  %s1523_s28 = smov 80   ;;  %s1293_s29 = sshll.u32 %s1801_s14, 3  ;;  %v431_v3 = vsub.s32 0, %v430_v1  ;;  %v440_v4 = vsub.s32 1, %v430_v1 }
  0x32   : > { %505 = vmatprep.subr.bf16.mxu0 %v1436_v7  ;;  %s410_s12 = scalar_lea.vmem %s1784_s2, %s1293_s29  ;;  %s1294_s15 = sshll.u32 %s1801_s14, 1 }
  0x33   : > { %1346 = vmatmul.mubr.msk.bf16.vlgmr.msra.gmra.mrb[0].mxu1 %vm558_vm1, %v421_v11  ;;  %v422_v26 = vld [vmem:[%s410_s12] sm:$0xff]  ;;  %s414_s18 = scalar_lea.vmem %s1785_s3, %s1294_s15 }
  0x34   : > { %1351 = vmatprep.mubr.msk.bf16.mxu1 %vm1515_vm0, %v1514_v0  ;;  %v423_v5 = vld [vmem:[%s414_s18] sm:$0x3] }
  0x35   : > { %506 = vmatpush1.bf16.msra.mxu0 %v1438_v9  ;;  %v432_v6 = vrot.slane %v423_v5, %v431_v3  ;;  %v441_v7 = vrot.slane %v423_v5, %v440_v4 }
  0x36   : > { %507 = vmatprep.subr.bf16.mxu0 %v1440_v10 }
  0x39   : > { %508 = vmatpush1.bf16.msra.mxu0 %v1442_v12 }
  0x3a   : > { %1355 = vmatprep.subr.bf16.mxu0 %v1514_v0 }
  0x3c   : > { %1304 = vmatmul.mubr.msk.bf16.vlgmr.msra.gmra.mrb[0].mxu0 %vm497_vm2, %v1677_v13 }
  0x3d   : > { %1357 = vmatprep.mubr.msk.bf16.mxu0 %vm1515_vm0, %v1514_v0 }
 0x106   : > { %v596_v14 = vpop.f32.mrb[0].mxu1 }
 0x107   : > { %v1347_v15 = vpop.f32.mrb[1].mxu1 }
 0x108   : > { %v599_v16 = vpop.f32.mrb[2].mxu1 }
 0x109   : > { %v1348_v17 = vpop.f32.mrb[3].mxu1 }
 0x10f   : > { %v535_v18 = vpop.f32.mrb[0].mxu0 }
 0x110   : > { %v602_v19 = vadd.f32 %v596_v14, %v535_v18  ;;  %v537_v20 = vpop.f32.mrb[1].mxu0 }
 0x111   : > { %v1684_v21 = vpack.c.bf16 %v537_v20, %v537_v20  ;;  %v539_v22 = vpop.f32.mrb[2].mxu0 }
 0x112   : > { %v603_v23 = vpack.c.bf16 %v602_v19, %v602_v19  ;;  %v540_v24 = vpop.f32.mrb[3].mxu0 }
 0x113   : > { %v680_v25 = vsel %vm678_vm3, %v1684_v21, 0 }
 0x114   : > { %725 = vrot.lane.b32.xlu1 %v603_v23, %s1517_s21  ;;  %606 = vrot.lane.b32.xlu0 %v603_v23, %s1518_s23 }
 0x115   : > { %1356 = vmatpush3.bf16.msra.mxu0 %v680_v25 }
 0x116   : > { %1367 = vmatprep.subr.bf16.mxu0 %v1514_v0 }
 0x118   : > { %857 = vrot.lane.b32.xlu1 %v603_v23, %s1519_s24  ;;  %727 = vrot.lane.b32.xlu0 %v603_v23, %s1520_s25 }
 0x11c   : > { %986 = vrot.lane.b32.xlu1 %v603_v23, %s1521_s26  ;;  %855 = vrot.lane.b32.xlu0 %v603_v23, %s1522_s27 }
 0x120   : > { %984 = vrot.lane.b32.xlu0 %v603_v23, %s1523_s28 }
 0x124   : > { %426 = vperm.xlu0 %1427, %v422_v26  }
 0x128   : > { %1428 = vset.pattern.permute.xlu0 %v1524_v27 }
 0x129   : > { %435 = vperm.xlu0 %1428, %v422_v26  }
 0x186   : > { %v607_v28 = vpop.permute.xlu0 %606  ;;  %v726_v31 = vpop.permute.xlu1 %725 }
 0x187   : > { %v613_v29 = vsel %vm608_vm4, %v607_v28, 0 }
 0x188   : > { %1350 = vmatpush3.bf16.xpose.msra.mxu1 %v613_v29 }
 0x189   : > { %1361 = vmatprep.subr.bf16.mxu1 %v1514_v0 }
 0x18a   : > { %v728_v30 = vpop.permute.xlu0 %727  ;;  %v858_v33 = vpop.permute.xlu1 %857 }
 0x18b   : > { %v733_v32 = vsel %vm608_vm4, %v728_v30, 0  ;;  %v863_v34 = vsel %vm608_vm4, %v858_v33, 0 }
 0x18e   : > { %v987_v35 = vpop.permute.xlu1 %986  ;;  %v856_v36 = vpop.permute.xlu0 %855 }
 0x18f   : > { %1352 = vmatmul.mubr.msk.bf16.vlgmr.msra.gmra.mrb[4].mxu1 %vm608_vm4, %v603_v23  ;;  %v992_v37 = vsel %vm608_vm4, %v987_v35, 0 }
 0x190   : > { %1362 = vmatpush3.bf16.xpose.msra.mxu1 %v733_v32  ;;  %1363 = vmatprep.mubr.msk.bf16.mxu1 %vm1515_vm0, %v1514_v0 }
 0x191   : > { %1373 = vmatprep.subr.bf16.mxu1 %v1514_v0 }
 0x192   : > { %v985_v38 = vpop.permute.xlu0 %984 }
 0x197   : > { %1364 = vmatmul.mubr.msk.bf16.vlgmr.msra.gmra.mrb[8].mxu1 %vm608_vm4, %v726_v31 }
 0x198   : > { %1374 = vmatpush3.bf16.xpose.msra.mxu1 %v863_v34  ;;  %1375 = vmatprep.mubr.msk.bf16.mxu1 %vm1515_vm0, %v1514_v0 }
 0x199   : > { %1385 = vmatprep.subr.bf16.mxu1 %v1514_v0 }
 0x19f   : > { %1376 = vmatmul.mubr.msk.bf16.vlgmr.msra.gmra.mrb[12].mxu1 %vm608_vm4, %v856_v36 }
 0x1a0   : > { %1386 = vmatpush3.bf16.xpose.msra.mxu1 %v992_v37  ;;  %1387 = vmatprep.mubr.msk.bf16.mxu1 %vm1515_vm0, %v1514_v0 }
 0x1a3   : > { %v427_v2 = vpop.permute.xlu0 %426 }
 0x1a4   : > { %v433_v9 = vsub.f32 %v427_v2, %v432_v6 }
 0x1a6   : > { %v443_v11 = vmul.f32 %v433_v9, %v433_v9 }
 0x1a7   : > { %1388 = vmatmul.mubr.msk.bf16.vlgmr.msra.gmra.mrb[16].mxu1 %vm608_vm4, %v985_v38 }
 0x1a8   : > { %v436_v8 = vpop.permute.xlu0 %435 }
 0x1a9   : > { %v442_v10 = vsub.f32 %v436_v8, %v441_v7 }
 0x1ab   : > { %v444_v12 = vmul.f32 %v442_v10, %v442_v10 }
 0x1ad   : > { %v445_v14 = vadd.f32 %v444_v12, %v443_v11 }
 0x1af   : > { %v446_v15 = vsub.f32 0.0, %v445_v14 }
 0x1b1   : > { %v447_v16 = vmul.f32 1.442695, %v446_v15 }
 0x1b3   : > { %1443 = vpow2.f32 %v447_v16 }
 0x1bd   : > { %v1444_v24 = vpop.eup %1443 }
 0x262   : > { %v649_v39 = vpop.f32.mrb[4].mxu1 }
 0x263   : > { %v655_v40 = vmul.f32 0.25, %v649_v39  ;;  %v1353_v41 = vpop.f32.mrb[5].mxu1 }
 0x264   : > { %v652_v42 = vpop.f32.mrb[6].mxu1 }
 0x265   : > { %v1354_v43 = vpop.f32.mrb[7].mxu1  ;;  %v657_v44 = vsel %vm656_vm5, %v655_v40, -inf }
 0x266   : > { %658 = vmax.xlane.f32.xlu1 %v657_v44 }
 0x26a   : > { %v769_v45 = vpop.f32.mrb[8].mxu1 }
 0x26b   : > { %v775_v46 = vmul.f32 0.25, %v769_v45  ;;  %v1365_v47 = vpop.f32.mrb[9].mxu1 }
 0x26c   : > { %v772_v48 = vpop.f32.mrb[10].mxu1 }
 0x26d   : > { %v1366_v49 = vpop.f32.mrb[11].mxu1  ;;  %v776_v50 = vsel %vm656_vm5, %v775_v46, -inf }
 0x26e   : > { %777 = vmax.xlane.f32.xlu0 %v776_v50 }
 0x272   : > { %v899_v51 = vpop.f32.mrb[12].mxu1 }
 0x273   : > { %v905_v52 = vmul.f32 0.25, %v899_v51  ;;  %v1377_v53 = vpop.f32.mrb[13].mxu1 }
 0x274   : > { %v902_v54 = vpop.f32.mrb[14].mxu1 }
 0x275   : > { %v1378_v55 = vpop.f32.mrb[15].mxu1  ;;  %v906_v56 = vsel %vm656_vm5, %v905_v52, -inf }
 0x276   : > { %907 = vmax.xlane.f32.xlu1 %v906_v56 }
 0x27a   : > { %v1028_v57 = vpop.f32.mrb[16].mxu1 }
 0x27b   : > { %v1034_v58 = vmul.f32 0.25, %v1028_v57  ;;  %v1389_v59 = vpop.f32.mrb[17].mxu1 }
 0x27c   : > { %v1031_v60 = vpop.f32.mrb[18].mxu1 }
 0x27d   : > { %v1390_v61 = vpop.f32.mrb[19].mxu1  ;;  %v1035_v62 = vsel %vm656_vm5, %v1034_v58, -inf }
 0x27e   : > { %1036 = vmax.xlane.f32.xlu1 %v1035_v62 }
 0x2f3   : > { %v659_v17 = vpop.xlane.xlu1 %658 }
 0x2f4   : > { %v660_v18 = vsub.f32 %v655_v40, %v659_v17 }
 0x2f6   : > { %v661_v19 = vmul.f32 1.442695, %v660_v18 }
 0x2f8   : > { %1445 = vpow2.f32 %v661_v19 }
 0x2fb   : > { %v778_v20 = vpop.xlane.xlu0 %777 }
 0x2fc   : > { %v779_v22 = vsub.f32 %v775_v46, %v778_v20 }
 0x2fe   : > { %v780_v23 = vmul.f32 1.442695, %v779_v22 }
 0x300   : > { %1447 = vpow2.f32 %v780_v23 }
 0x302   : > { %v1446_v25 = vpop.eup %1445 }
 0x303   : > { %v908_v26 = vpop.xlane.xlu1 %907  ;;  %v664_v27 = vsel %vm656_vm5, %v1446_v25, 0.0  ;;  %v663_v28 = vmul.f32 %v1446_v25, %v1444_v24 }
 0x304   : > { %v909_v29 = vsub.f32 %v905_v52, %v908_v26  ;;  %665 = vadd.xlane.f32.xlu1 %v664_v27 }
 0x305   : > { %v669_v31 = vsel %vm656_vm5, %v663_v28, 0.0 }
 0x306   : > { %v910_v30 = vmul.f32 1.442695, %v909_v29 }
 0x308   : > { %1449 = vpow2.f32 %v910_v30  ;;  %670 = vadd.xlane.f32.xlu1 %v669_v31 }
 0x30a   : > { %v1448_v32 = vpop.eup %1447 }
 0x30b   : > { %v1037_v33 = vpop.xlane.xlu1 %1036  ;;  %v783_v34 = vsel %vm656_vm5, %v1448_v32, 0.0  ;;  %v782_v35 = vmul.f32 %v1448_v32, %v1444_v24 }
 0x30c   : > { %v1038_v36 = vsub.f32 %v1034_v58, %v1037_v33  ;;  %784 = vadd.xlane.f32.xlu0 %v783_v34 }
 0x30d   : > { %v788_v37 = vsel %vm656_vm5, %v782_v35, 0.0 }
 0x30e   : > { %v1039_v38 = vmul.f32 1.442695, %v1038_v36  ;;  %789 = vadd.xlane.f32.xlu1 %v788_v37 }
 0x310   : > { %1451 = vpow2.f32 %v1039_v38 }
 0x312   : > { %v1450_v39 = vpop.eup %1449 }
 0x313   : > { %v913_v40 = vsel %vm656_vm5, %v1450_v39, 0.0  ;;  %v912_v41 = vmul.f32 %v1450_v39, %v1444_v24 }
 0x314   : > { %914 = vadd.xlane.f32.xlu0 %v913_v40  ;;  %v1113_v40 = vunpack.c.l.bf16 %v1677_v13 }
 0x315   : > { %v918_v42 = vsel %vm656_vm5, %v912_v41, 0.0 }
 0x316   : > { %919 = vadd.xlane.f32.xlu1 %v918_v42 }
 0x31a   : > { %v1452_v43 = vpop.eup %1451 }
 0x31b   : > { %v1042_v44 = vsel %vm656_vm5, %v1452_v43, 0.0  ;;  %v1041_v45 = vmul.f32 %v1452_v43, %v1444_v24 }
 0x31c   : > { %1043 = vadd.xlane.f32.xlu0 %v1042_v44 }
 0x31d   : > { %v1047_v46 = vsel %vm656_vm5, %v1041_v45, 0.0 }
 0x327   : > { %924 = vrot.lane.b32.xlu1 %v1684_v21, %s1522_s27  ;;  %s418_s27 = scalar_lea.vmem %s1792_s10, %s1648_s22 }
 0x332   : > { %795 = vrot.lane.b32.xlu0 %v1684_v21, %s1517_s21 }
 0x34b   : > { %1048 = vadd.xlane.f32.xlu1 %v1047_v46 }
 0x35c   : > { %1053 = vrot.lane.b32.xlu1 %v1684_v21, %s1523_s28 }
 0x391   : > { %v666_v47 = vpop.xlane.xlu1 %665 }
 0x392   : > { %1453 = vrcp.f32 %v666_v47 }
 0x395   : > { %v671_v48 = vpop.xlane.xlu1 %670 }
 0x396   : > { %1455 = vrcp.f32 %v671_v48 }
 0x399   : > { %v785_v51 = vpop.xlane.xlu0 %784 }
 0x39b   : > { %v790_v49 = vpop.xlane.xlu1 %789 }
 0x39c   : > { %v1454_v50 = vpop.eup %1453  ;;  %1457 = vrcp.f32 %v790_v49 }
 0x39d   : > { %v668_v53 = vmul.f32 %v1454_v50, %v1446_v25  ;;  %1459 = vrcp.f32 %v785_v51 }
 0x3a0   : > { %v1456_v52 = vpop.eup %1455 }
 0x3a1   : > { %v673_v54 = vmul.f32 %v1456_v52, %v663_v28  ;;  %v915_v57 = vpop.xlane.xlu0 %914 }
 0x3a3   : > { %v674_v55 = vpack.c.bf16 %v673_v54, %v668_v53  ;;  %v920_v56 = vpop.xlane.xlu1 %919 }
 0x3a4   : > { %1461 = vrcp.f32 %v920_v56 }
 0x3a5   : > { %1358 = vmatmul.mubr.msk.bf16.vlgmr.msra.gmra.mrb[4].mxu0 %vm656_vm5, %v674_v55  ;;  %1463 = vrcp.f32 %v915_v57 }
 0x3a6   : > { %1369 = vmatprep.mubr.msk.bf16.mxu0 %vm1515_vm0, %v1514_v0  ;;  %v1458_v21 = vpop.eup %1457 }
 0x3a7   : > { %v1460_v59 = vpop.eup %1459  ;;  %v792_v60 = vmul.f32 %v1458_v21, %v782_v35  ;;  %v925_v1 = vpop.permute.xlu1 %924 }
 0x3a8   : > { %v787_v62 = vmul.f32 %v1460_v59, %v1448_v32  ;;  %v930_v4 = vsel %vm678_vm3, %v925_v1, 0 }
 0x3a9   : > { %v1044_v58 = vpop.xlane.xlu0 %1043 }
 0x3aa   : > { %v793_v2 = vpack.c.bf16 %v792_v60, %v787_v62  ;;  %1465 = vrcp.f32 %v1044_v58  ;;  %v1316_v62 = vld [vmem:[%s1788_s6] ss:$0 sm:$0xff] }
 0x3ad   : > { %v796_v61 = vpop.permute.xlu0 %795 }
 0x3ae   : > { %v801_v63 = vsel %vm678_vm3, %v796_v61, 0  ;;  %v1462_v3 = vpop.eup %1461 }
 0x3af   : > { %1368 = vmatpush3.bf16.msra.mxu0 %v801_v63  ;;  %v1464_v5 = vpop.eup %1463  ;;  %v922_v6 = vmul.f32 %v1462_v3, %v912_v41  ;;  %v1317_v3 = vld [vmem:[%s1789_s7] ss:$0 sm:$0xff] }
 0x3b0   : > { %1379 = vmatprep.subr.bf16.mxu0 %v1514_v0  ;;  %v917_v7 = vmul.f32 %v1464_v5, %v1450_v39 }
 0x3b2   : > { %1370 = vmatmul.mubr.msk.bf16.vlgmr.msra.gmra.mrb[8].mxu0 %vm656_vm5, %v793_v2  ;;  %v923_v8 = vpack.c.bf16 %v922_v6, %v917_v7  ;;  %v1319_v6 = vld [vmem:[#allocation4] ss:$0 sm:$0xff] }
 0x3b3   : > { %1380 = vmatpush3.bf16.msra.mxu0 %v930_v4  ;;  %1381 = vmatprep.mubr.msk.bf16.mxu0 %vm1515_vm0, %v1514_v0  ;;  %v1318_v4 = vld [vmem:[%s1790_s8] ss:$0 sm:$0xff] }
 0x3b4   : > { %1391 = vmatprep.subr.bf16.mxu0 %v1514_v0  ;;  %v1466_v12 = vpop.eup %1465 }
 0x3b5   : > { %v1046_v15 = vmul.f32 %v1466_v12, %v1452_v43 }
 0x3ba   : > { %1382 = vmatmul.mubr.msk.bf16.vlgmr.msra.gmra.mrb[12].mxu0 %vm656_vm5, %v923_v8 }
 0x3bb   : > { %1393 = vmatprep.mubr.msk.bf16.mxu0 %vm1515_vm0, %v1514_v0 }
 0x3d8   : > { %v1049_v9 = vpop.xlane.xlu1 %1048 }
 0x3d9   : > { %1467 = vrcp.f32 %v1049_v9 }
 0x3dc   : > { %v1054_v10 = vpop.permute.xlu1 %1053 }
 0x3dd   : > { %v1059_v11 = vsel %vm678_vm3, %v1054_v10, 0 }
 0x3de   : > { %1392 = vmatpush3.bf16.msra.mxu0 %v1059_v11 }
 0x3e3   : > { %v1468_v14 = vpop.eup %1467 }
 0x3e4   : > { %v1051_v16 = vmul.f32 %v1468_v14, %v1041_v45 }
 0x3e6   : > { %v1052_v17 = vpack.c.bf16 %v1051_v16, %v1046_v15 }
 0x3e8   : > { %1394 = vmatmul.mubr.msk.bf16.vlgmr.msra.gmra.mrb[16].mxu0 %vm656_vm5, %v1052_v17 }
 0x478   : > { %v716_v18 = vpop.f32.mrb[4].mxu0 }
 0x479   : > { %723 = vst.msk [vmem:[#allocation2] sm:$0xff] %vm608_vm4, %v716_v18  ;;  %v1359_v19 = vpop.f32.mrb[5].mxu0 }
 0x47a   : > { %v719_v20 = vpop.f32.mrb[6].mxu0 }
 0x47b   : > { %724 = vst.msk [vmem:[#allocation3] sm:$0xff] %vm608_vm4, %v719_v20  ;;  %v1360_v0 = vpop.f32.mrb[7].mxu0 }
 0x485   : > { %v837_v22 = vpop.f32.mrb[8].mxu0 }
 0x486   : > { %845 = vrot.lane.b32.xlu0 %v837_v22, %s1521_s26  ;;  %v1371_v23 = vpop.f32.mrb[9].mxu0 }
 0x487   : > { %v840_v24 = vpop.f32.mrb[10].mxu0 }
 0x488   : > { %851 = vrot.lane.b32.xlu1 %v840_v24, %s1521_s26  ;;  %v1372_v25 = vpop.f32.mrb[11].mxu0 }
 0x48d   : > { %v966_v26 = vpop.f32.mrb[12].mxu0 }
 0x48e   : > { %974 = vrot.lane.b32.xlu0 %v966_v26, %s1519_s24  ;;  %v1383_v27 = vpop.f32.mrb[13].mxu0 }
 0x48f   : > { %v969_v28 = vpop.f32.mrb[14].mxu0 }
 0x490   : > { %980 = vrot.lane.b32.xlu1 %v969_v28, %s1519_s24  ;;  %v1384_v29 = vpop.f32.mrb[15].mxu0 }
 0x4bb   : > { %v1095_v30 = vpop.f32.mrb[16].mxu0 }
 0x4bc   : > { %1103 = vrot.lane.b32.xlu0 %v1095_v30, %s1520_s25  ;;  %v1395_v31 = vpop.f32.mrb[17].mxu0 }
 0x4bd   : > { %v1098_v32 = vpop.f32.mrb[18].mxu0 }
 0x4be   : > { %1109 = vrot.lane.b32.xlu1 %v1098_v32, %s1520_s25  ;;  %v1396_v33 = vpop.f32.mrb[19].mxu0 }
 0x4f8   : > { %v846_v34 = vpop.permute.xlu0 %845 }
 0x4f9   : > { %849 = vst.msk [vmem:[#allocation2] sm:$0xff] %vm848_vm6, %v846_v34 }
 0x4fa   : > { %v852_v35 = vpop.permute.xlu1 %851 }
 0x4fb   : > { %854 = vst.msk [vmem:[#allocation3] sm:$0xff] %vm848_vm6, %v852_v35 }
 0x500   : > { %v975_v36 = vpop.permute.xlu0 %974 }
 0x501   : > { %978 = vst.msk [vmem:[#allocation2] sm:$0xff] %vm977_vm7, %v975_v36 }
 0x502   : > { %v981_v37 = vpop.permute.xlu1 %980 }
 0x503   : > { %983 = vst.msk [vmem:[#allocation3] sm:$0xff] %vm977_vm7, %v981_v37 }
 0x52e   : > { %v1104_v38 = vpop.permute.xlu0 %1103 }
 0x52f   : > { %1107 = vst.msk [vmem:[#allocation2] sm:$0xff] %vm1106_vm8, %v1104_v38 }
 0x530   : > { %v1110_v39 = vpop.permute.xlu1 %1109 }
 0x531   : > { %1112 = vst.msk [vmem:[#allocation3] sm:$0xff] %vm1106_vm8, %v1110_v39 }
 0x536   : > { %v1114_v41 = vld [vmem:[#allocation2] sm:$0xff] }
 0x537   : > { %v1115_v42 = vadd.f32 %v1114_v41, %v1113_v40 }
 0x538   : > { %v1147_v43 = vld [vmem:[#allocation3] sm:$0xff] }
 0x539   : > { %v1118_v44 = vsel %vm497_vm2, %v1115_v42, 0.0  ;;  %v1148_v45 = vadd.f32 %v1147_v43, %v1113_v40 }
 0x53a   : > { %1119 = vadd.xlane.f32.xlu0 %v1118_v44 }
 0x53b   : > { %v1151_v46 = vsel %vm497_vm2, %v1148_v45, 0.0 }
 0x53c   : > { %1152 = vadd.xlane.f32.xlu1 %v1151_v46 }
 0x5c7   : > { %v1120_v47 = vpop.xlane.xlu0 %1119 }
 0x5c8   : > { %v1122_v48 = vmul.f32 0.015625, %v1120_v47 }
 0x5c9   : > { %v1153_v49 = vpop.xlane.xlu1 %1152 }
 0x5ca   : > { %v1123_v50 = vsub.f32 %v1115_v42, %v1122_v48  ;;  %v1154_v51 = vmul.f32 0.015625, %v1153_v49 }
 0x5cc   : > { %v1155_v52 = vsub.f32 %v1148_v45, %v1154_v51  ;;  %v1124_v53 = vmul.f32 %v1123_v50, %v1123_v50 }
 0x5ce   : > { %v1125_v54 = vsel %vm497_vm2, %v1124_v53, 0.0  ;;  %v1156_v13 = vmul.f32 %v1155_v52, %v1155_v52 }
 0x5cf   : > { %1126 = vadd.xlane.f32.xlu0 %v1125_v54 }
 0x5d0   : > { %v1157_v55 = vsel %vm497_vm2, %v1156_v13, 0.0 }
 0x5d3   : > { %1158 = vadd.xlane.f32.xlu0 %v1157_v55 }
 0x65c   : > { %v1127_v56 = vpop.xlane.xlu0 %1126 }
 0x65d   : > { %v1128_v57 = vmul.f32 0.015625, %v1127_v56 }
 0x65f   : > { %v1129_v21 = vadd.f32 1e-05, %v1128_v57 }
 0x660   : > { %v1159_v58 = vpop.xlane.xlu0 %1158 }
 0x661   : > { %1469 = vrsqrt.f32 %v1129_v21  ;;  %v1160_v59 = vmul.f32 0.015625, %v1159_v58 }
 0x663   : > { %v1161_v60 = vadd.f32 1e-05, %v1160_v59 }
 0x665   : > { %1471 = vrsqrt.f32 %v1161_v60 }
 0x66b   : > { %v1470_v61 = vpop.eup %1469 }
 0x66c   : > { %v1131_v63 = vmul.f32 %v1470_v61, %v1123_v50 }
 0x66e   : > { %v1138_v1 = vmul.f32 %v1316_v62, %v1131_v63 }
 0x66f   : > { %v1472_v2 = vpop.eup %1471 }
 0x670   : > { %v1163_v5 = vmul.f32 %v1472_v2, %v1155_v52  ;;  %v1145_v7 = vadd.f32 %v1317_v3, %v1138_v1 }
 0x672   : > { %v1170_v8 = vmul.f32 %v1318_v4, %v1163_v5  ;;  %v1146_v10 = vmul.f32 0.5, %v1145_v7 }
 0x674   : > { %v1177_v9 = vadd.f32 %v1319_v6, %v1170_v8 }
 0x676   : > { %v1178_v11 = vmul.f32 0.5, %v1177_v9 }
 0x678   : > { %v1179_v12 = vadd.f32 %v1178_v11, %v1146_v10 }
 0x67a   : > { %v1180_v14 = vpack.c.bf16 %v1179_v12, %v1179_v12 }
 0x67c   : > { %1182 = vst.msk [vmem:[%s418_s27] sm:$0xf] %vm1181_vm9, %v1180_v14 }
 0x67d PF: > { %s21_s13 = sadd.s32 1, %s1511_s13  }
 0x67e   : > { %p18_p3 = scmp.ge.s32.totalorder %s21_s13, 4  }
 0x680   :  { %20 = sbr.rel (!%p18_p3) target bundleno = 1 (0x1), region = 104 }
 0x687   :  { %1202 = vsyncpa [#allocation5], 1 }
 0x688   :  { %1204 = vsyncpa [#allocation5 + $0x1], 1 }

// kernel: decoder_block_forward.3
= control target key start
LH: loop header
LB: loop body
LE: loop exit
PB: predicated region body
PF: predicated region fallthrough
CT: control target
= control target key end

     0   :  { %s3627_s0 = inlined_call_operand.vmem [shape: bf16[2,8,64], index: 0, kind: input, shape index: {}]   ;;  %s3628_s1 = inlined_call_operand.vmem [shape: bf16[2,8,32], index: 1, kind: input, shape index: {}]   ;;  %s3629_s2 = inlined_call_operand.vmem [shape: bf16[2,256,32], index: 2, kind: input, shape index: {}]   ;;  %s3630_s3 = inlined_call_operand.vmem [shape: bf16[2,256,32], index: 3, kind: input, shape index: {}]   ;;  %s3631_s4 = inlined_call_operand.vmem [shape: f32[2,1,256], index: 4, kind: input, shape index: {}]   ;;  %s3632_s5 = inlined_call_operand.vmem [shape: bf16[64,64], index: 5, kind: input, shape index: {}]   ;;  %s3633_s6 = inlined_call_operand.vmem [shape: bf16[32,32], index: 6, kind: input, shape index: {}]   ;;  %s3634_s7 = inlined_call_operand.vmem [shape: bf16[32,64], index: 7, kind: input, shape index: {}]   ;;  %s3635_s8 = inlined_call_operand.vmem [shape: bf16[32,32], index: 8, kind: input, shape index: {}]   ;;  %s3636_s9 = inlined_call_operand.vmem [shape: bf16[2,32,128], index: 9, kind: input, shape index: {}]   ;;  %s3637_s10 = inlined_call_operand.vmem [shape: f32[2,1,128], index: 10, kind: input, shape index: {}]   ;;  %s3638_s11 = inlined_call_operand.vmem [shape: bf16[2,128,32], index: 11, kind: input, shape index: {}]   ;;  %s3639_s12 = inlined_call_operand.vmem [shape: f32[2,1,32], index: 12, kind: input, shape index: {}]   ;;  %s3640_s13 = inlined_call_operand.vmem [shape: f32[2,1,32], index: 13, kind: input, shape index: {}]   ;;  %s3641_s14 = inlined_call_operand.vmem [shape: f32[2,1,32], index: 14, kind: input, shape index: {}]   ;;  %s3642_s15 = inlined_call_operand.vmem [shape: f32[2,1,32], index: 15, kind: input, shape index: {}]   ;;  %s3643_s16 = inlined_call_operand.vmem [shape: f32[2,1,32], index: 16, kind: input, shape index: {}]   ;;  %s3644_s17 = inlined_call_operand.hbm [shape: f32[2,8,64], index: 17, kind: output, shape index: {}]  }
   0x1   :  { %3666 = sst [smem:[#allocation22_spill]] %s3627_s0 }
   0x2   :  { %3667 = sst [smem:[#allocation23_spill]] %s3628_s1 }
   0x3   :  { %3668 = sst [smem:[#allocation24_spill]] %s3636_s9 }
   0x4   :  { %3669 = sst [smem:[#allocation25_spill]] %s3637_s10 }
   0x5   :  { %3670 = sst [smem:[#allocation26_spill]] %s3638_s11 }
   0x6   :  { %3671 = sst [smem:[#allocation27_spill]] %s3639_s12 }
   0x7   :  { %3672 = sst [smem:[#allocation28_spill]] %s3642_s15 }
   0x8   :  { %3673 = sst [smem:[#allocation29_spill]] %s3643_s16 }
   0x9   :  { %3674 = sst [smem:[#allocation30_spill]] %s3644_s17 }
   0xa   :  { %22 = vsyncpa [#allocation8], 0 }
   0xb   :  { %24 = vsyncpa [#allocation8 + $0x1], 0  ;;  %s3101_s24 = smov 0   ;;  %s3103_s25 = smov 0  }
   0xc   :  { %s3105_s26 = smov 0   ;;  %s3107_s27 = smov 0  }
   0xd   :  { %s3109_s28 = smov 0   ;;  %s3111_s29 = smov 0  }
   0xe   :  { %s3113_s0 = smov 0   ;;  %s3115_s30 = smov 0  }
   0xf LB: > { %3675 = sst [smem:[#allocation10_spill]] %s2968_s24  ;;  %s2306_s18 = sadd.s32 4294967295, %s2996_s30   ;;  %s2996_s30 = sphi %s3115_s30, %s30_s30   ;;  %s2992_s0 = sphi %s3113_s0, %s3713_s0   ;;  %s2988_s29 = sphi %s3111_s29, %s3712_s29   ;;  %s2984_s28 = sphi %s3109_s28, %s3711_s28   ;;  %s2980_s27 = sphi %s3107_s27, %s3710_s27   ;;  %s2976_s26 = sphi %s3105_s26, %s3709_s26   ;;  %s2972_s25 = sphi %s3103_s25, %s3708_s25   ;;  %s2968_s24 = sphi %s3101_s24, %s3707_s24  }
  0x10   : > { %3676 = sst [smem:[#allocation11_spill]] %s2972_s25  ;;  %s2307_s19 = sadd.s32 4294967294, %s2996_s30  }
  0x11   : > { %3677 = sst [smem:[#allocation12_spill]] %s2976_s26  ;;  %s39_s1 = sadd.s32 1, %s2988_s29 }
  0x12   : > { %3678 = sst [smem:[#allocation13_spill]] %s2984_s28  ;;  %p40_p0 = scmp.ge.s32.totalorder %s39_s1, 2 }
  0x13   : > { %3679 = sst [smem:[#allocation14_spill]] %s2988_s29  ;;  %s42_s20 = sadd.s32 1, %s2992_s0 }
  0x14   : > { %3680 = sst [smem:[#allocation15_spill]] %s2992_s0  ;;  %p447_p1 = scmp.ne.s32.totalorder %s2976_s26, %s2972_s25 }
  0x15   : > { %3681 = sst [smem:[#allocation16_spill]] %s2996_s30  ;;  %p448_p2 = scmp.eq.s32.totalorder %s2306_s18, 3 }
  0x16   : > { %s3715_s1 = smov (%p40_p0, %s39_s1), 0  ;;  %s3717_s20 = smov (!%p40_p0, %s42_s20), %s2992_s0 }
  0x17   : > { %3682 = sst [smem:[#allocation17_spill]] %s3715_s1  ;;  %p3150_p3 = por %p448_p2, %p447_p1 }
  0x18   : > { %p453_p4 = scmp.ne.s32.totalorder %s2972_s25, %s2968_s24  ;;  %p44_p5 = scmp.ge.s32.totalorder %s3717_s20, 2 }
  0x19   : > { %s3683_s21 = scalar_select %p3150_p3, 1, 0 }
  0x1a   : > { %p454_p6 = scmp.eq.s32.totalorder %s2307_s19, 3  ;;  %p2310_p7 = scmp.ge.s32.totalorder %s2996_s30, 1 }
  0x1b   : > { %3684 = sst [smem:[#allocation18_spill]] %s3683_s21  ;;  %p558_p8 = scmp.lt.s32.totalorder %s2996_s30, 5 }
  0x1c   : > { %s3719_s20 = smov (%p44_p5, %s3717_s20), 0  ;;  %p3160_p9 = por %p454_p6, %p453_p4 }
  0x1d   : > { %3685 = sst [smem:[#allocation19_spill]] %s3719_s20  ;;  %p559_p10 = pnand %p2310_p7, %p558_p8 }
  0x1e   : > { %s3686_s22 = scalar_select %p3160_p9, 1, 0 }
  0x1f   : > { %s434_s23 = ssub.s32 %s2992_s0, %s3719_s20  ;;  %s437_s18 = sadd.s32 1, %s2976_s26 }
  0x20   : > { %3687 = sst [smem:[#allocation20_spill]] %s3686_s22  ;;  %p435_p11 = scmp.eq.s32.totalorder %s434_s23, 0 }
  0x21   : > { %562 = sbr.rel (%p559_p10) target bundleno = 3323 (0xcfb), region = 88  ;;  %s3658_s19 = sand.u32 (!%p559_p10), 1, %s2972_s25  }
  0x22   : > { %s3168_s1 = scalar_select %p435_p11, %s2976_s26, %s437_s18  }
  0x23   : > { %p638_p12 = scmp.lt.s32.totalorder (!%p559_p10), %s2984_s28, 1  ;;  %s3174_s29 = sshll.u32 (!%p559_p10), %s3658_s19, 3 }
  0x24   : > { %3688 = sst [smem:[#allocation21_spill]] %s3168_s1  ;;  %s2314_s22 = sshll.u32 (!%p559_p10), %s2980_s27, 4 }
  0x25   : > { %p649_p13 = scmp.lt.s32.totalorder (!%p559_p10), %s2314_s22, 31  ;;  %s3689_s26 = sld [smem:[#allocation22_spill]] (!%p559_p10) }
  0x26   : > { %s3690_s21 = sld [smem:[#allocation23_spill]] (!%p559_p10)  ;;  %p668_p0 = scmp.lt.s32.totalorder (!%p559_p10), %s2980_s27, 1 }
  0x27   : > { %p2321_p1 = scmp.ne.s32.totalorder (!%p559_p10), %s2980_s27, 0 }
  0x28   : > { %s639_s20 = scalar_select %p638_p12, %s2984_s28, 1 }
  0x29   : > { %s3721_s22 = smov (!%p649_p13, %s2314_s22), 31  ;;  %vm822_vm0 = vcmask (!%p2321_p1), 7168   ;;  %v2998_v1 = vmov (!%p2321_p1), 0.0   ;;  %v2999_v2 = vmov (!%p2321_p1), -1e+30   ;;  %v2831_v3 = vld [vmem:[%s3632_s5] sm:$0xff] (!%p2321_p1)  }
  0x2a   : > { %s2312_s23 = sshll.u32 %s639_s20, 2  ;;  %s2315_s18 = sshll.u32 %s639_s20, 5  ;;  %2532 = vmatprep.subr.bf16.mxu0 (!%p2321_p1), %v2998_v1  ;;  %823 = vst.msk [vmem:[#allocation4] sm:$0xff] (!%p2321_p1), %vm822_vm0, %v2999_v2  ;;  %824 = vst.msk [vmem:[#allocation4 + $0x8] sm:$0xff] (!%p2321_p1), %vm822_vm0, %v2999_v2  ;;  %2544 = vmatprep.subr.bf16.mxu1 (!%p2321_p1), %v2998_v1  ;;  %v2832_v4 = vld [vmem:[%s3632_s5 + $0x8] sm:$0xff] (!%p2321_p1)   ;;  %vm3000_vm1 = vmmov (!%p2321_p1), 0  }
  0x2b   : > { %s641_s24 = scalar_lea.vmem %s3689_s26, %s2312_s23  ;;  %s652_s25 = sadd.s32 %s2315_s18, %s3721_s22  ;;  %825 = vst.msk [vmem:[#allocation5] sm:$0xff] (!%p2321_p1), %vm822_vm0, %v2998_v1  ;;  %826 = vst.msk [vmem:[#allocation5 + $0x8] sm:$0xff] (!%p2321_p1), %vm822_vm0, %v2998_v1  ;;  %2548 = vmatprep.mubr.msk.bf16.mxu1 (!%p2321_p1), %vm3000_vm1, %v2998_v1  ;;  %vm775_vm2 = vcmask (!%p2321_p1), 261120   ;;  %2540 = vmatprep.mubr.msk.bf16.mxu0 (!%p2321_p1), %vm3000_vm1, %v2998_v1  ;;  %v2833_v5 = vld [vmem:[%s3633_s6] sm:$0xff] (!%p2321_p1)   ;;  %v2835_v6 = vld [vmem:[%s3633_s6 + $0x8] sm:$0xff] (!%p2321_p1)   ;;  %vm711_vm3 = vcmask (!%p2321_p1), 523264  }
  0x2c   : > { %s3184_s15 = scalar_lea.vmem %s3690_s21, %s2312_s23  ;;  %v3187_v0 = vld [vmem:[%s641_s24] sm:$0xf]  ;;  %s2316_s19 = sshll.u32 %s652_s25, 2  ;;  %2533 = vmatpush3.bf16.msra.mxu0 (!%p2321_p1), %v2831_v3  ;;  %827 = vst.msk [vmem:[#allocation6] sm:$0xff] (!%p2321_p1), %vm775_vm2, %v2998_v1  ;;  %828 = vst.msk [vmem:[#allocation6 + $0x8] sm:$0xff] (!%p2321_p1), %vm775_vm2, %v2998_v1  ;;  %2545 = vmatpush3.bf16.msra.mxu1 (!%p2321_p1), %v2833_v5  ;;  %v2834_v7 = vld [vmem:[%s3632_s5 + $0x10] sm:$0xff] (!%p2321_p1)  }
  0x2d   : > { %s2320_s16 = sshll.u32 %s639_s20, 1  ;;  %s3192_s10 = scalar_lea.vmem %s3629_s2, %s2316_s19  ;;  %2534 = vmatprep.subr.bf16.mxu0 (!%p2321_p1), %v2998_v1  ;;  %2546 = vmatprep.subr.bf16.mxu1 (!%p2321_p1), %v2998_v1  ;;  %v758_v8 = vld [vmem:[%s3184_s15] sm:$0xf] (!%p2321_p1)  ;;  %v2836_v9 = vld [vmem:[%s3632_s5 + $0x18] sm:$0xff] (!%p2321_p1)   ;;  %vm820_vm4 = vcmask (!%p2321_p1), 257024   ;;  %vm756_vm5 = vcmask (!%p2321_p1), 519168  }
  0x2e   : > { %s3197_s26 = scalar_lea.vmem %s3630_s3, %s2316_s19  ;;  %s637_s25 = scalar_lea.vmem [#allocation7], %s3174_s29 }
  0x2f   : > { %s669_s0 = scalar_select %p668_p0, %s2980_s27, 1 }
  0x30   : > { %678 = sbr.rel (%p2321_p1) target bundleno = 274 (0x112), region = 92  ;;  %2535 = vmatpush3.bf16.msra.mxu0 (!%p2321_p1), %v2832_v4  ;;  %2547 = vmatpush3.bf16.msra.mxu1 (!%p2321_p1), %v2835_v6 }
  0x31   : > { %s3200_s17 = sadd.s32 %s2320_s16, %s669_s0  ;;  %2536 = vmatprep.subr.bf16.mxu0 (!%p2321_p1), %v2998_v1 }
  0x32   : > { %s672_s24 = scalar_lea.vmem %s3631_s4, %s3200_s17 }
  0x33   : > { %2549 = vmatmul.mubr.msk.bf16.vlgmr.msra.gmra.mrb[0].mxu1 (!%p2321_p1), %vm775_vm2, %v758_v8 }
  0x34   : > { %2537 = vmatpush3.bf16.msra.mxu0 (!%p2321_p1), %v2834_v7 }
  0x35   : > { %2538 = vmatprep.subr.bf16.mxu0 (!%p2321_p1), %v2998_v1 }
  0x38   : > { %2539 = vmatpush3.bf16.msra.mxu0 %v2836_v9 }
  0x3b   : > { %2541 = vmatmul.mubr.msk.bf16.vlgmr.msra.gmra.mrb[0].mxu0 %vm711_vm3, %v3187_v0 }
 0x106   : > { %v813_v10 = vpop.f32.mrb[0].mxu1 }
 0x107   : > { %v819_v11 = vpack.c.bf16 %v813_v10, %v813_v10  ;;  %v2550_v12 = vpop.f32.mrb[1].mxu1 }
 0x108   : > { %v816_v13 = vpop.f32.mrb[2].mxu1 }
 0x109   : > { %821 = vst.msk [vmem:[#allocation3] sm:$0xf] %vm820_vm4, %v819_v11  ;;  %v2551_v14 = vpop.f32.mrb[3].mxu1 }
 0x10e   : > { %v749_v15 = vpop.f32.mrb[0].mxu0 }
 0x10f   : > { %v755_v16 = vpack.c.bf16 %v749_v15, %v749_v15  ;;  %v2542_v17 = vpop.f32.mrb[1].mxu0 }
 0x110   : > { %v752_v18 = vpop.f32.mrb[2].mxu0 }
 0x111   : > { %757 = vst.msk [vmem:[#allocation2] sm:$0xf] %vm756_vm5, %v755_v16  ;;  %v2543_v19 = vpop.f32.mrb[3].mxu0 }
 0x112 PF: > { %v2839_v20 = vld [vmem:[%s3634_s7] sm:$0xff]   ;;  %v2841_v22 = vld [vmem:[%s3634_s7 + $0x8] sm:$0xff]   ;;  %vm903_vm6 = vcmask 261120   ;;  %v2847_v28 = vld [vmem:[%s3192_s10 + $0x10] sm:$0xff]   ;;  %v3001_v40 = vmov 0.0   ;;  %s3002_s20 = smov 96  }
 0x113   : > { %v2840_v21 = vld [vmem:[%s3635_s8] sm:$0xff]   ;;  %2552 = vmatprep.subr.bf16.mxu0 %v2839_v20  ;;  %v2842_v23 = vld [vmem:[%s3635_s8 + $0x8] sm:$0xff]   ;;  %v2849_v29 = vld [vmem:[%s3197_s26 + $0x10] sm:$0xff]   ;;  %vm3003_vm7 = vmmov 0   ;;  %vm1398_vm8 = vcmask 7168   ;;  %p2370_p2 = scmp.ne.s32.totalorder %s2980_s27, 1 }
 0x114   : > { %2572 = vmatprep.subr.bf16.mxu1 %v2840_v21  ;;  %2553 = vmatpush3.bf16.msra.mxu0 %v2839_v20  ;;  %v2843_v24 = vld [vmem:[%s3192_s10] sm:$0xff]   ;;  %v2845_v26 = vld [vmem:[%s3192_s10 + $0x8] sm:$0xff]   ;;  %v2848_v30 = vld [vmem:[%s3192_s10 + $0x18] sm:$0xff]   ;;  %s3006_s17 = smov (!%p2370_p2), 32   ;;  %s3691_s0 = sld [smem:[#allocation24_spill]] (!%p2370_p2)  ;;  %vm3009_vm9 = vmmov (!%p2370_p2), 0  }
 0x115   : > { %2573 = vmatpush3.bf16.msra.mxu1 %v2840_v21  ;;  %2554 = vmatprep.subr.bf16.mxu0 %v2841_v22  ;;  %v2844_v25 = vld [vmem:[%s3197_s26] sm:$0xff]   ;;  %v2846_v27 = vld [vmem:[%s3197_s26 + $0x8] sm:$0xff]   ;;  %v2850_v31 = vld [vmem:[%s3197_s26 + $0x18] sm:$0xff]   ;;  %s3694_s19 = sld [smem:[#allocation25_spill]] (!%p2370_p2)  ;;  %s3695_s1 = sld [smem:[#allocation27_spill]] (!%p2370_p2)  ;;  %vm2157_vm10 = vcmask (!%p2370_p2), 523264  }
 0x116   : > { %2574 = vmatprep.subr.bf16.mxu1 %v2842_v23  ;;  %2556 = vmatprep.mubr.msk.bf16.mxu0 %vm903_vm6, %v2843_v24  ;;  %v2851_v32 = vld [vmem:[%s3192_s10 + $0x20] sm:$0xff]   ;;  %v2852_v34 = vld [vmem:[%s3192_s10 + $0x28] sm:$0xff]   ;;  %v2855_v36 = vld [vmem:[%s3192_s10 + $0x30] sm:$0xff]   ;;  %s3696_s28 = sld [smem:[#allocation29_spill]] (!%p2370_p2)  ;;  %s3698_s21 = sld [smem:[#allocation28_spill]] (!%p2370_p2) }
 0x117   : > { %2576 = vmatprep.mubr.msk.bf16.mxu1 %vm903_vm6, %v2844_v25  ;;  %v2853_v33 = vld [vmem:[%s3197_s26 + $0x20] sm:$0xff]   ;;  %v2854_v35 = vld [vmem:[%s3197_s26 + $0x28] sm:$0xff]   ;;  %v2857_v37 = vld [vmem:[%s3197_s26 + $0x30] sm:$0xff]  }
 0x118   : > { %2555 = vmatpush3.bf16.msra.mxu0 %v2841_v22  ;;  %v2856_v38 = vld [vmem:[%s3192_s10 + $0x38] sm:$0xff]   ;;  %v2859_v41 = vld [vmem:[#allocation2] ss:$0 sps:$4 sm:$0xff]   ;;  %s3693_s10 = sld [smem:[#allocation26_spill]] (!%p2370_p2) }
 0x119   : > { %2575 = vmatpush3.bf16.msra.mxu1 %v2842_v23  ;;  %v2858_v39 = vld [vmem:[%s3197_s26 + $0x38] sm:$0xff]   ;;  %2592 = vmatprep.subr.bf16.mxu0 %v3001_v40 }
 0x11a   : > { %2612 = vmatprep.subr.bf16.mxu1 %v3001_v40  ;;  %1487 = vrot.lane.b32.xlu0 %v2859_v41, %s3002_s20  ;;  %s3692_s15 = smov (!%p2370_p2), %s3691_s0 }
 0x11b   : > { %2557 = vmatmul.mubr.msk.bf16.vlgmr.msra.gmra.mrb[0].mxu0 %vm903_vm6, %v2845_v26 }
 0x11c   : > { %2577 = vmatmul.mubr.msk.bf16.vlgmr.msra.gmra.mrb[0].mxu1 %vm903_vm6, %v2846_v27  ;;  %2560 = vmatprep.mubr.msk.bf16.mxu0 %vm903_vm6, %v2847_v28 }
 0x11d   : > { %2580 = vmatprep.mubr.msk.bf16.mxu1 %vm903_vm6, %v2849_v29 }
 0x123   : > { %2561 = vmatmul.mubr.msk.bf16.gmra.mrb[4].mxu0 %vm903_vm6, %v2848_v30 }
 0x124   : > { %2581 = vmatmul.mubr.msk.bf16.gmra.mrb[4].mxu1 %vm903_vm6, %v2850_v31  ;;  %2564 = vmatprep.mubr.msk.bf16.mxu0 %vm903_vm6, %v2851_v32 }
 0x125   : > { %2584 = vmatprep.mubr.msk.bf16.mxu1 %vm903_vm6, %v2853_v33 }
 0x12b   : > { %2565 = vmatmul.mubr.msk.bf16.gmra.mrb[8].mxu0 %vm903_vm6, %v2852_v34 }
 0x12c   : > { %2585 = vmatmul.mubr.msk.bf16.gmra.mrb[8].mxu1 %vm903_vm6, %v2854_v35  ;;  %2568 = vmatprep.mubr.msk.bf16.mxu0 %vm903_vm6, %v2855_v36 }
 0x12d   : > { %2588 = vmatprep.mubr.msk.bf16.mxu1 %vm903_vm6, %v2857_v37 }
 0x133   : > { %2569 = vmatmul.mubr.msk.bf16.gmra.mrb[12].mxu0 %vm903_vm6, %v2856_v38 }
 0x134   : > { %2589 = vmatmul.mubr.msk.bf16.gmra.mrb[12].mxu1 %vm903_vm6, %v2858_v39  ;;  %2608 = vmatprep.mubr.msk.bf16.mxu0 %vm3003_vm7, %v3001_v40 }
 0x135   : > { %2628 = vmatprep.mubr.msk.bf16.mxu1 %vm3003_vm7, %v3001_v40 }
 0x1ee   : > { %v2558_v42 = vpop.f32.mrb[0].mxu0 }
 0x1ef   : > { %v2578_v43 = vpop.f32.mrb[0].mxu1  ;;  %v962_v44 = vpop.f32.mrb[1].mxu0 }
 0x1f0   : > { %v1163_v45 = vpop.f32.mrb[1].mxu1  ;;  %v2559_v46 = vpop.f32.mrb[2].mxu0 }
 0x1f1   : > { %v3282_v47 = vpack.c.bf16 %v2559_v46, %v2558_v42  ;;  %v2579_v48 = vpop.f32.mrb[2].mxu1  ;;  %v965_v49 = vpop.f32.mrb[3].mxu0 }
 0x1f2   : > { %v1227_v50 = vpack.c.bf16 %v2579_v48, %v2578_v43  ;;  %v1025_v51 = vpack.c.bf16 %v965_v49, %v962_v44  ;;  %v1166_v52 = vpop.f32.mrb[3].mxu1  ;;  %v1302_v44 = vld [vmem:[#allocation2] sm:$0xf]  ;;  %v1488_v48 = vpop.permute.xlu0 %1487  ;;  %v1372_v49 = vlaneseq }
 0x1f3   : > { %v1226_v53 = vpack.c.bf16 %v1166_v52, %v1163_v45  ;;  %v3299_v6 = vsel %vm903_vm6, %v3282_v47, 0  ;;  %v1234_v45 = vld [vmem:[#allocation3] sm:$0xf] }
 0x1f4   : > { %v3285_v54 = vsel %vm903_vm6, %v1025_v51, 0  ;;  %1416 = vrot.lane.b32.xlu1 %v1025_v51, %s3002_s20  ;;  %v1242_v4 = vsel %vm903_vm6, %v1227_v50, 0  ;;  %v1373_v50 = vshrl.u32 %v1372_v49, 7  ;;  %v845_v51 = vld [vmem:[%s672_s24] sm:$0x1]  ;;  %v1400_v49 = vld [vmem:[#allocation6] sm:$0xff] }
 0x1f5   : > { %v1239_v55 = vsel %vm903_vm6, %v1226_v53, 0  ;;  %2613 = vmatpush3.bf16.xpose.msra.mxu1 %v3285_v54  ;;  %v846_v52 = vmul.f32 1e+09, %v845_v51  ;;  %s3007_s24 = smov (!%p2370_p2), 96  }
 0x1f6   : > { %2593 = vmatpush3.bf16.xpose.msra.mxu0 %v1239_v55  ;;  %v2562_v56 = vpop.f32.mrb[4].mxu0  ;;  %2614 = vmatprep.subr.bf16.mxu1 %v3001_v40  ;;  %v1374_v53 = vsub.s32 0, %v1373_v50 }
 0x1f7   : > { %v978_v57 = vpop.f32.mrb[5].mxu0  ;;  %2594 = vmatprep.subr.bf16.mxu0 %v3001_v40  ;;  %v2582_v58 = vpop.f32.mrb[4].mxu1 }
 0x1f8   : > { %v2563_v59 = vpop.f32.mrb[6].mxu0  ;;  %v1179_v60 = vpop.f32.mrb[5].mxu1 }
 0x1f9   : > { %v3292_v61 = vpack.c.bf16 %v2563_v59, %v2562_v56  ;;  %v981_v62 = vpop.f32.mrb[7].mxu0  ;;  %v2583_v63 = vpop.f32.mrb[6].mxu1  ;;  %v1375_v59 = vrot.slane %v846_v52, %v1374_v53 }
 0x1fa   : > { %v3294_v1 = vpack.c.bf16 %v981_v62, %v978_v57  ;;  %v1229_v2 = vpack.c.bf16 %v2583_v63, %v2582_v58  ;;  %v1182_v3 = vpop.f32.mrb[7].mxu1 }
 0x1fb   : > { %v1228_v5 = vpack.c.bf16 %v1182_v3, %v1179_v60  ;;  %v1316_v34 = vsel %vm903_vm6, %v3292_v61, 0 }
 0x1fc   : > { %v1313_v20 = vsel %vm903_vm6, %v3294_v1, 0  ;;  %v1248_v32 = vsel %vm903_vm6, %v1229_v2, 0 }
 0x1fd   : > { %2615 = vmatpush3.bf16.xpose.msra.mxu1 %v3299_v6  ;;  %v1245_v18 = vsel %vm903_vm6, %v1228_v5, 0  ;;  %v3004_v5 = vmov 0  }
 0x1fe   : > { %2595 = vmatpush3.bf16.xpose.msra.mxu0 %v1242_v4  ;;  %2616 = vmatprep.subr.bf16.mxu1 %v3001_v40  ;;  %v2566_v7 = vpop.f32.mrb[8].mxu0 }
 0x1ff   : > { %2596 = vmatprep.subr.bf16.mxu0 %v3001_v40  ;;  %v994_v8 = vpop.f32.mrb[9].mxu0  ;;  %v2586_v9 = vpop.f32.mrb[8].mxu1  ;;  %2837 = vset.pattern.permute.xlu1 %v3004_v5 }
 0x200   : > { %v2567_v10 = vpop.f32.mrb[10].mxu0  ;;  %v1195_v11 = vpop.f32.mrb[9].mxu1  ;;  %2838 = vset.pattern.permute.xlu0 %v3004_v5 }
 0x201   : > { %v3304_v12 = vpack.c.bf16 %v2567_v10, %v2566_v7  ;;  %v997_v13 = vpop.f32.mrb[11].mxu0  ;;  %v2587_v14 = vpop.f32.mrb[10].mxu1 }
 0x202   : > { %v3306_v15 = vpack.c.bf16 %v997_v13, %v994_v8  ;;  %v1231_v16 = vpack.c.bf16 %v2587_v14, %v2586_v9  ;;  %v1198_v17 = vpop.f32.mrb[11].mxu1  ;;  %v1378_v14 = vld [vmem:[#allocation4] sm:$0xff] }
 0x203   : > { %v1230_v19 = vpack.c.bf16 %v1198_v17, %v1195_v11  ;;  %v1322_v38 = vsel %vm903_vm6, %v3304_v12, 0 }
 0x204   : > { %v1319_v36 = vsel %vm903_vm6, %v3306_v15, 0  ;;  %v1254_v37 = vsel %vm903_vm6, %v1231_v16, 0 }
 0x205   : > { %2617 = vmatpush3.bf16.xpose.msra.mxu1 %v1313_v20  ;;  %v1251_v35 = vsel %vm903_vm6, %v1230_v19, 0 }
 0x206   : > { %2597 = vmatpush3.bf16.xpose.msra.mxu0 %v1245_v18  ;;  %2618 = vmatprep.subr.bf16.mxu1 %v3001_v40  ;;  %v2570_v21 = vpop.f32.mrb[12].mxu0 }
 0x207   : > { %2598 = vmatprep.subr.bf16.mxu0 %v3001_v40  ;;  %v1010_v22 = vpop.f32.mrb[13].mxu0  ;;  %v2590_v23 = vpop.f32.mrb[12].mxu1 }
 0x208   : > { %v2571_v24 = vpop.f32.mrb[14].mxu0  ;;  %v1211_v25 = vpop.f32.mrb[13].mxu1 }
 0x209   : > { %v3313_v26 = vpack.c.bf16 %v2571_v24, %v2570_v21  ;;  %v1013_v27 = vpop.f32.mrb[15].mxu0  ;;  %v2591_v28 = vpop.f32.mrb[14].mxu1 }
 0x20a   : > { %v3315_v29 = vpack.c.bf16 %v1013_v27, %v1010_v22  ;;  %v1233_v30 = vpack.c.bf16 %v2591_v28, %v2590_v23  ;;  %v1214_v31 = vpop.f32.mrb[15].mxu1 }
 0x20b   : > { %v1232_v33 = vpack.c.bf16 %v1214_v31, %v1211_v25  ;;  %v1328_v43 = vsel %vm903_vm6, %v3313_v26, 0 }
 0x20c   : > { %v1325_v41 = vsel %vm903_vm6, %v3315_v29, 0  ;;  %v1260_v42 = vsel %vm903_vm6, %v1233_v30, 0 }
 0x20d   : > { %2619 = vmatpush3.bf16.xpose.msra.mxu1 %v1316_v34  ;;  %v1257_v39 = vsel %vm903_vm6, %v1232_v33, 0 }
 0x20e   : > { %2599 = vmatpush3.bf16.xpose.msra.mxu0 %v1248_v32  ;;  %2620 = vmatprep.subr.bf16.mxu1 %v3001_v40 }
 0x20f   : > { %2600 = vmatprep.subr.bf16.mxu0 %v3001_v40 }
 0x215   : > { %2621 = vmatpush3.bf16.xpose.msra.mxu1 %v1319_v36 }
 0x216   : > { %2601 = vmatpush3.bf16.xpose.msra.mxu0 %v1251_v35  ;;  %2622 = vmatprep.subr.bf16.mxu1 %v3001_v40 }
 0x217   : > { %2602 = vmatprep.subr.bf16.mxu0 %v3001_v40 }
 0x21d   : > { %2623 = vmatpush3.bf16.xpose.msra.mxu1 %v1322_v38 }
 0x21e   : > { %2603 = vmatpush3.bf16.xpose.msra.mxu0 %v1254_v37  ;;  %2624 = vmatprep.subr.bf16.mxu1 %v3001_v40 }
 0x21f   : > { %2604 = vmatprep.subr.bf16.mxu0 %v3001_v40 }
 0x225   : > { %2625 = vmatpush3.bf16.xpose.msra.mxu1 %v1325_v41 }
 0x226   : > { %2605 = vmatpush3.bf16.xpose.msra.mxu0 %v1257_v39  ;;  %2626 = vmatprep.subr.bf16.mxu1 %v3001_v40  ;;  %v1393_v39 = vld [vmem:[#allocation5] sm:$0xff] }
 0x227   : > { %2606 = vmatprep.subr.bf16.mxu0 %v3001_v40 }
 0x22d   : > { %2627 = vmatpush3.bf16.xpose.msra.mxu1 %v1328_v43 }
 0x22e   : > { %2607 = vmatpush3.bf16.xpose.msra.mxu0 %v1260_v42  ;;  %2652 = vmatprep.subr.bf16.mxu1 %v3001_v40 }
 0x22f   : > { %2632 = vmatprep.subr.bf16.mxu0 %v3001_v40 }
 0x234   : > { %2629 = vmatmul.mubr.msk.bf16.vlgmr.msra.gmra.mrb[16].mxu1 %vm903_vm6, %v1302_v44 }
 0x235   : > { %2609 = vmatmul.mubr.msk.bf16.vlgmr.msra.gmra.mrb[16].mxu0 %vm903_vm6, %v1234_v45  ;;  %2653 = vmatpush3.bf16.xpose.msra.mxu1 %v3285_v54  ;;  %v1551_v45 = vld [vmem:[#allocation5 + $0x8] sm:$0xff] }
 0x236   : > { %2654 = vmatprep.subr.bf16.mxu1 %v3001_v40  ;;  %2668 = vmatprep.mubr.msk.bf16.mxu1 %vm3003_vm7, %v3001_v40 }
 0x237   : > { %2648 = vmatprep.mubr.msk.bf16.mxu0 %vm3003_vm7, %v3001_v40 }
 0x23d   : > { %2655 = vmatpush3.bf16.xpose.msra.mxu1 %v3299_v6 }
 0x23e   : > { %2656 = vmatprep.subr.bf16.mxu1 %v3001_v40 }
 0x245   : > { %2657 = vmatpush3.bf16.xpose.msra.mxu1 %v1313_v20 }
 0x246   : > { %2658 = vmatprep.subr.bf16.mxu1 %v3001_v40 }
 0x24d   : > { %2659 = vmatpush3.bf16.xpose.msra.mxu1 %v1316_v34 }
 0x24e   : > { %2660 = vmatprep.subr.bf16.mxu1 %v3001_v40 }
 0x255   : > { %2661 = vmatpush3.bf16.xpose.msra.mxu1 %v1319_v36 }
 0x256   : > { %2662 = vmatprep.subr.bf16.mxu1 %v3001_v40 }
 0x25d   : > { %2663 = vmatpush3.bf16.xpose.msra.mxu1 %v1322_v38 }
 0x25e   : > { %2664 = vmatprep.subr.bf16.mxu1 %v3001_v40 }
 0x265   : > { %2665 = vmatpush3.bf16.xpose.msra.mxu1 %v1325_v41 }
 0x266   : > { %v3356_v46 = vpop.permute.xlu1 %1416  ;;  %2666 = vmatprep.subr.bf16.mxu1 %v3001_v40 }
 0x267   : > { %2633 = vmatpush3.bf16.msra.mxu0 %v3356_v46 }
 0x268   : > { %2634 = vmatprep.subr.bf16.mxu0 %v3001_v40 }
 0x26d   : > { %2667 = vmatpush3.bf16.xpose.msra.mxu1 %v1328_v43 }
 0x274   : > { %2669 = vmatmul.mubr.msk.bf16.vlgmr.msra.gmra.mrb[20].mxu1 %vm903_vm6, %v1488_v48 }
 0x307   : > { %v1364_v54 = vpop.f32.mrb[16].mxu1 }
 0x308   : > { %v1296_v55 = vpop.f32.mrb[16].mxu0  ;;  %v2630_v56 = vpop.f32.mrb[17].mxu1 }
 0x309   : > { %v1365_v57 = vadd.f32 %v1364_v54, %v1296_v55  ;;  %v1367_v58 = vpop.f32.mrb[18].mxu1  ;;  %v2610_v60 = vpop.f32.mrb[17].mxu0  ;;  %v1558_v56 = vld [vmem:[#allocation6 + $0x8] sm:$0xff] }
 0x30a   : > { %v2631_v62 = vpop.f32.mrb[19].mxu1  ;;  %v1299_v63 = vpop.f32.mrb[18].mxu0 }
 0x30b   : > { %v1370_v2 = vmul.f32 0.125, %v1365_v57  ;;  %v2611_v3 = vpop.f32.mrb[19].mxu0 }
 0x30d   : > { %v1377_v4 = vsub.f32 %v1370_v2, %v1375_v59 }
 0x30f   : > { %1379 = vmax.xlane.f32.xlu0 %v1377_v4 }
 0x325   : > { %1424 = vrot.lane.b32.xlu0 %v3306_v15, %s3002_s20 }
 0x347   : > { %v1526_v6 = vpop.f32.mrb[20].mxu1 }
 0x348   : > { %v1527_v7 = vadd.f32 %v1526_v6, %v1296_v55  ;;  %v2670_v8 = vpop.f32.mrb[21].mxu1 }
 0x349   : > { %v1529_v9 = vpop.f32.mrb[22].mxu1 }
 0x34a   : > { %v1532_v10 = vmul.f32 0.125, %v1527_v7  ;;  %v2671_v11 = vpop.f32.mrb[23].mxu1  ;;  %v1613_v9 = vunpack.c.l.bf16 (!%p2370_p2), %v3187_v0 }
 0x34c   : > { %v3369_v13 = vsub.f32 %v1532_v10, %v1375_v59 }
 0x34e   : > { %1536 = vmax.xlane.f32.xlu1 %v3369_v13 }
 0x35f   : > { %1418 = vrot.lane.b32.xlu1 %v3282_v47, %s3002_s20 }
 0x363   : > { %1420 = vrot.lane.b32.xlu1 %v3294_v1, %s3002_s20  ;;  %v1535_v1 = vld [vmem:[#allocation4 + $0x8] sm:$0xff] }
 0x39c   : > { %v1380_v16 = vpop.xlane.xlu0 %1379 }
 0x39d   : > { %v1381_v15 = vmax.f32 %v1378_v14, %v1380_v16  ;;  %v2390_v16 = vld [vmem:[%s3640_s13 + $0x1] ss:$0 sm:$0xff] (!%p2370_p2) }
 0x39f   : > { %v1382_v17 = vsub.f32 %v1378_v14, %v1381_v15  ;;  %1482 = vst.msk [vmem:[#allocation4] sm:$0xff] %vm1398_vm8, %v1381_v15  ;;  %1387 = vperm.xlu1 %2837, %v1381_v15  }
 0x3a1   : > { %v1383_v18 = vmul.f32 1.442695, %v1382_v17 }
 0x3a3   : > { %2860 = vpow2.f32 %v1383_v18  ;;  %1422 = vrot.lane.b32.xlu1 %v3292_v61, %s3002_s20 }
 0x3a7   : > { %1426 = vrot.lane.b32.xlu1 %v3304_v12, %s3002_s20 }
 0x3ab   : > { %1428 = vrot.lane.b32.xlu1 %v3315_v29, %s3002_s20 }
 0x3ad   : > { %v3383_v47 = vpop.eup %2860 }
 0x3ae   : > { %1403 = vperm.xlu0 %2838, %v3383_v47   ;;  %v1394_v41 = vmul.f32 %v3383_v47, %v1393_v39 }
 0x3af   : > { %1430 = vrot.lane.b32.xlu1 %v3313_v26, %s3002_s20  ;;  %v1425_v26 = vpop.permute.xlu0 %1424  ;;  %s3697_s20 = smov (!%p2370_p2), %s3696_s28 }
 0x3db   : > { %v1537_v19 = vpop.xlane.xlu1 %1536 }
 0x3dc   : > { %v1538_v20 = vmax.f32 %v1535_v1, %v1537_v19 }
 0x3de   : > { %v1539_v21 = vsub.f32 %v1535_v1, %v1538_v20  ;;  %1608 = vst.msk [vmem:[#allocation4 + $0x8] sm:$0xff] %vm1398_vm8, %v1538_v20  ;;  %1544 = vperm.xlu1 %2837, %v1538_v20  }
 0x3df   : > { %v1419_v61 = vpop.permute.xlu1 %1418 }
 0x3e0   : > { %2635 = vmatpush3.bf16.msra.mxu0 %v1419_v61  ;;  %v1540_v30 = vmul.f32 1.442695, %v1539_v21  ;;  %v2391_v21 = vld [vmem:[%s3641_s14 + $0x1] ss:$0 sm:$0xff] (!%p2370_p2) }
 0x3e1   : > { %2636 = vmatprep.subr.bf16.mxu0 %v3001_v40 }
 0x3e3   : > { %v1421_v12 = vpop.permute.xlu1 %1420 }
 0x3e4   : > { %2637 = vmatpush3.bf16.msra.mxu0 %v1421_v12 }
 0x3e5   : > { %2638 = vmatprep.subr.bf16.mxu0 %v3001_v40 }
 0x41e   : > { %v1388_v22 = vpop.permute.xlu1 %1387 }
 0x41f   : > { %v1390_v23 = vsub.f32 %v1377_v4, %v1388_v22  ;;  %v3005_v4 = vmov (!%p2370_p2), 0  }
 0x420   : > { %2868 = vset.pattern.permute.xlu0 (!%p2370_p2), %v3005_v4 }
 0x421   : > { %v1391_v24 = vmul.f32 1.442695, %v1390_v23 }
 0x422   : > { %v1423_v25 = vpop.permute.xlu1 %1422 }
 0x423   : > { %2862 = vpow2.f32 %v1391_v24  ;;  %2639 = vmatpush3.bf16.msra.mxu0 %v1423_v25 }
 0x424   : > { %2640 = vmatprep.subr.bf16.mxu0 %v3001_v40  ;;  %2864 = vpow2.f32 %v1540_v30 }
 0x426   : > { %v1427_v27 = vpop.permute.xlu1 %1426 }
 0x427   : > { %2641 = vmatpush3.bf16.msra.mxu0 %v1425_v26 }
 0x428   : > { %2642 = vmatprep.subr.bf16.mxu0 %v3001_v40 }
 0x42a   : > { %v1429_v28 = vpop.permute.xlu1 %1428 }
 0x42b   : > { %2643 = vmatpush3.bf16.msra.mxu0 %v1427_v27 }
 0x42c   : > { %2644 = vmatprep.subr.bf16.mxu0 %v3001_v40 }
 0x42d   : > { %v2863_v29 = vpop.eup %2862  ;;  %v1404_v44 = vpop.permute.xlu0 %1403 }
 0x42e   : > { %1395 = vadd.xlane.f32.xlu1 %v2863_v29  ;;  %v1431_v31 = vpop.permute.xlu1 %1430  ;;  %v1407_v32 = vpack.c.bf16 %v2863_v29, %v2863_v29  ;;  %v2865_v33 = vpop.eup %2864  ;;  %v1406_v50 = vmul.f32 %v1404_v44, %v1400_v49  ;;  %v2872_v44 = vld [vmem:[%s3692_s15] sm:$0xff] (!%p2370_p2)   ;;  %v2876_v49 = vld [vmem:[%s3693_s10 + $0x50] sm:$0xff] (!%p2370_p2)  }
 0x42f   : > { %2645 = vmatpush3.bf16.msra.mxu0 %v1429_v28 }
 0x430   : > { %2646 = vmatprep.subr.bf16.mxu0 %v3001_v40 }
 0x433   : > { %2647 = vmatpush3.bf16.msra.mxu0 %v1431_v31 }
 0x434   : > { %2672 = vmatprep.subr.bf16.mxu0 %v3001_v40 }
 0x436   : > { %2649 = vmatmul.mubr.bf16.vlgmr.msra.gmra.mrb[20].mxu0 %v1407_v32 }
 0x437   : > { %2673 = vmatpush3.bf16.msra.mxu0 %v3356_v46  ;;  %2688 = vmatprep.mubr.msk.bf16.mxu0 %vm3003_vm7, %v3001_v40 }
 0x438   : > { %2674 = vmatprep.subr.bf16.mxu0 %v3001_v40 }
 0x43b   : > { %2675 = vmatpush3.bf16.msra.mxu0 %v1419_v61 }
 0x43c   : > { %2676 = vmatprep.subr.bf16.mxu0 %v3001_v40 }
 0x43f   : > { %1561 = vperm.xlu1 %2837, %v2865_v33   ;;  %2677 = vmatpush3.bf16.msra.mxu0 %v1421_v12 }
 0x440   : > { %2678 = vmatprep.subr.bf16.mxu0 %v3001_v40 }
 0x443   : > { %2679 = vmatpush3.bf16.msra.mxu0 %v1423_v25  ;;  %2869 = vset.pattern.permute.xlu1 (!%p2370_p2), %v3005_v4  ;;  %v2882_v4 = vld [vmem:[%s3693_s10] sm:$0xff] (!%p2370_p2)  }
 0x444   : > { %2680 = vmatprep.subr.bf16.mxu0 %v3001_v40 }
 0x447   : > { %2681 = vmatpush3.bf16.msra.mxu0 %v1425_v26  ;;  %v2870_v26 = vld [vmem:[%s3691_s0 + $0x10] sm:$0xff] (!%p2370_p2)  }
 0x448   : > { %2682 = vmatprep.subr.bf16.mxu0 %v3001_v40 }
 0x44b   : > { %2683 = vmatpush3.bf16.msra.mxu0 %v1427_v27  ;;  %v3008_v27 = vmov (!%p2370_p2), 0.0  }
 0x44c   : > { %2684 = vmatprep.subr.bf16.mxu0 %v3001_v40  ;;  %2692 = vmatprep.subr.bf16.mxu1 (!%p2370_p2), %v3008_v27 }
 0x44d   : > { %2696 = vmatprep.mubr.msk.bf16.mxu1 (!%p2370_p2), %vm3009_vm9, %v3008_v27  ;;  %2693 = vmatpush3.bf16.msra.mxu1 (!%p2370_p2), %v2872_v44 }
 0x44e   : > { %2694 = vmatprep.subr.bf16.mxu1 (!%p2370_p2), %v3008_v27 }
 0x44f   : > { %2685 = vmatpush3.bf16.msra.mxu0 %v1429_v28  ;;  %v2871_v28 = vld [vmem:[%s3692_s15 + $0x18] sm:$0xff] (!%p2370_p2)  }
 0x450   : > { %2686 = vmatprep.subr.bf16.mxu0 %v3001_v40  ;;  %v1552_v40 = vmul.f32 %v2865_v33, %v1551_v45  ;;  %v2873_v45 = vld [vmem:[%s3692_s15 + $0x8] sm:$0xff] (!%p2370_p2)  }
 0x451   : > { %2695 = vmatpush3.bf16.msra.mxu1 (!%p2370_p2), %v2873_v45 }
 0x452   : > { %2700 = vmatprep.subr.bf16.mxu1 (!%p2370_p2), %v3008_v27 }
 0x453   : > { %2687 = vmatpush3.bf16.msra.mxu0 %v1431_v31 }
 0x454   : > { %2720 = vmatprep.subr.bf16.mxu0 (!%p2370_p2), %v3008_v27 }
 0x45d   : > { %v1545_v34 = vpop.permute.xlu1 %1544 }
 0x45e   : > { %v1547_v35 = vsub.f32 %v3369_v13, %v1545_v34 }
 0x460   : > { %v1548_v36 = vmul.f32 1.442695, %v1547_v35 }
 0x462   : > { %2866 = vpow2.f32 %v1548_v36 }
 0x46c   : > { %v2867_v37 = vpop.eup %2866 }
 0x46d   : > { %1553 = vadd.xlane.f32.xlu0 %v2867_v37  ;;  %v1565_v38 = vpack.c.bf16 %v2867_v37, %v2867_v37 }
 0x46f   : > { %2689 = vmatmul.mubr.bf16.vlgmr.msra.gmra.mrb[24].mxu0 %v1565_v38 }
 0x470   : > { %2724 = vmatprep.mubr.msk.bf16.mxu0 (!%p2370_p2), %vm3009_vm9, %v3008_v27  ;;  %2721 = vmatpush3.bf16.msra.mxu0 (!%p2370_p2), %v2870_v26 }
 0x471   : > { %2722 = vmatprep.subr.bf16.mxu0 (!%p2370_p2), %v3008_v27 }
 0x474   : > { %2723 = vmatpush3.bf16.msra.mxu0 (!%p2370_p2), %v2871_v28 }
 0x475   : > { %2728 = vmatprep.subr.bf16.mxu0 (!%p2370_p2), %v3008_v27 }
 0x4bb   : > { %v1396_v42 = vpop.xlane.xlu1 %1395 }
 0x4bc   : > { %v1397_v43 = vadd.f32 %v1396_v42, %v1394_v41 }
 0x4be   : > { %1399 = vst.msk [vmem:[#allocation5] sm:$0xff] %vm1398_vm8, %v1397_v43 }
 0x4bf   : > { %v1562_v57 = vpop.permute.xlu1 %1561 }
 0x4c0   : > { %v1564_v58 = vmul.f32 %v1562_v57, %v1558_v56  ;;  %v2371_v57 = vld [vmem:[%s3640_s13] ss:$0 sm:$0xff] (!%p2370_p2) }
 0x4c5   : > { %v1615_v15 = vld [vmem:[#allocation5] sm:$0xff] (!%p2370_p2) }
 0x4fa   : > { %v1554_v46 = vpop.xlane.xlu0 %1553 }
 0x4fb   : > { %v1555_v48 = vadd.f32 %v1554_v46, %v1552_v40  ;;  %v2874_v40 = vld [vmem:[%s3693_s10 + $0x40] sm:$0xff] (!%p2370_p2)  }
 0x4fd   : > { %1556 = vst.msk [vmem:[#allocation5 + $0x8] sm:$0xff] %vm1398_vm8, %v1555_v48  ;;  %v2875_v48 = vld [vmem:[%s3693_s10 + $0x48] sm:$0xff] (!%p2370_p2)  }
 0x504   : > { %v1865_v3 = vld [vmem:[#allocation5 + $0x8] sm:$0xff] (!%p2370_p2) }
 0x505   : > { %2890 = vrcp.f32 (!%p2370_p2), %v1865_v3  ;;  %v2881_v3 = vld [vmem:[%s3693_s10 + $0x78] sm:$0xff] (!%p2370_p2)  }
 0x506   : > { %2892 = vrcp.f32 (!%p2370_p2), %v1615_v15 }
 0x509   : > { %v1474_v51 = vpop.f32.mrb[20].mxu0 }
 0x50a   : > { %v1480_v52 = vadd.f32 %v1474_v51, %v1406_v50  ;;  %v2650_v53 = vpop.f32.mrb[21].mxu0  ;;  %v2877_v50 = vld [vmem:[%s3693_s10 + $0x58] sm:$0xff] (!%p2370_p2)   ;;  %v2878_v51 = vld [vmem:[%s3693_s10 + $0x60] sm:$0xff] (!%p2370_p2)  }
 0x50b   : > { %v1477_v54 = vpop.f32.mrb[22].mxu0 }
 0x50c   : > { %1481 = vst.msk [vmem:[#allocation6] sm:$0xff] %vm903_vm6, %v1480_v52  ;;  %v2651_v55 = vpop.f32.mrb[23].mxu0  ;;  %v2879_v52 = vld [vmem:[%s3693_s10 + $0x68] sm:$0xff] (!%p2370_p2)  }
 0x50f   : > { %v2891_v5 = vpop.eup (!%p2370_p2), %2890 }
 0x510   : > { %1869 = vperm.xlu0 (!%p2370_p2), %2868, %v2891_v5   ;;  %v2893_v17 = vpop.eup (!%p2370_p2), %2892  ;;  %v2883_v5 = vld [vmem:[%s3693_s10 + $0x8] sm:$0xff] (!%p2370_p2)  }
 0x513   : > { %v1614_v12 = vld [vmem:[#allocation6] sm:$0xff] (!%p2370_p2) }
 0x53f   : > { %1612 = sbr.rel (%p2370_p2) target bundleno = 3297 (0xce1), region = 96 }
 0x542   : > { %v1600_v59 = vpop.f32.mrb[24].mxu0 }
 0x543   : > { %v1606_v60 = vadd.f32 %v1600_v59, %v1564_v58  ;;  %v2690_v62 = vpop.f32.mrb[25].mxu0  ;;  %v2372_v59 = vld [vmem:[%s3641_s14] ss:$0 sm:$0xff] (!%p2370_p2) }
 0x544   : > { %v1603_v63 = vpop.f32.mrb[26].mxu0  ;;  %v2880_v62 = vld [vmem:[%s3693_s10 + $0x70] sm:$0xff] (!%p2370_p2)  }
 0x545   : > { %1607 = vst.msk [vmem:[#allocation6 + $0x8] sm:$0xff] %vm903_vm6, %v1606_v60  ;;  %v2691_v2 = vpop.f32.mrb[27].mxu0 }
 0x54c   : > { %v1864_v6 = vld [vmem:[#allocation6 + $0x8] sm:$0xff] }
 0x58f   : > { %v1870_v7 = vpop.permute.xlu0 %1869 }
 0x590   : > { %v1872_v8 = vmul.f32 %v1870_v7, %v1864_v6  ;;  %v2884_v6 = vld [vmem:[%s3693_s10 + $0x10] sm:$0xff]   ;;  %v2885_v7 = vld [vmem:[%s3693_s10 + $0x18] sm:$0xff]  }
 0x592   : > { %1874 = vrot.lane.b32.xlu0 %v1872_v8, %s3006_s17  ;;  %v2886_v8 = vld [vmem:[%s3693_s10 + $0x20] sm:$0xff]  }
 0x604   : > { %v1875_v10 = vpop.permute.xlu0 %1874 }
 0x605   : > { %v1877_v11 = vadd.f32 %v1875_v10, %v1613_v9  ;;  %v2888_v10 = vld [vmem:[%s3693_s10 + $0x30] sm:$0xff]  }
 0x607   : > { %1883 = vrot.lane.b32.xlu1 %v1877_v11, %s3007_s24 }
 0x679   : > { %v1884_v13 = vpop.permute.xlu1 %1883 }
 0x67a   : > { %v1886_v14 = vsel %vm903_vm6, %v1884_v13, 0.0  ;;  %v2397_v13 = vld [vmem:[%s3694_s19 + $0x1] ss:$0 sm:$0xff] }
 0x67b   : > { %1887 = vadd.xlane.f32.xlu1 %v1886_v14 }
 0x68c   : > { %1908 = vrot.lane.b32.xlu1 %v2390_v16, %s3006_s17 }
 0x690   : > { %1619 = vperm.xlu1 %2869, %v2893_v17  }
 0x708   : > { %v1888_v0 = vpop.xlane.xlu1 %1887 }
 0x709   : > { %v1889_v18 = vmul.f32 0.03125, %v1888_v0 }
 0x70b   : > { %v1890_v47 = vsub.f32 %v1877_v11, %v1889_v18  ;;  %v2889_v11 = vld [vmem:[%s3693_s10 + $0x38] sm:$0xff]  }
 0x70c   : > { %v1909_v61 = vpop.permute.xlu1 %1908 }
 0x70d   : > { %v1891_v1 = vmul.f32 %v1890_v47, %v1890_v47 }
 0x70f   : > { %1893 = vrot.lane.b32.xlu0 %v1891_v1, %s3007_s24  ;;  %v2373_v1 = vld [vmem:[%s3694_s19] ss:$0 sm:$0xff] }
 0x710   : > { %v1620_v22 = vpop.permute.xlu1 %1619 }
 0x711   : > { %v1622_v23 = vmul.f32 %v1620_v22, %v1614_v12 }
 0x713   : > { %v1623_v24 = vadd.f32 %v1622_v23, %v1613_v9  ;;  %v2887_v9 = vld [vmem:[%s3693_s10 + $0x28] sm:$0xff]  }
 0x715   : > { %v1626_v25 = vsel %vm903_vm6, %v1623_v24, 0.0 }
 0x781   : > { %v1894_v19 = vpop.permute.xlu0 %1893 }
 0x782   : > { %v1896_v20 = vsel %vm903_vm6, %v1894_v19, 0.0 }
 0x783   : > { %1897 = vadd.xlane.f32.xlu0 %v1896_v20 }
 0x799   : > { %1917 = vrot.lane.b32.xlu0 %v2391_v21, %s3006_s17 }
 0x7b8   : > { %1627 = vadd.xlane.f32.xlu0 %v1626_v25 }
 0x810   : > { %v1898_v29 = vpop.xlane.xlu0 %1897 }
 0x811   : > { %v1899_v30 = vmul.f32 0.03125, %v1898_v29 }
 0x813   : > { %v1900_v31 = vadd.f32 1e-05, %v1899_v30 }
 0x814   : > { %v1918_v34 = vpop.permute.xlu0 %1917 }
 0x815   : > { %2894 = vrsqrt.f32 %v1900_v31 }
 0x81f   : > { %v2895_v32 = vpop.eup %2894 }
 0x820   : > { %v1902_v33 = vmul.f32 %v2895_v32, %v1890_v47 }
 0x822   : > { %v1911_v35 = vmul.f32 %v1909_v61, %v1902_v33 }
 0x824   : > { %v3442_v36 = vadd.f32 %v1918_v34, %v1911_v35 }
 0x826   : > { %v1926_v37 = vpack.c.bf16 %v3442_v36, %v3442_v36 }
 0x828   : > { %1936 = vrot.lane.b32.xlu1 %v1926_v37, %s3007_s24  ;;  %v2377_v37 = vld [vmem:[%s3695_s1] ss:$0 sm:$0xff] }
 0x845   : > { %v1628_v38 = vpop.xlane.xlu0 %1627 }
 0x846   : > { %v1630_v39 = vmul.f32 0.03125, %v1628_v38 }
 0x848   : > { %v1631_v41 = vsub.f32 %v1623_v24, %v1630_v39  ;;  %v2418_v24 = vld [vmem:[%s3695_s1 + $0x1] ss:$0 sm:$0xff] }
 0x84a   : > { %v1632_v42 = vmul.f32 %v1631_v41, %v1631_v41 }
 0x84c   : > { %v1633_v43 = vsel %vm903_vm6, %v1632_v42, 0.0 }
 0x84d   : > { %1634 = vadd.xlane.f32.xlu1 %v1633_v43 }
 0x89a   : > { %v1937_v46 = vpop.permute.xlu1 %1936 }
 0x89b   : > { %2725 = vmatmul.mubr.msk.bf16.vlgmr.msra.gmra.mrb[0].mxu0 %vm903_vm6, %v1937_v46 }
 0x89c   : > { %2729 = vmatpush3.bf16.msra.mxu0 %v2874_v40  ;;  %2744 = vmatprep.mubr.msk.bf16.mxu0 %vm3009_vm9, %v3008_v27 }
 0x89d   : > { %2730 = vmatprep.subr.bf16.mxu0 %v3008_v27 }
 0x8a0   : > { %2731 = vmatpush3.bf16.msra.mxu0 %v2875_v48 }
 0x8a1   : > { %2732 = vmatprep.subr.bf16.mxu0 %v3008_v27 }
 0x8a4   : > { %2733 = vmatpush3.bf16.msra.mxu0 %v2876_v49 }
 0x8a5   : > { %2734 = vmatprep.subr.bf16.mxu0 %v3008_v27 }
 0x8a8   : > { %2735 = vmatpush3.bf16.msra.mxu0 %v2877_v50 }
 0x8a9   : > { %2736 = vmatprep.subr.bf16.mxu0 %v3008_v27 }
 0x8ac   : > { %2737 = vmatpush3.bf16.msra.mxu0 %v2878_v51 }
 0x8ad   : > { %2738 = vmatprep.subr.bf16.mxu0 %v3008_v27 }
 0x8b0   : > { %2739 = vmatpush3.bf16.msra.mxu0 %v2879_v52  ;;  %v2430_v52 = vld [vmem:[%s3696_s28 + $0x1] ss:$0 sm:$0xff] }
 0x8b1   : > { %2740 = vmatprep.subr.bf16.mxu0 %v3008_v27 }
 0x8b4   : > { %2741 = vmatpush3.bf16.msra.mxu0 %v2880_v62 }
 0x8b5   : > { %2742 = vmatprep.subr.bf16.mxu0 %v3008_v27 }
 0x8b8   : > { %2743 = vmatpush3.bf16.msra.mxu0 %v2881_v3  ;;  %v2386_v3 = vld [vmem:[%s3698_s21] ss:$0 sm:$0xff] }
 0x8da   : > { %v1635_v53 = vpop.xlane.xlu1 %1634 }
 0x8db   : > { %v1636_v54 = vmul.f32 0.03125, %v1635_v53 }
 0x8dd   : > { %v1637_v55 = vadd.f32 1e-05, %v1636_v54 }
 0x8df   : > { %2896 = vrsqrt.f32 %v1637_v55  ;;  %v2429_v55 = vld [vmem:[%s3698_s21 + $0x1] ss:$0 sm:$0xff] }
 0x8e9   : > { %v2897_v56 = vpop.eup %2896 }
 0x8ea   : > { %v1639_v58 = vmul.f32 %v2897_v56, %v1631_v41 }
 0x8ec   : > { %v1646_v60 = vmul.f32 %v2371_v57, %v1639_v58 }
 0x8ee   : > { %v3492_v63 = vadd.f32 %v2372_v59, %v1646_v60 }
 0x8f0   : > { %v1658_v2 = vpack.c.bf16 %v3492_v63, %v3492_v63 }
 0x8f2   : > { %2697 = vmatmul.mubr.msk.bf16.vlgmr.msra.gmra.mrb[0].mxu1 %vm903_vm6, %v1658_v2 }
 0x8f3   : > { %2716 = vmatprep.mubr.msk.bf16.mxu1 %vm3009_vm9, %v3008_v27  ;;  %2701 = vmatpush3.bf16.msra.mxu1 %v2882_v4 }
 0x8f4   : > { %2702 = vmatprep.subr.bf16.mxu1 %v3008_v27 }
 0x8f7   : > { %2703 = vmatpush3.bf16.msra.mxu1 %v2883_v5 }
 0x8f8   : > { %2704 = vmatprep.subr.bf16.mxu1 %v3008_v27 }
 0x8fb   : > { %2705 = vmatpush3.bf16.msra.mxu1 %v2884_v6 }
 0x8fc   : > { %2706 = vmatprep.subr.bf16.mxu1 %v3008_v27 }
 0x8ff   : > { %2707 = vmatpush3.bf16.msra.mxu1 %v2885_v7 }
 0x900   : > { %2708 = vmatprep.subr.bf16.mxu1 %v3008_v27 }
 0x903   : > { %2709 = vmatpush3.bf16.msra.mxu1 %v2886_v8  ;;  %v2387_v8 = vld [vmem:[%s3697_s20] ss:$0 sm:$0xff] }
 0x904   : > { %2710 = vmatprep.subr.bf16.mxu1 %v3008_v27 }
 0x907   : > { %2711 = vmatpush3.bf16.msra.mxu1 %v2887_v9 }
 0x908   : > { %2712 = vmatprep.subr.bf16.mxu1 %v3008_v27 }
 0x90b   : > { %2713 = vmatpush3.bf16.msra.mxu1 %v2888_v10 }
 0x90c   : > { %2714 = vmatprep.subr.bf16.mxu1 %v3008_v27 }
 0x90f   : > { %2715 = vmatpush3.bf16.msra.mxu1 %v2889_v11 }
 0x96e   : > { %v1987_v14 = vpop.f32.mrb[0].mxu0 }
 0x96f   : > { %v1988_v16 = vadd.f32 %v2397_v13, %v1987_v14  ;;  %v2726_v15 = vpop.f32.mrb[1].mxu0 }
 0x970   : > { %v1990_v17 = vpop.f32.mrb[2].mxu0 }
 0x971   : > { %v1993_v0 = vmax.f32 %v1988_v16, 0.0  ;;  %v2727_v18 = vpop.f32.mrb[3].mxu0 }
 0x973   : > { %v2011_v47 = vpack.c.bf16 %v1993_v0, %v1993_v0 }
 0x975   : > { %2745 = vmatmul.mubr.bf16.vlgmr.msra.gmra.mrb[4].mxu0 %v2011_v47 }
 0x9c5   : > { %v1715_v19 = vpop.f32.mrb[0].mxu1 }
 0x9c6   : > { %v1716_v20 = vadd.f32 %v2373_v1, %v1715_v19  ;;  %v2698_v21 = vpop.f32.mrb[1].mxu1 }
 0x9c7   : > { %v1718_v61 = vpop.f32.mrb[2].mxu1 }
 0x9c8   : > { %v1721_v12 = vmax.f32 %v1716_v20, 0.0  ;;  %v2699_v22 = vpop.f32.mrb[3].mxu1 }
 0x9ca   : > { %v1738_v23 = vpack.c.bf16 %v1721_v12, %v1721_v12 }
 0x9cc   : > { %2717 = vmatmul.mubr.bf16.vlgmr.msra.gmra.mrb[4].mxu1 %v1738_v23 }
 0xa48   : > { %v2102_v25 = vpop.f32.mrb[4].mxu0 }
 0xa49   : > { %v2103_v26 = vadd.f32 %v2418_v24, %v2102_v25  ;;  %v2746_v27 = vpop.f32.mrb[5].mxu0 }
 0xa4a   : > { %v2105_v28 = vpop.f32.mrb[6].mxu0 }
 0xa4b   : > { %2109 = vrot.lane.b32.xlu0 %v2103_v26, %s3006_s17  ;;  %v2747_v29 = vpop.f32.mrb[7].mxu0 }
 0xa9f   : > { %v1828_v30 = vpop.f32.mrb[4].mxu1 }
 0xaa0   : > { %v2718_v31 = vpop.f32.mrb[5].mxu1  ;;  %v1829_v38 = vadd.f32 %v2377_v37, %v1828_v30 }
 0xaa1   : > { %v1831_v32 = vpop.f32.mrb[6].mxu1 }
 0xaa2   : > { %v2719_v33 = vpop.f32.mrb[7].mxu1  ;;  %v1834_v39 = vadd.f32 %v1829_v38, %v3492_v63 }
 0xaa4   : > { %v1837_v41 = vsel %vm903_vm6, %v1834_v39, 0.0 }
 0xabd   : > { %v2110_v34 = vpop.permute.xlu0 %2109 }
 0xabe   : > { %v2112_v35 = vadd.f32 %v2110_v34, %v3442_v36 }
 0xac0   : > { %2118 = vrot.lane.b32.xlu1 %v2112_v35, %s3007_s24 }
 0xae4   : > { %1838 = vadd.xlane.f32.xlu1 %v1837_v41 }
 0xb32   : > { %v2119_v42 = vpop.permute.xlu1 %2118 }
 0xb33   : > { %v2121_v43 = vsel %vm903_vm6, %v2119_v42, 0.0 }
 0xb34   : > { %2122 = vadd.xlane.f32.xlu0 %v2121_v43 }
 0xb71   : > { %v1839_v44 = vpop.xlane.xlu1 %1838 }
 0xb72   : > { %v1840_v45 = vmul.f32 0.03125, %v1839_v44 }
 0xb74   : > { %v1841_v40 = vsub.f32 %v1834_v39, %v1840_v45 }
 0xb76   : > { %v1842_v36 = vmul.f32 %v1841_v40, %v1841_v40 }
 0xb78   : > { %v1843_v46 = vsel %vm903_vm6, %v1842_v36, 0.0 }
 0xb79   : > { %1844 = vadd.xlane.f32.xlu1 %v1843_v46 }
 0xbc1   : > { %v2123_v48 = vpop.xlane.xlu0 %2122 }
 0xbc2   : > { %v2124_v49 = vmul.f32 0.03125, %v2123_v48 }
 0xbc4   : > { %v2125_v50 = vsub.f32 %v2112_v35, %v2124_v49 }
 0xbc6   : > { %v2126_v51 = vmul.f32 %v2125_v50, %v2125_v50 }
 0xbc8   : > { %2128 = vrot.lane.b32.xlu0 %v2126_v51, %s3007_s24 }
 0xbcc   : > { %2152 = vrot.lane.b32.xlu0 %v2430_v52, %s3006_s17 }
 0xc06   : > { %v1845_v56 = vpop.xlane.xlu1 %1844 }
 0xc07   : > { %v1846_v57 = vmul.f32 0.03125, %v1845_v56 }
 0xc09   : > { %v1847_v58 = vadd.f32 1e-05, %v1846_v57 }
 0xc0b   : > { %2898 = vrsqrt.f32 %v1847_v58 }
 0xc15   : > { %v2899_v63 = vpop.eup %2898 }
 0xc16   : > { %v1849_v2 = vmul.f32 %v2899_v63, %v1841_v40 }
 0xc18   : > { %v1856_v7 = vmul.f32 %v2386_v3, %v1849_v2 }
 0xc1a   : > { %v1863_v11 = vadd.f32 %v2387_v8, %v1856_v7 }
 0xc3a   : > { %v2129_v53 = vpop.permute.xlu0 %2128 }
 0xc3b   : > { %v2131_v54 = vsel %vm903_vm6, %v2129_v53, 0.0 }
 0xc3c   : > { %2132 = vadd.xlane.f32.xlu1 %v2131_v54 }
 0xc3e   : > { %v2153_v9 = vpop.permute.xlu0 %2152 }
 0xc4d   : > { %2143 = vrot.lane.b32.xlu1 %v2429_v55, %s3006_s17 }
 0xcc9   : > { %v2133_v59 = vpop.xlane.xlu1 %2132 }
 0xcca   : > { %v2134_v60 = vmul.f32 0.03125, %v2133_v59 }
 0xccc   : > { %v2135_v62 = vadd.f32 1e-05, %v2134_v60 }
 0xccd   : > { %v2144_v5 = vpop.permute.xlu1 %2143 }
 0xcce   : > { %2900 = vrsqrt.f32 %v2135_v62 }
 0xcd8   : > { %v2901_v4 = vpop.eup %2900 }
 0xcd9   : > { %v2137_v6 = vmul.f32 %v2901_v4, %v2125_v50 }
 0xcdb   : > { %v2146_v10 = vmul.f32 %v2144_v5, %v2137_v6 }
 0xcdd   : > { %v2155_v13 = vadd.f32 %v2153_v9, %v2146_v10 }
 0xcdf   : > { %v2156_v14 = vsel %vm903_vm6, %v1863_v11, %v2155_v13 }
 0xce0   : > { %2158 = vst.msk [vmem:[%s637_s25] sm:$0xff] %vm2157_vm10, %v2156_v14 }
 0xce1 PF: > { %s3699_s18 = sld [smem:[#allocation13_spill]]  ;;  %s3702_s16 = sld [smem:[#allocation30_spill]] }
 0xce2   : > { %s3700_s0 = sld [smem:[#allocation11_spill]]  ;;  %s2173_s26 = sshll.u32 %s637_s25, 4  ;;  %s2174_s26 = int_to_ptr.vmem [resolvable:$true] %s2173_s26 }
 0xce3   : > { %s2902_s22 = scalar_lea.vmem %s2174_s26, 128  ;;  %s3010_s17 = smov [#allocation7]  }
 0xce4   : > { %p2903_p4 = scmp.ne.s32.totalorder %s2174_s26, %s2902_s22  ;;  %s2906_s23 = sshll.u32 %s3010_s17, 4  ;;  %s2907_s23 = int_to_ptr.vmem [resolvable:$false] %s2906_s23 }
 0xce5   : > { %s2908_s1 = scalar_lea.vmem %s2907_s23, 256  ;;  %p2909_p7 = scmp.lt.s32.totalorder %s2174_s26, %s2907_s23 }
 0xce6   : > { %p2904_p5 = pnand %p2903_p4, %p3150_p3  ;;  %p2910_p8 = scmp.lt.s32.totalorder %s2908_s1, %s2902_s22 }
 0xce7   : > { %s2432_s9 = sshll.u32 %s3699_s18, 7 }
 0xce8   : > { %s3576_s28 = scalar_lea.hbm %s3702_s16, %s2432_s9  ;;  %s3703_s27 = sand.u32 1, %s3700_s0  }
 0xce9   : > { %s2160_s24 = scalar_lea.sflag [#allocation8], %s3703_s27  ;;  %p2905_p6 = pneg %p2904_p5 }
 0xcea   : > { %p2911_p10 = por %p2910_p8, %p2909_p7 }
 0xcec   : > { %p2912_p11 = pnand %p2911_p10, %p2905_p6 }
 0xcee   : > { %2915 = shalt.err (!%p2912_p11)
}
 0xcef   : > { %s2916_s29 = scalar_lea.hbm %s3576_s28, 128  ;;  %s2920_s0 = scalar_lea.hbm %s3702_s16, 256 }
 0xcf0   : > { %p2917_p12 = scmp.ne.s32.totalorder %s3576_s28, %s2916_s29  ;;  %p2921_p1 = scmp.lt.u32.totalorder %s3576_s28, %s3702_s16 }
 0xcf1   : > { %p2922_p2 = scmp.lt.u32.totalorder %s2920_s0, %s2916_s29  ;;  %p2924_p5 = scmp.lt.u32.totalorder %s2916_s29, %s3576_s28 }
 0xcf2   : > { %p2918_p13 = pnand %p2917_p12, %p3150_p3 }
 0xcf3   : > { %p2923_p4 = por %p2922_p2, %p2921_p1 }
 0xcf4   : > { %p2919_p0 = pneg %p2918_p13 }
 0xcf5   : > { %p2925_p6 = por %p2924_p5, %p2923_p4 }
 0xcf7   : > { %p2926_p7 = pnand %p2925_p6, %p2919_p0 }
 0xcf9   : > { %2929 = shalt.err (!%p2926_p7)
}
 0xcfa   : > { %2748 = dma.vmem_to_hbm [thread:$0]  (%p3150_p3), %s2174_s26, 128, %s3576_s28, %s2160_s24  }
 0xcfb PF: > { %s3704_s1 = sld [smem:[#allocation16_spill]]  ;;  %s3705_s12 = sld [smem:[#allocation10_spill]] }
 0xd01   : > { %p2754_p8 = scmp.ge.s32.totalorder %s3704_s1, 2  ;;  %s2185_s22 = sand.u32 1, %s3705_s12  }
 0xd02   : > { %s2186_s17 = scalar_lea.sflag [#allocation8], %s2185_s22 }
 0xd03   : > { %p2751_p10 = pnand %p2754_p8, %p3160_p9 }
 0xd05   : > { %2963 = dma.done.wait (!%p2751_p10), %s2186_s17, 128  }
 0xd06   : > { %2965 = vsyncadd (!%p2751_p10), %s2186_s17, 4294967168  ;;  %s30_s30 = sadd.s32 1, %s3704_s1   ;;  %s3707_s24 = sld [smem:[#allocation11_spill]] }
 0xd07   : > { %p27_p11 = scmp.ge.s32.totalorder %s30_s30, 6   ;;  %s3708_s25 = sld [smem:[#allocation12_spill]] }
 0xd08   : > { %s3709_s26 = sld [smem:[#allocation21_spill]]  ;;  %s3710_s27 = sld [smem:[#allocation14_spill]] }
 0xd09   : > { %s3711_s28 = sld [smem:[#allocation15_spill]]  ;;  %s3712_s29 = sld [smem:[#allocation17_spill]] }
 0xd0a   : > { %s3713_s0 = sld [smem:[#allocation19_spill]]  ;;  %29 = sbr.rel (!%p27_p11) target bundleno = 15 (0xf), region = 154 }
 0xd11   :  { %2191 = vsyncpa [#allocation8], 1 }
 0xd12   :  { %2193 = vsyncpa [#allocation8 + $0x1], 1 }

</bundles_post_ra>
